<compile_context>
chip_gen: v7x
topology: tpu7x:2x2x1
jax: 0.10.0
libtpu: 0.0.40
codegen_flags: <defaults>
</compile_context>

<pallas_src>
import functools

import jax
import jax.numpy as jnp
from jax import lax
from jax.experimental import pallas as pl
from jax.experimental.pallas import tpu as pltpu


# ----------------------------------------------------------------------------
# In-kernel helpers
# ----------------------------------------------------------------------------
def _knn_topk_acc(feat, *, knn_k, col_bias):
    """Dense kNN accumulation for IISide.get_knn_graph.

    feat: (N_pad, E_pad) f32.  Returns (N_pad, N_pad) f32 where the top-k
    entries of each row carry their (unscaled) cosine similarity and all other
    entries are 0.  Degree normalization is folded into a constant by the
    caller (every row selects exactly knn_k columns).  `col_bias` is an
    optional (1, N_pad) additive mask pushing padded columns to -1e30.
    """
    # F.normalize(features, dim=-1): clamp on sum-of-squares keeps the
    # eps-norm semantics while using the cheap EUP rsqrt path.
    sumsq = jnp.sum(feat * feat, axis=-1, keepdims=True)
    fn = feat * lax.rsqrt(jnp.maximum(sumsq, 1e-24))

    # sim = fn @ fn.T expressed as a contraction on the minor dim -> no
    # materialized transpose.  Kept f32 so top-k membership matches the ref.
    sim = lax.dot_general(fn, fn, (((1,), (1,)), ((), ())),
                          preferred_element_type=jnp.float32)
    if col_bias is not None:
        sim = sim + col_bias

    # Iterative top-k per row: one cross-lane row-max per pass, accumulate the
    # selected value directly, knock it out, repeat.  (Exact-float ties select
    # more than one entry; assumed absent for real-valued features.)
    def body(_, carry):
        work, acc = carry
        rmax = jnp.max(work, axis=-1, keepdims=True)
        sel = work >= rmax
        acc = acc + jnp.where(sel, work, jnp.float32(0.0))
        work = jnp.where(sel, jnp.float32(-3.0e38), work)
        return work, acc

    _, acc = lax.fori_loop(0, knn_k, body,
                           (sim, jnp.zeros_like(sim)), unroll=True)
    return acc


def iiside_kernel(w_ref,                         # (2,)          SMEM softmax(alpha)
                  pfe_ref, pw_ref, pb_ref,       # (N,C') (C',2E') (1,2E') packed
                  vadj_hbm, tadj_hbm,            # (N,N) bf16 in HBM (pl.ANY)
                  emb_ref,                       # (N,E')  itemEmbds (padded)
                  out_ref,                       # (N,E')
                  vadj_buf, tadj_buf, sem,       # VMEM scratch + DMA sems
                  *, knn_k, origin_ratio, num_layers, n_valid, e_pad):
    # Kick off both N^2 adjacency-buffer DMAs immediately so they overlap with
    # the projection + kNN compute below.
    v_cp = pltpu.make_async_copy(vadj_hbm, vadj_buf, sem.at[0])
    t_cp = pltpu.make_async_copy(tadj_hbm, tadj_buf, sem.at[1])
    v_cp.start()
    t_cp.start()

    # Scalar folds (SMEM reads happen before any DMA wait).
    w0 = w_ref[0]
    w1 = w_ref[1]
    r = jnp.float32(origin_ratio)
    knn_scale = jnp.float32((1.0 - origin_ratio) / (knn_k + 1e-7))
    c_vadj = w0 * r
    c_tadj = w1 * r
    c_vknn = w0 * knn_scale
    c_tknn = w1 * knn_scale

    # Both modality projections in ONE MXU call via the block-diagonal weight.
    proj = jnp.dot(pfe_ref[...], pw_ref[...],
                   preferred_element_type=jnp.float32) + pb_ref[...]
    vproj = proj[:, :e_pad]
    tproj = proj[:, e_pad:]

    # Padded columns of sim must be pushed below any real cosine similarity.
    n_pad = out_ref.shape[0]
    if n_pad > n_valid:
        col = lax.broadcasted_iota(jnp.int32, (1, n_pad), 1)
        col_bias = jnp.where(col < n_valid, jnp.float32(0.0),
                             jnp.float32(-1.0e30))
    else:
        col_bias = None

    # --- visual modality: build kNN accumulation, then fold into adj ---------
    acc_v = _knn_topk_acc(vproj, knn_k=knn_k, col_bias=col_bias)
    v_cp.wait()
    adj = c_vadj * vadj_buf[...].astype(jnp.float32) + c_vknn * acc_v

    # --- textual modality ----------------------------------------------------
    acc_t = _knn_topk_acc(tproj, knn_k=knn_k, col_bias=col_bias)
    t_cp.wait()
    adj = adj + c_tadj * tadj_buf[...].astype(jnp.float32) + c_tknn * acc_t

    # --- propagation: bf16 operands, f32 accumulation on the MXU -------------
    adj_bf = adj.astype(jnp.bfloat16)
    x = emb_ref[...]
    for _ in range(num_layers):
        x = jnp.dot(adj_bf, x.astype(jnp.bfloat16),
                    preferred_element_type=jnp.float32)
    out_ref[...] = x.astype(out_ref.dtype)


# ----------------------------------------------------------------------------
# Host-side wrapper
# ----------------------------------------------------------------------------
def _round_up(x, m):
    return (x + m - 1) // m * m


def _pad_to(x, shape):
    pads = [(0, s - d) for d, s in zip(x.shape, shape)]
    return jnp.pad(x, pads)


def iiside_forward(item_embds, params, *, knn_k, origin_ratio, num_layers):
    n, e = item_embds.shape
    dv = params["vFeats"].shape[1]
    dt = params["tFeats"].shape[1]
    n_pad = _round_up(n, 128)
    e_pad = _round_up(e, 128)
    c_pad = _round_up(dv + dt, 128)

    weight = jax.nn.softmax(params["alpha"]).astype(jnp.float32)   # glue

    # Packed modality features: v in channels [0, dv), t in [dv, dv+dt).
    pfe = jnp.zeros((n_pad, c_pad), jnp.float32)
    pfe = pfe.at[:n, :dv].set(params["vFeats"])
    pfe = pfe.at[:n, dv:dv + dt].set(params["tFeats"])

    # Block-diagonal packed weight: v -> lanes [0, e_pad), t -> [e_pad, 2*e_pad).
    pw = jnp.zeros((c_pad, 2 * e_pad), jnp.float32)
    pw = pw.at[:dv, :e].set(params["vW"].T)
    pw = pw.at[dv:dv + dt, e_pad:e_pad + e].set(params["tW"].T)

    pb = jnp.zeros((1, 2 * e_pad), jnp.float32)
    pb = pb.at[0, :e].set(params["vb"])
    pb = pb.at[0, e_pad:e_pad + e].set(params["tb"])

    emb = _pad_to(item_embds, (n_pad, e_pad))

    # Registered buffers travel as bf16 (halves DMA + VMEM residency); padded
    # rows/cols are zero so they contribute nothing.
    vadj = _pad_to(params["vAdj"], (n_pad, n_pad)).astype(jnp.bfloat16)
    tadj = _pad_to(params["tAdj"], (n_pad, n_pad)).astype(jnp.bfloat16)

    vmem = pl.BlockSpec(memory_space=pltpu.MemorySpace.VMEM)
    smem = pl.BlockSpec(memory_space=pltpu.MemorySpace.SMEM)
    anymem = pl.BlockSpec(memory_space=pl.ANY)

    kernel = functools.partial(iiside_kernel, knn_k=knn_k,
                               origin_ratio=float(origin_ratio),
                               num_layers=num_layers, n_valid=n, e_pad=e_pad)

    out = pl.pallas_call(
        kernel,
        out_shape=jax.ShapeDtypeStruct((n_pad, e_pad), jnp.float32),
        in_specs=[smem, vmem, vmem, vmem, anymem, anymem, vmem],
        out_specs=vmem,
        scratch_shapes=[
            pltpu.VMEM((n_pad, n_pad), jnp.bfloat16),   # vAdj landing buffer
            pltpu.VMEM((n_pad, n_pad), jnp.bfloat16),   # tAdj landing buffer
            pltpu.SemaphoreType.DMA((2,)),
        ],
        compiler_params=pltpu.CompilerParams(
            # Raise scoped VMEM above the 16/32 MiB default while leaving
            # headroom under physical VMEM on every generation (48 < 64 MiB
            # on v7x, << 128 MiB on v5e/v6e).
            vmem_limit_bytes=48 * 1024 * 1024),
    )(weight, pfe, pw, pb, vadj, tadj, emb)

    return out[:n, :e]


# ----------------------------------------------------------------------------
# Plain-JAX reference (also used to build the init-time vAdj / tAdj buffers)
# ----------------------------------------------------------------------------
def knn_graph_dense_ref(feat, knn_k):
    n = feat.shape[0]
    fn = feat / jnp.maximum(jnp.linalg.norm(feat, axis=-1, keepdims=True), 1e-12)
    sim = jnp.dot(fn, fn.T, precision=lax.Precision.HIGHEST)
    _, idx = lax.top_k(sim, knn_k)
    mask = jnp.zeros((n, n), jnp.float32).at[jnp.arange(n)[:, None], idx].set(1.0)
    deg = 1e-7 + mask.sum(-1, keepdims=True)
    dinv = deg ** -0.5
    return mask * sim * dinv * dinv.reshape(1, n)


def iiside_forward_ref(item_embds, params, *, knn_k, origin_ratio, num_layers):
    weight = jax.nn.softmax(params["alpha"])
    hp = lax.Precision.HIGHEST
    vproj = jnp.dot(params["vFeats"], params["vW"].T, precision=hp) + params["vb"]
    tproj = jnp.dot(params["tFeats"], params["tW"].T, precision=hp) + params["tb"]
    lv = knn_graph_dense_ref(vproj, knn_k)
    lt = knn_graph_dense_ref(tproj, knn_k)
    fv = origin_ratio * params["vAdj"] + (1.0 - origin_ratio) * lv
    ft = origin_ratio * params["tAdj"] + (1.0 - origin_ratio) * lt
    adj = weight[0] * fv + weight[1] * ft
    x = item_embds
    for _ in range(num_layers):
        x = jnp.dot(adj, x, precision=hp)
    return x


def init_params(key, *, num_items, v_dim, t_dim, emb_dim, knn_k):
    # TODO(synk): original module loads v/t features from pickle files
    # (cfg.vfile / cfg.tfile); synthesized deterministically here instead.
    ks = jax.random.split(key, 6)
    vfeats = jax.random.normal(ks[0], (num_items, v_dim), jnp.float32)
    tfeats = jax.random.normal(ks[1], (num_items, t_dim), jnp.float32)
    params = {
        "vFeats": vfeats,
        "tFeats": tfeats,
        "vW": jax.random.normal(ks[2], (emb_dim, v_dim), jnp.float32) / jnp.sqrt(v_dim),
        "vb": jax.random.normal(ks[3], (emb_dim,), jnp.float32) * 0.01,
        "tW": jax.random.normal(ks[4], (emb_dim, t_dim), jnp.float32) / jnp.sqrt(t_dim),
        "tb": jax.random.normal(ks[5], (emb_dim,), jnp.float32) * 0.01,
        "alpha": jnp.array([0.5, 0.5], jnp.float32),
        # registered buffers: kNN graphs of the *raw* modality features
        "vAdj": knn_graph_dense_ref(vfeats, knn_k),
        "tAdj": knn_graph_dense_ref(tfeats, knn_k),
    }
    return params


if __name__ == "__main__":
    NUM_ITEMS = 64
    V_DIM = 32
    T_DIM = 24
    EMB_DIM = 16
    NUM_LAYERS = 2
    KNN_K = 8
    ORIGIN_RATIO = 0.5

    key = jax.random.PRNGKey(0)
    k_param, k_emb = jax.random.split(key)
    params = init_params(k_param, num_items=NUM_ITEMS, v_dim=V_DIM,
                         t_dim=T_DIM, emb_dim=EMB_DIM, knn_k=KNN_K)
    item_embds = jax.random.normal(k_emb, (NUM_ITEMS, EMB_DIM), jnp.float32)

    out = iiside_forward(item_embds, params, knn_k=KNN_K,
                         origin_ratio=ORIGIN_RATIO, num_layers=NUM_LAYERS)
    out = jax.block_until_ready(out)

    ref = iiside_forward_ref(item_embds, params, knn_k=KNN_K,
                             origin_ratio=ORIGIN_RATIO, num_layers=NUM_LAYERS)
    if not jnp.allclose(out, ref, atol=1e-2, rtol=1e-2):
        print("WARNING: max |kernel - ref| =",
              float(jnp.max(jnp.abs(out - ref))))

    assert out.shape == (NUM_ITEMS, EMB_DIM)
    assert bool(jnp.all(jnp.isfinite(out)))
    print("KERNEL_OK")
</pallas_src>

<mosaic_0001>
module attributes {stable_mosaic.version = 11 : i64} {
  func.func @iiside_kernel(%arg0: memref<2xf32, #tpu.memory_space<smem>>, %arg1: memref<128x128xf32, #tpu.memory_space<vmem>>, %arg2: memref<128x256xf32, #tpu.memory_space<vmem>>, %arg3: memref<1x256xf32, #tpu.memory_space<vmem>>, %arg4: memref<128x128xbf16, #tpu.memory_space<any>>, %arg5: memref<128x128xbf16, #tpu.memory_space<any>>, %arg6: memref<128x128xf32, #tpu.memory_space<vmem>>, %arg7: memref<128x128xf32, #tpu.memory_space<vmem>>, %arg8: memref<128x128xbf16, #tpu.memory_space<vmem>>, %arg9: memref<128x128xbf16, #tpu.memory_space<vmem>>, %arg10: memref<2x!tpu.dma_semaphore, #tpu.memory_space<semaphore_mem>>) attributes {dimension_semantics = [], scalar_prefetch = 0 : i64, scratch_operands = 3 : i64, tpu.core_type = #tpu.core_type<tc>} {
    %c0_i32 = arith.constant 0 : i32
    %0 = tpu.memref_slice %arg10[%c0_i32] : memref<2x!tpu.dma_semaphore, #tpu.memory_space<semaphore_mem>> -> memref<1x!tpu.dma_semaphore, #tpu.memory_space<semaphore_mem>>
    %1 = tpu.memref_squeeze %0 : memref<1x!tpu.dma_semaphore, #tpu.memory_space<semaphore_mem>> -> memref<!tpu.dma_semaphore, #tpu.memory_space<semaphore_mem>>
    tpu.enqueue_dma source(%arg4 : memref<128x128xbf16, #tpu.memory_space<any>>) target(%arg8 : memref<128x128xbf16, #tpu.memory_space<vmem>>) target_semaphore(%1 : memref<!tpu.dma_semaphore, #tpu.memory_space<semaphore_mem>>)
    %c1_i32 = arith.constant 1 : i32
    %2 = tpu.memref_slice %arg10[%c1_i32] : memref<2x!tpu.dma_semaphore, #tpu.memory_space<semaphore_mem>> -> memref<1x!tpu.dma_semaphore, #tpu.memory_space<semaphore_mem>>
    %3 = tpu.memref_squeeze %2 : memref<1x!tpu.dma_semaphore, #tpu.memory_space<semaphore_mem>> -> memref<!tpu.dma_semaphore, #tpu.memory_space<semaphore_mem>>
    tpu.enqueue_dma source(%arg5 : memref<128x128xbf16, #tpu.memory_space<any>>) target(%arg9 : memref<128x128xbf16, #tpu.memory_space<vmem>>) target_semaphore(%3 : memref<!tpu.dma_semaphore, #tpu.memory_space<semaphore_mem>>)
    %c0 = arith.constant 0 : index
    %4 = memref.load %arg0[%c0] : memref<2xf32, #tpu.memory_space<smem>>
    %c1 = arith.constant 1 : index
    %5 = memref.load %arg0[%c1] : memref<2xf32, #tpu.memory_space<smem>>
    %cst = arith.constant 5.000000e-01 : f32
    %6 = arith.mulf %4, %cst : f32
    %cst_0 = arith.constant 5.000000e-01 : f32
    %7 = arith.mulf %5, %cst_0 : f32
    %cst_1 = arith.constant 6.250000e-02 : f32
    %8 = arith.mulf %4, %cst_1 : f32
    %cst_2 = arith.constant 6.250000e-02 : f32
    %9 = arith.mulf %5, %cst_2 : f32
    %c0_3 = arith.constant 0 : index
    %c0_4 = arith.constant 0 : index
    %10 = vector.load %arg1[%c0_3, %c0_4] : memref<128x128xf32, #tpu.memory_space<vmem>>, vector<128x128xf32>
    %c0_5 = arith.constant 0 : index
    %c0_6 = arith.constant 0 : index
    %11 = vector.load %arg2[%c0_5, %c0_6] : memref<128x256xf32, #tpu.memory_space<vmem>>, vector<128x256xf32>
    %cst_7 = arith.constant dense<0.000000e+00> : vector<128x256xf32>
    %12 = tpu.matmul %10, %11, %cst_7 {dimension_numbers = #tpu.dot_dimension_numbers<[1], [0], [0], [1], [0, 0, 1, 1], [], []>} : vector<128x128xf32>, vector<128x256xf32>, vector<128x256xf32> -> vector<128x256xf32>
    %c0_8 = arith.constant 0 : index
    %c0_9 = arith.constant 0 : index
    %13 = vector.load %arg3[%c0_8, %c0_9] : memref<1x256xf32, #tpu.memory_space<vmem>>, vector<1x256xf32>
    %14 = vector.broadcast %13 : vector<1x256xf32> to vector<128x256xf32>
    %15 = arith.addf %12, %14 : vector<128x256xf32>
    %16 = vector.extract_strided_slice %15 {offsets = [0, 0], sizes = [128, 128], strides = [1, 1]} : vector<128x256xf32> to vector<128x128xf32>
    %17 = vector.extract_strided_slice %15 {offsets = [0, 128], sizes = [128, 128], strides = [1, 1]} : vector<128x256xf32> to vector<128x128xf32>
    %18 = tpu.iota {dimensions = array<i32: 1>} : vector<1x128xi32>
    %c64_i32 = arith.constant 64 : i32
    %19 = vector.broadcast %c64_i32 : i32 to vector<1x128xi32>
    %20 = arith.cmpi slt, %18, %19 : vector<1x128xi32>
    %cst_10 = arith.constant 0.000000e+00 : f32
    %cst_11 = arith.constant -1.000000e+30 : f32
    %21 = vector.broadcast %cst_10 : f32 to vector<1x128xf32>
    %22 = vector.broadcast %cst_11 : f32 to vector<1x128xf32>
    %23 = arith.select %20, %21, %22 : vector<1x128xi1>, vector<1x128xf32>
    %24 = arith.mulf %16, %16 : vector<128x128xf32>
    %cst_12 = arith.constant dense<0.000000e+00> : vector<128xf32>
    %25 = vector.multi_reduction <add>, %24, %cst_12 [1] : vector<128x128xf32> to vector<128xf32>
    %26 = vector.shape_cast %25 : vector<128xf32> to vector<128x1xf32>
    %cst_13 = arith.constant 1.000000e-24 : f32
    %27 = vector.broadcast %cst_13 : f32 to vector<128x1xf32>
    %28 = arith.maximumf %26, %27 : vector<128x1xf32>
    %29 = math.rsqrt %28 : vector<128x1xf32>
    %30 = vector.broadcast %29 : vector<128x1xf32> to vector<128x128xf32>
    %31 = arith.mulf %16, %30 : vector<128x128xf32>
    %cst_14 = arith.constant dense<0.000000e+00> : vector<128x128xf32>
    %32 = tpu.matmul %31, %31, %cst_14 {dimension_numbers = #tpu.dot_dimension_numbers<[1], [1], [0], [0], [0, 0, 1, 0], [], []>} : vector<128x128xf32>, vector<128x128xf32>, vector<128x128xf32> -> vector<128x128xf32>
    %33 = vector.broadcast %23 : vector<1x128xf32> to vector<128x128xf32>
    %34 = arith.addf %32, %33 : vector<128x128xf32>
    %cst_15 = arith.constant 0.000000e+00 : f32
    %35 = vector.broadcast %cst_15 : f32 to vector<128x128xf32>
    %c0_i32_16 = arith.constant 0 : i32
    %cst_17 = arith.constant dense<0xFF800000> : vector<128xf32>
    %36 = vector.multi_reduction <maximumf>, %34, %cst_17 [1] : vector<128x128xf32> to vector<128xf32>
    %37 = vector.shape_cast %36 : vector<128xf32> to vector<128x1xf32>
    %38 = vector.broadcast %37 : vector<128x1xf32> to vector<128x128xf32>
    %39 = arith.cmpf oge, %34, %38 : vector<128x128xf32>
    %cst_18 = arith.constant 0.000000e+00 : f32
    %40 = vector.broadcast %cst_18 : f32 to vector<128x128xf32>
    %41 = arith.select %39, %34, %40 : vector<128x128xi1>, vector<128x128xf32>
    %42 = arith.addf %35, %41 : vector<128x128xf32>
    %cst_19 = arith.constant -3.000000e+38 : f32
    %43 = vector.broadcast %cst_19 : f32 to vector<128x128xf32>
    %44 = arith.select %39, %43, %34 : vector<128x128xi1>, vector<128x128xf32>
    %c1_i32_20 = arith.constant 1 : i32
    %cst_21 = arith.constant dense<0xFF800000> : vector<128xf32>
    %45 = vector.multi_reduction <maximumf>, %44, %cst_21 [1] : vector<128x128xf32> to vector<128xf32>
    %46 = vector.shape_cast %45 : vector<128xf32> to vector<128x1xf32>
    %47 = vector.broadcast %46 : vector<128x1xf32> to vector<128x128xf32>
    %48 = arith.cmpf oge, %44, %47 : vector<128x128xf32>
    %cst_22 = arith.constant 0.000000e+00 : f32
    %49 = vector.broadcast %cst_22 : f32 to vector<128x128xf32>
    %50 = arith.select %48, %44, %49 : vector<128x128xi1>, vector<128x128xf32>
    %51 = arith.addf %42, %50 : vector<128x128xf32>
    %cst_23 = arith.constant -3.000000e+38 : f32
    %52 = vector.broadcast %cst_23 : f32 to vector<128x128xf32>
    %53 = arith.select %48, %52, %44 : vector<128x128xi1>, vector<128x128xf32>
    %c2_i32 = arith.constant 2 : i32
    %cst_24 = arith.constant dense<0xFF800000> : vector<128xf32>
    %54 = vector.multi_reduction <maximumf>, %53, %cst_24 [1] : vector<128x128xf32> to vector<128xf32>
    %55 = vector.shape_cast %54 : vector<128xf32> to vector<128x1xf32>
    %56 = vector.broadcast %55 : vector<128x1xf32> to vector<128x128xf32>
    %57 = arith.cmpf oge, %53, %56 : vector<128x128xf32>
    %cst_25 = arith.constant 0.000000e+00 : f32
    %58 = vector.broadcast %cst_25 : f32 to vector<128x128xf32>
    %59 = arith.select %57, %53, %58 : vector<128x128xi1>, vector<128x128xf32>
    %60 = arith.addf %51, %59 : vector<128x128xf32>
    %cst_26 = arith.constant -3.000000e+38 : f32
    %61 = vector.broadcast %cst_26 : f32 to vector<128x128xf32>
    %62 = arith.select %57, %61, %53 : vector<128x128xi1>, vector<128x128xf32>
    %c3_i32 = arith.constant 3 : i32
    %cst_27 = arith.constant dense<0xFF800000> : vector<128xf32>
    %63 = vector.multi_reduction <maximumf>, %62, %cst_27 [1] : vector<128x128xf32> to vector<128xf32>
    %64 = vector.shape_cast %63 : vector<128xf32> to vector<128x1xf32>
    %65 = vector.broadcast %64 : vector<128x1xf32> to vector<128x128xf32>
    %66 = arith.cmpf oge, %62, %65 : vector<128x128xf32>
    %cst_28 = arith.constant 0.000000e+00 : f32
    %67 = vector.broadcast %cst_28 : f32 to vector<128x128xf32>
    %68 = arith.select %66, %62, %67 : vector<128x128xi1>, vector<128x128xf32>
    %69 = arith.addf %60, %68 : vector<128x128xf32>
    %cst_29 = arith.constant -3.000000e+38 : f32
    %70 = vector.broadcast %cst_29 : f32 to vector<128x128xf32>
    %71 = arith.select %66, %70, %62 : vector<128x128xi1>, vector<128x128xf32>
    %c4_i32 = arith.constant 4 : i32
    %cst_30 = arith.constant dense<0xFF800000> : vector<128xf32>
    %72 = vector.multi_reduction <maximumf>, %71, %cst_30 [1] : vector<128x128xf32> to vector<128xf32>
    %73 = vector.shape_cast %72 : vector<128xf32> to vector<128x1xf32>
    %74 = vector.broadcast %73 : vector<128x1xf32> to vector<128x128xf32>
    %75 = arith.cmpf oge, %71, %74 : vector<128x128xf32>
    %cst_31 = arith.constant 0.000000e+00 : f32
    %76 = vector.broadcast %cst_31 : f32 to vector<128x128xf32>
    %77 = arith.select %75, %71, %76 : vector<128x128xi1>, vector<128x128xf32>
    %78 = arith.addf %69, %77 : vector<128x128xf32>
    %cst_32 = arith.constant -3.000000e+38 : f32
    %79 = vector.broadcast %cst_32 : f32 to vector<128x128xf32>
    %80 = arith.select %75, %79, %71 : vector<128x128xi1>, vector<128x128xf32>
    %c5_i32 = arith.constant 5 : i32
    %cst_33 = arith.constant dense<0xFF800000> : vector<128xf32>
    %81 = vector.multi_reduction <maximumf>, %80, %cst_33 [1] : vector<128x128xf32> to vector<128xf32>
    %82 = vector.shape_cast %81 : vector<128xf32> to vector<128x1xf32>
    %83 = vector.broadcast %82 : vector<128x1xf32> to vector<128x128xf32>
    %84 = arith.cmpf oge, %80, %83 : vector<128x128xf32>
    %cst_34 = arith.constant 0.000000e+00 : f32
    %85 = vector.broadcast %cst_34 : f32 to vector<128x128xf32>
    %86 = arith.select %84, %80, %85 : vector<128x128xi1>, vector<128x128xf32>
    %87 = arith.addf %78, %86 : vector<128x128xf32>
    %cst_35 = arith.constant -3.000000e+38 : f32
    %88 = vector.broadcast %cst_35 : f32 to vector<128x128xf32>
    %89 = arith.select %84, %88, %80 : vector<128x128xi1>, vector<128x128xf32>
    %c6_i32 = arith.constant 6 : i32
    %cst_36 = arith.constant dense<0xFF800000> : vector<128xf32>
    %90 = vector.multi_reduction <maximumf>, %89, %cst_36 [1] : vector<128x128xf32> to vector<128xf32>
    %91 = vector.shape_cast %90 : vector<128xf32> to vector<128x1xf32>
    %92 = vector.broadcast %91 : vector<128x1xf32> to vector<128x128xf32>
    %93 = arith.cmpf oge, %89, %92 : vector<128x128xf32>
    %cst_37 = arith.constant 0.000000e+00 : f32
    %94 = vector.broadcast %cst_37 : f32 to vector<128x128xf32>
    %95 = arith.select %93, %89, %94 : vector<128x128xi1>, vector<128x128xf32>
    %96 = arith.addf %87, %95 : vector<128x128xf32>
    %cst_38 = arith.constant -3.000000e+38 : f32
    %97 = vector.broadcast %cst_38 : f32 to vector<128x128xf32>
    %98 = arith.select %93, %97, %89 : vector<128x128xi1>, vector<128x128xf32>
    %c7_i32 = arith.constant 7 : i32
    %cst_39 = arith.constant dense<0xFF800000> : vector<128xf32>
    %99 = vector.multi_reduction <maximumf>, %98, %cst_39 [1] : vector<128x128xf32> to vector<128xf32>
    %100 = vector.shape_cast %99 : vector<128xf32> to vector<128x1xf32>
    %101 = vector.broadcast %100 : vector<128x1xf32> to vector<128x128xf32>
    %102 = arith.cmpf oge, %98, %101 : vector<128x128xf32>
    %cst_40 = arith.constant 0.000000e+00 : f32
    %103 = vector.broadcast %cst_40 : f32 to vector<128x128xf32>
    %104 = arith.select %102, %98, %103 : vector<128x128xi1>, vector<128x128xf32>
    %105 = arith.addf %96, %104 : vector<128x128xf32>
    %cst_41 = arith.constant -3.000000e+38 : f32
    %106 = vector.broadcast %cst_41 : f32 to vector<128x128xf32>
    %107 = arith.select %102, %106, %98 : vector<128x128xi1>, vector<128x128xf32>
    %c0_i32_42 = arith.constant 0 : i32
    %108 = tpu.memref_slice %arg10[%c0_i32_42] : memref<2x!tpu.dma_semaphore, #tpu.memory_space<semaphore_mem>> -> memref<1x!tpu.dma_semaphore, #tpu.memory_space<semaphore_mem>>
    %109 = tpu.memref_squeeze %108 : memref<1x!tpu.dma_semaphore, #tpu.memory_space<semaphore_mem>> -> memref<!tpu.dma_semaphore, #tpu.memory_space<semaphore_mem>>
    tpu.wait_dma2 semaphore(%109 : memref<!tpu.dma_semaphore, #tpu.memory_space<semaphore_mem>>) src(%arg4 : memref<128x128xbf16, #tpu.memory_space<any>>) dst(%arg8 : memref<128x128xbf16, #tpu.memory_space<vmem>>)
    %c0_43 = arith.constant 0 : index
    %c0_44 = arith.constant 0 : index
    %110 = vector.load %arg8[%c0_43, %c0_44] : memref<128x128xbf16, #tpu.memory_space<vmem>>, vector<128x128xbf16>
    %111 = arith.extf %110 : vector<128x128xbf16> to vector<128x128xf32>
    %112 = vector.broadcast %6 : f32 to vector<128x128xf32>
    %113 = arith.mulf %112, %111 : vector<128x128xf32>
    %114 = vector.broadcast %8 : f32 to vector<128x128xf32>
    %115 = arith.mulf %114, %105 : vector<128x128xf32>
    %116 = arith.addf %113, %115 : vector<128x128xf32>
    %117 = arith.mulf %17, %17 : vector<128x128xf32>
    %cst_45 = arith.constant dense<0.000000e+00> : vector<128xf32>
    %118 = vector.multi_reduction <add>, %117, %cst_45 [1] : vector<128x128xf32> to vector<128xf32>
    %119 = vector.shape_cast %118 : vector<128xf32> to vector<128x1xf32>
    %cst_46 = arith.constant 1.000000e-24 : f32
    %120 = vector.broadcast %cst_46 : f32 to vector<128x1xf32>
    %121 = arith.maximumf %119, %120 : vector<128x1xf32>
    %122 = math.rsqrt %121 : vector<128x1xf32>
    %123 = vector.broadcast %122 : vector<128x1xf32> to vector<128x128xf32>
    %124 = arith.mulf %17, %123 : vector<128x128xf32>
    %cst_47 = arith.constant dense<0.000000e+00> : vector<128x128xf32>
    %125 = tpu.matmul %124, %124, %cst_47 {dimension_numbers = #tpu.dot_dimension_numbers<[1], [1], [0], [0], [0, 0, 1, 0], [], []>} : vector<128x128xf32>, vector<128x128xf32>, vector<128x128xf32> -> vector<128x128xf32>
    %126 = vector.broadcast %23 : vector<1x128xf32> to vector<128x128xf32>
    %127 = arith.addf %125, %126 : vector<128x128xf32>
    %cst_48 = arith.constant 0.000000e+00 : f32
    %128 = vector.broadcast %cst_48 : f32 to vector<128x128xf32>
    %c0_i32_49 = arith.constant 0 : i32
    %cst_50 = arith.constant dense<0xFF800000> : vector<128xf32>
    %129 = vector.multi_reduction <maximumf>, %127, %cst_50 [1] : vector<128x128xf32> to vector<128xf32>
    %130 = vector.shape_cast %129 : vector<128xf32> to vector<128x1xf32>
    %131 = vector.broadcast %130 : vector<128x1xf32> to vector<128x128xf32>
    %132 = arith.cmpf oge, %127, %131 : vector<128x128xf32>
    %cst_51 = arith.constant 0.000000e+00 : f32
    %133 = vector.broadcast %cst_51 : f32 to vector<128x128xf32>
    %134 = arith.select %132, %127, %133 : vector<128x128xi1>, vector<128x128xf32>
    %135 = arith.addf %128, %134 : vector<128x128xf32>
    %cst_52 = arith.constant -3.000000e+38 : f32
    %136 = vector.broadcast %cst_52 : f32 to vector<128x128xf32>
    %137 = arith.select %132, %136, %127 : vector<128x128xi1>, vector<128x128xf32>
    %c1_i32_53 = arith.constant 1 : i32
    %cst_54 = arith.constant dense<0xFF800000> : vector<128xf32>
    %138 = vector.multi_reduction <maximumf>, %137, %cst_54 [1] : vector<128x128xf32> to vector<128xf32>
    %139 = vector.shape_cast %138 : vector<128xf32> to vector<128x1xf32>
    %140 = vector.broadcast %139 : vector<128x1xf32> to vector<128x128xf32>
    %141 = arith.cmpf oge, %137, %140 : vector<128x128xf32>
    %cst_55 = arith.constant 0.000000e+00 : f32
    %142 = vector.broadcast %cst_55 : f32 to vector<128x128xf32>
    %143 = arith.select %141, %137, %142 : vector<128x128xi1>, vector<128x128xf32>
    %144 = arith.addf %135, %143 : vector<128x128xf32>
    %cst_56 = arith.constant -3.000000e+38 : f32
    %145 = vector.broadcast %cst_56 : f32 to vector<128x128xf32>
    %146 = arith.select %141, %145, %137 : vector<128x128xi1>, vector<128x128xf32>
    %c2_i32_57 = arith.constant 2 : i32
    %cst_58 = arith.constant dense<0xFF800000> : vector<128xf32>
    %147 = vector.multi_reduction <maximumf>, %146, %cst_58 [1] : vector<128x128xf32> to vector<128xf32>
    %148 = vector.shape_cast %147 : vector<128xf32> to vector<128x1xf32>
    %149 = vector.broadcast %148 : vector<128x1xf32> to vector<128x128xf32>
    %150 = arith.cmpf oge, %146, %149 : vector<128x128xf32>
    %cst_59 = arith.constant 0.000000e+00 : f32
    %151 = vector.broadcast %cst_59 : f32 to vector<128x128xf32>
    %152 = arith.select %150, %146, %151 : vector<128x128xi1>, vector<128x128xf32>
    %153 = arith.addf %144, %152 : vector<128x128xf32>
    %cst_60 = arith.constant -3.000000e+38 : f32
    %154 = vector.broadcast %cst_60 : f32 to vector<128x128xf32>
    %155 = arith.select %150, %154, %146 : vector<128x128xi1>, vector<128x128xf32>
    %c3_i32_61 = arith.constant 3 : i32
    %cst_62 = arith.constant dense<0xFF800000> : vector<128xf32>
    %156 = vector.multi_reduction <maximumf>, %155, %cst_62 [1] : vector<128x128xf32> to vector<128xf32>
    %157 = vector.shape_cast %156 : vector<128xf32> to vector<128x1xf32>
    %158 = vector.broadcast %157 : vector<128x1xf32> to vector<128x128xf32>
    %159 = arith.cmpf oge, %155, %158 : vector<128x128xf32>
    %cst_63 = arith.constant 0.000000e+00 : f32
    %160 = vector.broadcast %cst_63 : f32 to vector<128x128xf32>
    %161 = arith.select %159, %155, %160 : vector<128x128xi1>, vector<128x128xf32>
    %162 = arith.addf %153, %161 : vector<128x128xf32>
    %cst_64 = arith.constant -3.000000e+38 : f32
    %163 = vector.broadcast %cst_64 : f32 to vector<128x128xf32>
    %164 = arith.select %159, %163, %155 : vector<128x128xi1>, vector<128x128xf32>
    %c4_i32_65 = arith.constant 4 : i32
    %cst_66 = arith.constant dense<0xFF800000> : vector<128xf32>
    %165 = vector.multi_reduction <maximumf>, %164, %cst_66 [1] : vector<128x128xf32> to vector<128xf32>
    %166 = vector.shape_cast %165 : vector<128xf32> to vector<128x1xf32>
    %167 = vector.broadcast %166 : vector<128x1xf32> to vector<128x128xf32>
    %168 = arith.cmpf oge, %164, %167 : vector<128x128xf32>
    %cst_67 = arith.constant 0.000000e+00 : f32
    %169 = vector.broadcast %cst_67 : f32 to vector<128x128xf32>
    %170 = arith.select %168, %164, %169 : vector<128x128xi1>, vector<128x128xf32>
    %171 = arith.addf %162, %170 : vector<128x128xf32>
    %cst_68 = arith.constant -3.000000e+38 : f32
    %172 = vector.broadcast %cst_68 : f32 to vector<128x128xf32>
    %173 = arith.select %168, %172, %164 : vector<128x128xi1>, vector<128x128xf32>
    %c5_i32_69 = arith.constant 5 : i32
    %cst_70 = arith.constant dense<0xFF800000> : vector<128xf32>
    %174 = vector.multi_reduction <maximumf>, %173, %cst_70 [1] : vector<128x128xf32> to vector<128xf32>
    %175 = vector.shape_cast %174 : vector<128xf32> to vector<128x1xf32>
    %176 = vector.broadcast %175 : vector<128x1xf32> to vector<128x128xf32>
    %177 = arith.cmpf oge, %173, %176 : vector<128x128xf32>
    %cst_71 = arith.constant 0.000000e+00 : f32
    %178 = vector.broadcast %cst_71 : f32 to vector<128x128xf32>
    %179 = arith.select %177, %173, %178 : vector<128x128xi1>, vector<128x128xf32>
    %180 = arith.addf %171, %179 : vector<128x128xf32>
    %cst_72 = arith.constant -3.000000e+38 : f32
    %181 = vector.broadcast %cst_72 : f32 to vector<128x128xf32>
    %182 = arith.select %177, %181, %173 : vector<128x128xi1>, vector<128x128xf32>
    %c6_i32_73 = arith.constant 6 : i32
    %cst_74 = arith.constant dense<0xFF800000> : vector<128xf32>
    %183 = vector.multi_reduction <maximumf>, %182, %cst_74 [1] : vector<128x128xf32> to vector<128xf32>
    %184 = vector.shape_cast %183 : vector<128xf32> to vector<128x1xf32>
    %185 = vector.broadcast %184 : vector<128x1xf32> to vector<128x128xf32>
    %186 = arith.cmpf oge, %182, %185 : vector<128x128xf32>
    %cst_75 = arith.constant 0.000000e+00 : f32
    %187 = vector.broadcast %cst_75 : f32 to vector<128x128xf32>
    %188 = arith.select %186, %182, %187 : vector<128x128xi1>, vector<128x128xf32>
    %189 = arith.addf %180, %188 : vector<128x128xf32>
    %cst_76 = arith.constant -3.000000e+38 : f32
    %190 = vector.broadcast %cst_76 : f32 to vector<128x128xf32>
    %191 = arith.select %186, %190, %182 : vector<128x128xi1>, vector<128x128xf32>
    %c7_i32_77 = arith.constant 7 : i32
    %cst_78 = arith.constant dense<0xFF800000> : vector<128xf32>
    %192 = vector.multi_reduction <maximumf>, %191, %cst_78 [1] : vector<128x128xf32> to vector<128xf32>
    %193 = vector.shape_cast %192 : vector<128xf32> to vector<128x1xf32>
    %194 = vector.broadcast %193 : vector<128x1xf32> to vector<128x128xf32>
    %195 = arith.cmpf oge, %191, %194 : vector<128x128xf32>
    %cst_79 = arith.constant 0.000000e+00 : f32
    %196 = vector.broadcast %cst_79 : f32 to vector<128x128xf32>
    %197 = arith.select %195, %191, %196 : vector<128x128xi1>, vector<128x128xf32>
    %198 = arith.addf %189, %197 : vector<128x128xf32>
    %cst_80 = arith.constant -3.000000e+38 : f32
    %199 = vector.broadcast %cst_80 : f32 to vector<128x128xf32>
    %200 = arith.select %195, %199, %191 : vector<128x128xi1>, vector<128x128xf32>
    %c1_i32_81 = arith.constant 1 : i32
    %201 = tpu.memref_slice %arg10[%c1_i32_81] : memref<2x!tpu.dma_semaphore, #tpu.memory_space<semaphore_mem>> -> memref<1x!tpu.dma_semaphore, #tpu.memory_space<semaphore_mem>>
    %202 = tpu.memref_squeeze %201 : memref<1x!tpu.dma_semaphore, #tpu.memory_space<semaphore_mem>> -> memref<!tpu.dma_semaphore, #tpu.memory_space<semaphore_mem>>
    tpu.wait_dma2 semaphore(%202 : memref<!tpu.dma_semaphore, #tpu.memory_space<semaphore_mem>>) src(%arg5 : memref<128x128xbf16, #tpu.memory_space<any>>) dst(%arg9 : memref<128x128xbf16, #tpu.memory_space<vmem>>)
    %c0_82 = arith.constant 0 : index
    %c0_83 = arith.constant 0 : index
    %203 = vector.load %arg9[%c0_82, %c0_83] : memref<128x128xbf16, #tpu.memory_space<vmem>>, vector<128x128xbf16>
    %204 = arith.extf %203 : vector<128x128xbf16> to vector<128x128xf32>
    %205 = vector.broadcast %7 : f32 to vector<128x128xf32>
    %206 = arith.mulf %205, %204 : vector<128x128xf32>
    %207 = arith.addf %116, %206 : vector<128x128xf32>
    %208 = vector.broadcast %9 : f32 to vector<128x128xf32>
    %209 = arith.mulf %208, %198 : vector<128x128xf32>
    %210 = arith.addf %207, %209 : vector<128x128xf32>
    %211 = arith.truncf %210 : vector<128x128xf32> to vector<128x128xbf16>
    %c0_84 = arith.constant 0 : index
    %c0_85 = arith.constant 0 : index
    %212 = vector.load %arg6[%c0_84, %c0_85] : memref<128x128xf32, #tpu.memory_space<vmem>>, vector<128x128xf32>
    %213 = arith.truncf %212 : vector<128x128xf32> to vector<128x128xbf16>
    %cst_86 = arith.constant dense<0.000000e+00> : vector<128x128xf32>
    %214 = tpu.matmul %211, %213, %cst_86 {dimension_numbers = #tpu.dot_dimension_numbers<[1], [0], [0], [1], [0, 0, 1, 1], [], []>} : vector<128x128xbf16>, vector<128x128xbf16>, vector<128x128xf32> -> vector<128x128xf32>
    %215 = arith.truncf %214 : vector<128x128xf32> to vector<128x128xbf16>
    %cst_87 = arith.constant dense<0.000000e+00> : vector<128x128xf32>
    %216 = tpu.matmul %211, %215, %cst_87 {dimension_numbers = #tpu.dot_dimension_numbers<[1], [0], [0], [1], [0, 0, 1, 1], [], []>} : vector<128x128xbf16>, vector<128x128xbf16>, vector<128x128xf32> -> vector<128x128xf32>
    %c0_88 = arith.constant 0 : index
    %c0_89 = arith.constant 0 : index
    %217 = vector.load %arg7[%c0_88, %c0_89] : memref<128x128xf32, #tpu.memory_space<vmem>>, vector<128x128xf32>
    tpu.vector_store %arg7[%c0_88, %c0_89], %216 {strides = array<i32>} : memref<128x128xf32, #tpu.memory_space<vmem>>, vector<128x128xf32>,
    return
  }
}

</mosaic_0001>

<bundles_post_ra>
// kernel: tpu_custom_call.1
= control target key start
LH: loop header
LB: loop body
LE: loop exit
PB: predicated region body
PF: predicated region fallthrough
CT: control target
= control target key end

     0   :  { %12 = vsyncpa [#allocation8], 0  ;;  %s6411_s0 = inlined_call_operand.hbm [shape: f32[2], index: 0, kind: input, shape index: {}]   ;;  %s6412_s1 = inlined_call_operand.hbm [shape: f32[128,128], index: 1, kind: input, shape index: {}]   ;;  %s6413_s2 = inlined_call_operand.hbm [shape: f32[128,256], index: 2, kind: input, shape index: {}]   ;;  %s6414_s3 = inlined_call_operand.vmem [shape: f32[1,256], index: 3, kind: input, shape index: {}]   ;;  %s6415_s4 = inlined_call_operand.hbm [shape: bf16[128,128], index: 4, kind: input, shape index: {}]   ;;  %s6416_s5 = inlined_call_operand.hbm [shape: bf16[128,128], index: 5, kind: input, shape index: {}]   ;;  %s6417_s6 = inlined_call_operand.hbm [shape: f32[128,128], index: 6, kind: input, shape index: {}]   ;;  %s6418_s7 = inlined_call_operand.hbm [shape: f32[128,128], index: 7, kind: output, shape index: {}]  }
   0x1   :  { %13 = vsyncpa [#allocation6], 0 }
   0x2   :  { %14 = vsyncpa [#allocation11], 0 }
   0x3   :  { %15 = vsyncpa [#allocation7], 0  ;;  %s3386_s24 = smov [#allocation10]   ;;  %s3232_s28 = scalar_lea.hbm %s6413_s2, 4096 }
   0x4   :  { %s41_s25 = sshll.u32 %s3386_s24, 4  ;;  %p3233_p0 = scmp.ne.s32.totalorder %s6413_s2, %s3232_s28  ;;  %s42_s25 = int_to_ptr.vmem [resolvable:$true] %s41_s25 }
   0x5   :  { %p3236_p1 = scmp.lt.u32.totalorder %s3232_s28, %s6413_s2 }
   0x7   :  { %p3238_p2 = pnand %p3236_p1, %p3233_p0 }
   0x9   :  { %3241 = shalt.err (!%p3238_p2)
}
   0xa   :  { %s3242_s10 = scalar_lea.vmem %s42_s25, 4096  ;;  %p3247_p4 = scmp.lt.s32.totalorder %s42_s25, %s42_s25 }
   0xb   :  { %p3243_p3 = scmp.ne.s32.totalorder %s42_s25, %s3242_s10  ;;  %p3248_p5 = scmp.lt.s32.totalorder %s3242_s10, %s3242_s10 }
   0xd   :  { %p3249_p6 = por %p3248_p5, %p3247_p4 }
   0xf   :  { %p3250_p7 = pnand %p3249_p6, %p3243_p3 }
  0x11   :  { %3253 = shalt.err (!%p3250_p7)
}
  0x12   :  { %s3387_s11 = smov 256   ;;  %s3388_s12 = smov 16  }
  0x13   :  { %47 = dma.hbm_to_vmem [thread:$0]  %s6413_s2, 4096, %s42_s25, [#allocation11], %s3387_s11, %s3387_s11, %s3388_s12  }
  0x14   :  { %s3254_s17 = scalar_lea.hbm %s6411_s0, 16 }
  0x15   :  { %p3255_p8 = scmp.ne.s32.totalorder %s6411_s0, %s3254_s17  ;;  %p3258_p9 = scmp.lt.u32.totalorder %s3254_s17, %s6411_s0 }
  0x17   :  { %p3260_p10 = pnand %p3258_p9, %p3255_p8 }
  0x19   :  { %3263 = shalt.err (!%p3260_p10)
}
  0x1a   :  { %s3389_s22 = smov [#allocation5]   ;;  %s3390_s2 = smov [#allocation9]  }
  0x1b   :  { %23 = dma.hbm_to_smem %s6411_s0, 16, %s3389_s22, [#allocation8]  }
  0x1c   :  { %s29_s25 = sshll.u32 %s3390_s2, 4  ;;  %s3264_s28 = scalar_lea.hbm %s6412_s1, 2048  ;;  %s30_s25 = int_to_ptr.vmem [resolvable:$true] %s29_s25 }
  0x1d   :  { %p3265_p11 = scmp.ne.s32.totalorder %s6412_s1, %s3264_s28  ;;  %p3268_p12 = scmp.lt.u32.totalorder %s3264_s28, %s6412_s1 }
  0x1f   :  { %p3270_p13 = pnand %p3268_p12, %p3265_p11 }
  0x21   :  { %3273 = shalt.err (!%p3270_p13)
}
  0x22   :  { %s3274_s10 = scalar_lea.vmem %s30_s25, 2048  ;;  %p3279_p1 = scmp.lt.s32.totalorder %s30_s25, %s30_s25 }
  0x23   :  { %p3275_p0 = scmp.ne.s32.totalorder %s30_s25, %s3274_s10  ;;  %p3280_p2 = scmp.lt.s32.totalorder %s3274_s10, %s3274_s10 }
  0x25   :  { %p3281_p3 = por %p3280_p2, %p3279_p1 }
  0x27   :  { %p3282_p4 = pnand %p3281_p3, %p3275_p0 }
  0x29   :  { %3285 = shalt.err (!%p3282_p4)
}
  0x2a   :  { %s3391_s0 = smov 128   ;;  %s3392_s11 = smov 8  }
  0x2b   :  { %35 = dma.hbm_to_vmem [thread:$0]  %s6412_s1, 2048, %s30_s25, [#allocation6], %s3391_s0, %s3391_s0, %s3392_s11  }
  0x2c   :  { %s3393_s14 = smov [#allocation12]   ;;  %s3286_s18 = scalar_lea.hbm %s6417_s6, 2048 }
  0x2d   :  { %s55_s15 = sshll.u32 %s3393_s14, 4  ;;  %p3287_p5 = scmp.ne.s32.totalorder %s6417_s6, %s3286_s18  ;;  %s56_s15 = int_to_ptr.vmem [resolvable:$true] %s55_s15 }
  0x2e   :  { %p3290_p6 = scmp.lt.u32.totalorder %s3286_s18, %s6417_s6 }
  0x30   :  { %p3292_p7 = pnand %p3290_p6, %p3287_p5 }
  0x32   :  { %3295 = shalt.err (!%p3292_p7)
}
  0x33   :  { %s3296_s23 = scalar_lea.vmem %s56_s15, 2048  ;;  %p3301_p9 = scmp.lt.s32.totalorder %s56_s15, %s56_s15 }
  0x34   :  { %p3297_p8 = scmp.ne.s32.totalorder %s56_s15, %s3296_s23  ;;  %p3302_p10 = scmp.lt.s32.totalorder %s3296_s23, %s3296_s23 }
  0x36   :  { %p3303_p11 = por %p3302_p10, %p3301_p9 }
  0x38   :  { %p3304_p12 = pnand %p3303_p11, %p3297_p8 }
  0x3a   :  { %3307 = shalt.err (!%p3304_p12)
}
  0x3b   :  { %61 = dma.hbm_to_vmem [thread:$0]  %s6417_s6, 2048, %s56_s15, [#allocation11], %s3391_s0, %s3391_s0, %s3392_s11  }
  0x3c   :  { %3374 = dma.done.wait [#allocation8], 16  }
  0x3d   :  { %3375 = vsyncadd [#allocation8], 4294967280 }
  0x3e   :  { %3376 = dma.done.wait [#allocation6], 2048  }
  0x3f   :  { %3377 = vsyncadd [#allocation6], 4294965248 }
  0x40   :  { %3378 = dma.done.wait [#allocation11], 6144  }
  0x41   :  { %3379 = vsyncadd [#allocation11], 4294961152 }
  0x42   :  { %74 = sfence }
  0x43   :  { %s3493_s2 = sld [smem:[#allocation5]]  ;;  %s3495_s25 = sld [smem:[#allocation5 + $0x1]]  ;;  %v122_v0 = vld [vmem:[#allocation10 + $0x8] sm:$0xff]  ;;  %v124_v1 = vld [vmem:[#allocation10 + $0x18] sm:$0xff]  ;;  %v121_v3 = vld [vmem:[#allocation10] sm:$0xff]  ;;  %v3394_v10 = vmov 0.0  }
  0x44   :  { %v3043_v2 = vpack.c.bf16 %v124_v1, %v122_v0  ;;  %v123_v4 = vld [vmem:[#allocation10 + $0x10] sm:$0xff]  ;;  %v126_v5 = vld [vmem:[#allocation10 + $0x28] sm:$0xff]  ;;  %v128_v7 = vld [vmem:[#allocation10 + $0x38] sm:$0xff]  ;;  %229 = vmatprep.mubr.f32.mxu0 %v3394_v10  ;;  %v155_v1 = vlaneseq  ;;  %s3397_s9 = smov [#allocation3]   ;;  %s3308_s14 = scalar_lea.hbm %s6415_s4, 1024 }
  0x45   :  { %v3045_v6 = vpack.c.bf16 %v123_v4, %v121_v3  ;;  %v125_v8 = vld [vmem:[#allocation10 + $0x20] sm:$0xff]  ;;  %v127_v9 = vld [vmem:[#allocation10 + $0x30] sm:$0xff]  ;;  %v3047_v11 = vpack.c.bf16 %v128_v7, %v126_v5  ;;  %v130_v12 = vld [vmem:[#allocation10 + $0x48] sm:$0xff]  ;;  %s95_s10 = sshll.u32 %s3397_s9, 4  ;;  %p3309_p13 = scmp.ne.s32.totalorder %s6415_s4, %s3308_s14  ;;  %s96_s10 = int_to_ptr.vmem [resolvable:$true] %s95_s10 }
  0x46   :  { %3044 = vmatprep.subr.bf16.mxu0 %v3043_v2  ;;  %v132_v13 = vld [vmem:[#allocation10 + $0x58] sm:$0xff]  ;;  %v3049_v14 = vpack.c.bf16 %v127_v9, %v125_v8  ;;  %v129_v16 = vld [vmem:[#allocation10 + $0x40] sm:$0xff]  ;;  %v131_v17 = vld [vmem:[#allocation10 + $0x50] sm:$0xff]  ;;  %v156_v2 = vshrl.u32 %v155_v1, 7  ;;  %p3312_p0 = scmp.lt.u32.totalorder %s3308_s14, %s6415_s4 }
  0x47   :  { %3046 = vmatpush1.bf16.msra.mxu0 %v3045_v6  ;;  %v3051_v15 = vpack.c.bf16 %v132_v13, %v130_v12  ;;  %v134_v18 = vld [vmem:[#allocation10 + $0x68] sm:$0xff]  ;;  %v136_v19 = vld [vmem:[#allocation10 + $0x78] sm:$0xff]  ;;  %v3053_v20 = vpack.c.bf16 %v131_v17, %v129_v16  ;;  %v133_v22 = vld [vmem:[#allocation10 + $0x60] sm:$0xff] }
  0x48   :  { %3048 = vmatprep.subr.bf16.mxu0 %v3047_v11  ;;  %v3055_v21 = vpack.c.bf16 %v136_v19, %v134_v18  ;;  %v135_v23 = vld [vmem:[#allocation10 + $0x70] sm:$0xff]  ;;  %v138_v24 = vld [vmem:[#allocation10 + $0x88] sm:$0xff]  ;;  %v140_v25 = vld [vmem:[#allocation10 + $0x98] sm:$0xff]  ;;  %v157_v3 = vsub.s32 0, %v156_v2  ;;  %v161_v5 = vsub.s32 1, %v156_v2  ;;  %p3314_p1 = pnand %p3312_p0, %p3309_p13 }
  0x49   :  { %s101_s6 = smul.f32 0.5, %s3493_s2  ;;  %v3057_v26 = vpack.c.bf16 %v135_v23, %v133_v22  ;;  %v3059_v27 = vpack.c.bf16 %v140_v25, %v138_v24  ;;  %v137_v28 = vld [vmem:[#allocation10 + $0x80] sm:$0xff]  ;;  %v139_v29 = vld [vmem:[#allocation10 + $0x90] sm:$0xff]  ;;  %v142_v30 = vld [vmem:[#allocation10 + $0xa8] sm:$0xff] }
  0x4a   :  { %s102_s26 = smul.f32 0.5, %s3495_s25  ;;  %v144_v31 = vld [vmem:[#allocation10 + $0xb8] sm:$0xff]  ;;  %v3061_v32 = vpack.c.bf16 %v139_v29, %v137_v28  ;;  %v141_v34 = vld [vmem:[#allocation10 + $0xa0] sm:$0xff]  ;;  %v143_v35 = vld [vmem:[#allocation10 + $0xb0] sm:$0xff] }
  0x4b   :  { %s103_s27 = smul.f32 0.0625, %s3493_s2  ;;  %3050 = vmatpush1.bf16.msra.mxu0 %v3049_v14  ;;  %v3063_v33 = vpack.c.bf16 %v144_v31, %v142_v30  ;;  %v146_v36 = vld [vmem:[#allocation10 + $0xc8] sm:$0xff]  ;;  %v148_v37 = vld [vmem:[#allocation10 + $0xd8] sm:$0xff]  ;;  %v3065_v38 = vpack.c.bf16 %v143_v35, %v141_v34  ;;  %v145_v40 = vld [vmem:[#allocation10 + $0xc0] sm:$0xff] }
  0x4c   :  { %s104_s28 = smul.f32 0.0625, %s3495_s25  ;;  %3052 = vmatprep.subr.bf16.mxu0 %v3051_v15  ;;  %v3067_v39 = vpack.c.bf16 %v148_v37, %v146_v36  ;;  %v147_v41 = vld [vmem:[#allocation10 + $0xd0] sm:$0xff]  ;;  %v150_v42 = vld [vmem:[#allocation10 + $0xe8] sm:$0xff]  ;;  %v152_v43 = vld [vmem:[#allocation10 + $0xf8] sm:$0xff] }
  0x4d   :  { %v3069_v44 = vpack.c.bf16 %v147_v41, %v145_v40  ;;  %v3071_v45 = vpack.c.bf16 %v152_v43, %v150_v42  ;;  %v149_v46 = vld [vmem:[#allocation10 + $0xe0] sm:$0xff]  ;;  %v151_v47 = vld [vmem:[#allocation10 + $0xf0] sm:$0xff]  ;;  %v106_v50 = vld [vmem:[#allocation9 + $0x8] sm:$0xff] }
  0x4e   :  { %v3073_v48 = vpack.c.bf16 %v151_v47, %v149_v46  ;;  %v105_v49 = vld [vmem:[#allocation9] sm:$0xff]  ;;  %v107_v51 = vld [vmem:[#allocation9 + $0x10] sm:$0xff]  ;;  %v108_v52 = vld [vmem:[#allocation9 + $0x18] sm:$0xff] }
  0x4f   :  { %3054 = vmatpush1.bf16.msra.mxu0 %v3053_v20  ;;  %v109_v53 = vld [vmem:[#allocation9 + $0x20] sm:$0xff]  ;;  %v110_v54 = vld [vmem:[#allocation9 + $0x28] sm:$0xff]  ;;  %v111_v55 = vld [vmem:[#allocation9 + $0x30] sm:$0xff] }
  0x50   :  { %3056 = vmatprep.subr.bf16.mxu0 %v3055_v21  ;;  %v112_v56 = vld [vmem:[#allocation9 + $0x38] sm:$0xff]  ;;  %v113_v57 = vld [vmem:[#allocation9 + $0x40] sm:$0xff]  ;;  %v114_v58 = vld [vmem:[#allocation9 + $0x48] sm:$0xff] }
  0x51   :  { %v115_v59 = vld [vmem:[#allocation9 + $0x50] sm:$0xff]  ;;  %v116_v60 = vld [vmem:[#allocation9 + $0x58] sm:$0xff]  ;;  %v117_v61 = vld [vmem:[#allocation9 + $0x60] sm:$0xff] }
  0x52   :  { %v118_v62 = vld [vmem:[#allocation9 + $0x68] sm:$0xff]  ;;  %v119_v63 = vld [vmem:[#allocation9 + $0x70] sm:$0xff]  ;;  %v120_v0 = vld [vmem:[#allocation9 + $0x78] sm:$0xff] }
  0x53   :  { %3058 = vmatpush1.bf16.msra.mxu0 %v3057_v26  ;;  %v153_v4 = vld [vmem:[%s6414_s3] sm:$0x3]  ;;  %s3396_s3 = smov [#allocation2]  }
  0x54   :  { %3060 = vmatprep.subr.bf16.mxu0 %v3059_v27  ;;  %v3521_v6 = vrot.slane %v153_v4, %v157_v3  ;;  %v3523_v7 = vrot.slane %v153_v4, %v161_v5  ;;  %s83_s8 = sshll.u32 %s3396_s3, 4  ;;  %s84_s8 = int_to_ptr.vmem [resolvable:$true] %s83_s8 }
  0x57   :  { %3062 = vmatpush1.bf16.msra.mxu0 %v3061_v32 }
  0x58   :  { %3064 = vmatprep.subr.bf16.mxu0 %v3063_v33 }
  0x5b   :  { %3066 = vmatpush1.bf16.msra.mxu0 %v3065_v38 }
  0x5c   :  { %3068 = vmatprep.subr.bf16.mxu0 %v3067_v39 }
  0x5f   :  { %3070 = vmatpush1.bf16.msra.mxu0 %v3069_v44 }
  0x60   :  { %3072 = vmatprep.subr.bf16.mxu0 %v3071_v45 }
  0x63   :  { %3074 = vmatpush1.bf16.msra.mxu0 %v3073_v48 }
  0x66   :  { %230 = vmatmul.mubr.f32.vlgmr.msra.gmra.mrb[0].mxu0 %v105_v49 }
  0x67   :  { %235 = vmatprep.mubr.f32.mxu0 %v3394_v10 }
  0x6a   :  { %236 = vmatmul.mubr.f32.gmra.mrb[2].mxu0 %v106_v50 }
  0x6b   :  { %241 = vmatprep.mubr.f32.mxu0 %v3394_v10 }
  0x6e   :  { %242 = vmatmul.mubr.f32.gmra.mrb[4].mxu0 %v107_v51 }
  0x6f   :  { %247 = vmatprep.mubr.f32.mxu0 %v3394_v10 }
  0x72   :  { %248 = vmatmul.mubr.f32.gmra.mrb[6].mxu0 %v108_v52 }
  0x73   :  { %253 = vmatprep.mubr.f32.mxu0 %v3394_v10 }
  0x76   :  { %254 = vmatmul.mubr.f32.gmra.mrb[8].mxu0 %v109_v53 }
  0x77   :  { %259 = vmatprep.mubr.f32.mxu0 %v3394_v10 }
  0x7a   :  { %260 = vmatmul.mubr.f32.gmra.mrb[10].mxu0 %v110_v54 }
  0x7b   :  { %265 = vmatprep.mubr.f32.mxu0 %v3394_v10 }
  0x7e   :  { %266 = vmatmul.mubr.f32.gmra.mrb[12].mxu0 %v111_v55 }
  0x7f   :  { %271 = vmatprep.mubr.f32.mxu0 %v3394_v10 }
  0x82   :  { %272 = vmatmul.mubr.f32.gmra.mrb[14].mxu0 %v112_v56 }
  0x83   :  { %277 = vmatprep.mubr.f32.mxu0 %v3394_v10 }
  0x86   :  { %278 = vmatmul.mubr.f32.gmra.mrb[16].mxu0 %v113_v57 }
  0x87   :  { %283 = vmatprep.mubr.f32.mxu0 %v3394_v10 }
  0x8a   :  { %284 = vmatmul.mubr.f32.gmra.mrb[18].mxu0 %v114_v58 }
  0x8b   :  { %289 = vmatprep.mubr.f32.mxu0 %v3394_v10 }
  0x8e   :  { %290 = vmatmul.mubr.f32.gmra.mrb[20].mxu0 %v115_v59 }
  0x8f   :  { %295 = vmatprep.mubr.f32.mxu0 %v3394_v10 }
  0x92   :  { %296 = vmatmul.mubr.f32.gmra.mrb[22].mxu0 %v116_v60 }
  0x93   :  { %301 = vmatprep.mubr.f32.mxu0 %v3394_v10 }
  0x96   :  { %302 = vmatmul.mubr.f32.gmra.mrb[24].mxu0 %v117_v61 }
  0x97   :  { %307 = vmatprep.mubr.f32.mxu0 %v3394_v10 }
  0x9a   :  { %308 = vmatmul.mubr.f32.gmra.mrb[26].mxu0 %v118_v62 }
  0x9b   :  { %313 = vmatprep.mubr.f32.mxu0 %v3394_v10 }
  0x9e   :  { %314 = vmatmul.mubr.f32.gmra.mrb[28].mxu0 %v119_v63 }
  0x9f   :  { %319 = vmatprep.mubr.f32.mxu0 %v3394_v10 }
  0xa2   :  { %320 = vmatmul.mubr.f32.gmra.mrb[30].mxu0 %v120_v0 }
 0x139   :  { %v231_v8 = vpop.f32.mrb[0].mxu0 }
 0x13a   :  { %v3526_v9 = vadd.f32 %v231_v8, %v3521_v6  ;;  %v233_v10 = vpop.f32.mrb[1].mxu0 }
 0x13b   :  { %v3529_v11 = vadd.f32 %v233_v10, %v3523_v7 }
 0x13c   :  { %v330_v12 = vmul.f32 %v3526_v9, %v3526_v9 }
 0x13d   :  { %v237_v13 = vpop.f32.mrb[2].mxu0 }
 0x13e   :  { %v3534_v14 = vadd.f32 %v237_v13, %v3521_v6  ;;  %v239_v15 = vpop.f32.mrb[3].mxu0  ;;  %346 = vadd.xlane.f32.xlu0 %v330_v12 }
 0x13f   :  { %v3537_v16 = vadd.f32 %v239_v15, %v3523_v7 }
 0x140   :  { %v331_v17 = vmul.f32 %v3534_v14, %v3534_v14 }
 0x141   :  { %v243_v18 = vpop.f32.mrb[4].mxu0 }
 0x142   :  { %v3542_v19 = vadd.f32 %v243_v18, %v3521_v6  ;;  %v245_v20 = vpop.f32.mrb[5].mxu0  ;;  %348 = vadd.xlane.f32.xlu0 %v331_v17 }
 0x143   :  { %v3545_v21 = vadd.f32 %v245_v20, %v3523_v7 }
 0x144   :  { %v332_v22 = vmul.f32 %v3542_v19, %v3542_v19 }
 0x145   :  { %v249_v23 = vpop.f32.mrb[6].mxu0 }
 0x146   :  { %v3550_v24 = vadd.f32 %v249_v23, %v3521_v6  ;;  %v251_v25 = vpop.f32.mrb[7].mxu0  ;;  %350 = vadd.xlane.f32.xlu1 %v332_v22 }
 0x147   :  { %v3553_v26 = vadd.f32 %v251_v25, %v3523_v7 }
 0x148   :  { %v333_v27 = vmul.f32 %v3550_v24, %v3550_v24 }
 0x149   :  { %v255_v28 = vpop.f32.mrb[8].mxu0 }
 0x14a   :  { %v3558_v29 = vadd.f32 %v255_v28, %v3521_v6  ;;  %v257_v30 = vpop.f32.mrb[9].mxu0  ;;  %352 = vadd.xlane.f32.xlu1 %v333_v27 }
 0x14b   :  { %v3561_v31 = vadd.f32 %v257_v30, %v3523_v7 }
 0x14c   :  { %v334_v32 = vmul.f32 %v3558_v29, %v3558_v29 }
 0x14d   :  { %v261_v33 = vpop.f32.mrb[10].mxu0 }
 0x14e   :  { %v3566_v34 = vadd.f32 %v261_v33, %v3521_v6  ;;  %v263_v35 = vpop.f32.mrb[11].mxu0  ;;  %354 = vadd.xlane.f32.xlu0 %v334_v32 }
 0x14f   :  { %v3569_v36 = vadd.f32 %v263_v35, %v3523_v7 }
 0x150   :  { %v335_v37 = vmul.f32 %v3566_v34, %v3566_v34 }
 0x151   :  { %v267_v38 = vpop.f32.mrb[12].mxu0 }
 0x152   :  { %v3574_v39 = vadd.f32 %v267_v38, %v3521_v6  ;;  %v269_v40 = vpop.f32.mrb[13].mxu0  ;;  %356 = vadd.xlane.f32.xlu1 %v335_v37 }
 0x153   :  { %v3577_v41 = vadd.f32 %v269_v40, %v3523_v7 }
 0x154   :  { %v336_v42 = vmul.f32 %v3574_v39, %v3574_v39 }
 0x155   :  { %v273_v43 = vpop.f32.mrb[14].mxu0 }
 0x156   :  { %v3582_v44 = vadd.f32 %v273_v43, %v3521_v6  ;;  %v275_v45 = vpop.f32.mrb[15].mxu0  ;;  %358 = vadd.xlane.f32.xlu0 %v336_v42 }
 0x157   :  { %v3585_v46 = vadd.f32 %v275_v45, %v3523_v7 }
 0x158   :  { %v337_v47 = vmul.f32 %v3582_v44, %v3582_v44 }
 0x159   :  { %v279_v48 = vpop.f32.mrb[16].mxu0 }
 0x15a   :  { %v3590_v49 = vadd.f32 %v279_v48, %v3521_v6  ;;  %v281_v50 = vpop.f32.mrb[17].mxu0  ;;  %360 = vadd.xlane.f32.xlu1 %v337_v47 }
 0x15b   :  { %v3593_v51 = vadd.f32 %v281_v50, %v3523_v7 }
 0x15c   :  { %v338_v52 = vmul.f32 %v3590_v49, %v3590_v49 }
 0x15d   :  { %6445 = vst [vmem:[#allocation26_spill] sm:$0xff] %v3593_v51  ;;  %v285_v53 = vpop.f32.mrb[18].mxu0 }
 0x15e   :  { %v3598_v54 = vadd.f32 %v285_v53, %v3521_v6  ;;  %v287_v55 = vpop.f32.mrb[19].mxu0  ;;  %362 = vadd.xlane.f32.xlu0 %v338_v52 }
 0x15f   :  { %v3601_v56 = vadd.f32 %v287_v55, %v3523_v7 }
 0x160   :  { %v339_v57 = vmul.f32 %v3598_v54, %v3598_v54 }
 0x161   :  { %6446 = vst [vmem:[#allocation27_spill] sm:$0xff] %v3601_v56  ;;  %v291_v58 = vpop.f32.mrb[20].mxu0 }
 0x162   :  { %v3606_v59 = vadd.f32 %v291_v58, %v3521_v6  ;;  %v293_v60 = vpop.f32.mrb[21].mxu0  ;;  %364 = vadd.xlane.f32.xlu1 %v339_v57 }
 0x163   :  { %v3609_v61 = vadd.f32 %v293_v60, %v3523_v7 }
 0x164   :  { %v340_v62 = vmul.f32 %v3606_v59, %v3606_v59 }
 0x165   :  { %6447 = vst [vmem:[#allocation28_spill] sm:$0xff] %v3609_v61  ;;  %v297_v63 = vpop.f32.mrb[22].mxu0 }
 0x166   :  { %v3614_v0 = vadd.f32 %v297_v63, %v3521_v6  ;;  %v299_v2 = vpop.f32.mrb[23].mxu0  ;;  %366 = vadd.xlane.f32.xlu0 %v340_v62 }
 0x167   :  { %v3617_v3 = vadd.f32 %v299_v2, %v3523_v7 }
 0x168   :  { %v341_v4 = vmul.f32 %v3614_v0, %v3614_v0 }
 0x169   :  { %6448 = vst [vmem:[#allocation29_spill] sm:$0xff] %v3617_v3  ;;  %v303_v5 = vpop.f32.mrb[24].mxu0 }
 0x16a   :  { %v3622_v8 = vadd.f32 %v303_v5, %v3521_v6  ;;  %v305_v10 = vpop.f32.mrb[25].mxu0  ;;  %368 = vadd.xlane.f32.xlu1 %v341_v4 }
 0x16b   :  { %v3625_v12 = vadd.f32 %v305_v10, %v3523_v7 }
 0x16c   :  { %v342_v13 = vmul.f32 %v3622_v8, %v3622_v8 }
 0x16d   :  { %6449 = vst [vmem:[#allocation30_spill] sm:$0xff] %v3625_v12  ;;  %v309_v15 = vpop.f32.mrb[26].mxu0 }
 0x16e   :  { %v3630_v17 = vadd.f32 %v309_v15, %v3521_v6  ;;  %v311_v18 = vpop.f32.mrb[27].mxu0  ;;  %370 = vadd.xlane.f32.xlu0 %v342_v13 }
 0x16f   :  { %v3633_v20 = vadd.f32 %v311_v18, %v3523_v7 }
 0x170   :  { %v343_v22 = vmul.f32 %v3630_v17, %v3630_v17 }
 0x171   :  { %6450 = vst [vmem:[#allocation31_spill] sm:$0xff] %v3633_v20  ;;  %v315_v23 = vpop.f32.mrb[28].mxu0 }
 0x172   :  { %v3638_v25 = vadd.f32 %v315_v23, %v3521_v6  ;;  %v317_v27 = vpop.f32.mrb[29].mxu0  ;;  %372 = vadd.xlane.f32.xlu1 %v343_v22 }
 0x173   :  { %v3641_v28 = vadd.f32 %v317_v27, %v3523_v7 }
 0x174   :  { %v344_v30 = vmul.f32 %v3638_v25, %v3638_v25 }
 0x175   :  { %6451 = vst [vmem:[#allocation32_spill] sm:$0xff] %v3641_v28  ;;  %v321_v32 = vpop.f32.mrb[30].mxu0 }
 0x176   :  { %v3646_v33 = vadd.f32 %v321_v32, %v3521_v6  ;;  %v323_v35 = vpop.f32.mrb[31].mxu0  ;;  %374 = vadd.xlane.f32.xlu0 %v344_v30 }
 0x177   :  { %v3649_v37 = vadd.f32 %v323_v35, %v3523_v7 }
 0x178   :  { %v345_v38 = vmul.f32 %v3646_v33, %v3646_v33 }
 0x179   :  { %6452 = vst [vmem:[#allocation33_spill] sm:$0xff] %v3649_v37 }
 0x17a   :  { %376 = vadd.xlane.f32.xlu1 %v345_v38 }
 0x1cb   :  { %v347_v40 = vpop.xlane.xlu0 %346 }
 0x1cc   :  { %v378_v42 = vmax.f32 %v347_v40, 1e-24 }
 0x1ce   :  { %3168 = vrsqrt.f32 %v378_v42 }
 0x1cf   :  { %v349_v43 = vpop.xlane.xlu0 %348 }
 0x1d0   :  { %v379_v45 = vmax.f32 %v349_v43, 1e-24 }
 0x1d2   :  { %3170 = vrsqrt.f32 %v379_v45 }
 0x1d3   :  { %v351_v47 = vpop.xlane.xlu1 %350 }
 0x1d4   :  { %v380_v48 = vmax.f32 %v351_v47, 1e-24 }
 0x1d6   :  { %3172 = vrsqrt.f32 %v380_v48 }
 0x1d7   :  { %v353_v50 = vpop.xlane.xlu1 %352 }
 0x1d8   :  { %v3169_v6 = vpop.eup %3168  ;;  %v381_v52 = vmax.f32 %v353_v50, 1e-24 }
 0x1d9   :  { %v410_v53 = vmul.f32 %v3169_v6, %v3526_v9 }
 0x1da   :  { %3174 = vrsqrt.f32 %v381_v52 }
 0x1db   :  { %2899 = vmatprep.mubr.f32.mxu1 %v410_v53  ;;  %v355_v7 = vpop.xlane.xlu0 %354 }
 0x1dc   :  { %v3171_v55 = vpop.eup %3170  ;;  %v382_v57 = vmax.f32 %v355_v7, 1e-24 }
 0x1dd   :  { %v3655_v58 = vmul.f32 %v3171_v55, %v3534_v14 }
 0x1de   :  { %3176 = vrsqrt.f32 %v382_v57 }
 0x1df   :  { %v357_v60 = vpop.xlane.xlu1 %356  ;;  %v3075_v62 = vpack.c.bf16 %v3655_v58, %v410_v53 }
 0x1e0   :  { %v383_v63 = vmax.f32 %v357_v60, 1e-24  ;;  %v3173_v2 = vpop.eup %3172 }
 0x1e1   :  { %3076 = vmatprep.subr.bf16.mxu1 %v3075_v62  ;;  %v3659_v10 = vmul.f32 %v3173_v2, %v3542_v19 }
 0x1e2   :  { %3178 = vrsqrt.f32 %v383_v63  ;;  %3078 = vmatpush3.bf16.xpose.msra.mxu1 %v3075_v62 }
 0x1e3   :  { %v359_v4 = vpop.xlane.xlu0 %358 }
 0x1e4   :  { %v3175_v5 = vpop.eup %3174  ;;  %v384_v9 = vmax.f32 %v359_v4, 1e-24 }
 0x1e5   :  { %v3662_v13 = vmul.f32 %v3175_v5, %v3550_v24 }
 0x1e6   :  { %3180 = vrsqrt.f32 %v384_v9 }
 0x1e7   :  { %v361_v14 = vpop.xlane.xlu1 %360  ;;  %v3079_v15 = vpack.c.bf16 %v3662_v13, %v3659_v10 }
 0x1e8   :  { %v385_v18 = vmax.f32 %v361_v14, 1e-24  ;;  %v3177_v22 = vpop.eup %3176 }
 0x1e9   :  { %3080 = vmatprep.subr.bf16.mxu1 %v3079_v15  ;;  %v3667_v32 = vmul.f32 %v3177_v22, %v3558_v29 }
 0x1ea   :  { %3182 = vrsqrt.f32 %v385_v18  ;;  %3082 = vmatpush3.bf16.xpose.msra.mxu1 %v3079_v15 }
 0x1eb   :  { %v363_v23 = vpop.xlane.xlu0 %362 }
 0x1ec   :  { %v3179_v27 = vpop.eup %3178  ;;  %v386_v30 = vmax.f32 %v363_v23, 1e-24 }
 0x1ed   :  { %v3670_v19 = vmul.f32 %v3179_v27, %v3566_v34 }
 0x1ee   :  { %3184 = vrsqrt.f32 %v386_v30 }
 0x1ef   :  { %v365_v24 = vpop.xlane.xlu1 %364  ;;  %v3083_v35 = vpack.c.bf16 %v3670_v19, %v3667_v32 }
 0x1f0   :  { %v387_v38 = vmax.f32 %v365_v24, 1e-24  ;;  %v3181_v40 = vpop.eup %3180 }
 0x1f1   :  { %3084 = vmatprep.subr.bf16.mxu1 %v3083_v35  ;;  %v416_v47 = vmul.f32 %v3181_v40, %v3574_v39 }
 0x1f2   :  { %3186 = vrsqrt.f32 %v387_v38  ;;  %3086 = vmatpush3.bf16.xpose.msra.mxu1 %v3083_v35 }
 0x1f3   :  { %v367_v42 = vpop.xlane.xlu0 %366 }
 0x1f4   :  { %v3183_v43 = vpop.eup %3182  ;;  %v388_v45 = vmax.f32 %v367_v42, 1e-24 }
 0x1f5   :  { %v417_v29 = vmul.f32 %v3183_v43, %v3582_v44 }
 0x1f6   :  { %3188 = vrsqrt.f32 %v388_v45 }
 0x1f7   :  { %v369_v48 = vpop.xlane.xlu1 %368  ;;  %v3087_v34 = vpack.c.bf16 %v417_v29, %v416_v47 }
 0x1f8   :  { %v389_v50 = vmax.f32 %v369_v48, 1e-24  ;;  %v3185_v6 = vpop.eup %3184 }
 0x1f9   :  { %3088 = vmatprep.subr.bf16.mxu1 %v3087_v34  ;;  %v418_v55 = vmul.f32 %v3185_v6, %v3590_v49 }
 0x1fa   :  { %3190 = vrsqrt.f32 %v389_v50  ;;  %3090 = vmatpush3.bf16.xpose.msra.mxu1 %v3087_v34 }
 0x1fb   :  { %v371_v52 = vpop.xlane.xlu0 %370 }
 0x1fc   :  { %v3187_v53 = vpop.eup %3186  ;;  %v390_v7 = vmax.f32 %v371_v52, 1e-24 }
 0x1fd   :  { %v419_v57 = vmul.f32 %v3187_v53, %v3598_v54 }
 0x1fe   :  { %3192 = vrsqrt.f32 %v390_v7 }
 0x1ff   :  { %v373_v60 = vpop.xlane.xlu1 %372  ;;  %v3091_v62 = vpack.c.bf16 %v419_v57, %v418_v55 }
 0x200   :  { %v391_v39 = vmax.f32 %v373_v60, 1e-24  ;;  %v3189_v44 = vpop.eup %3188 }
 0x201   :  { %3092 = vmatprep.subr.bf16.mxu1 %v3091_v62  ;;  %v420_v5 = vmul.f32 %v3189_v44, %v3606_v59 }
 0x202   :  { %3194 = vrsqrt.f32 %v391_v39  ;;  %3094 = vmatpush3.bf16.xpose.msra.mxu1 %v3091_v62 }
 0x203   :  { %v375_v63 = vpop.xlane.xlu0 %374 }
 0x204   :  { %v3191_v2 = vpop.eup %3190  ;;  %v392_v4 = vmax.f32 %v375_v63, 1e-24 }
 0x205   :  { %v421_v9 = vmul.f32 %v3191_v2, %v3614_v0 }
 0x206   :  { %3196 = vrsqrt.f32 %v392_v4 }
 0x207   :  { %v377_v14 = vpop.xlane.xlu1 %376  ;;  %v3095_v15 = vpack.c.bf16 %v421_v9, %v420_v5 }
 0x208   :  { %v393_v49 = vmax.f32 %v377_v14, 1e-24  ;;  %v3193_v54 = vpop.eup %3192 }
 0x209   :  { %3096 = vmatprep.subr.bf16.mxu1 %v3095_v15  ;;  %v422_v22 = vmul.f32 %v3193_v54, %v3622_v8  ;;  %v327_v8 = vand.u32 127, %v155_v1 }
 0x20a   :  { %3198 = vrsqrt.f32 %v393_v49  ;;  %3098 = vmatpush3.bf16.xpose.msra.mxu1 %v3095_v15 }
 0x20b   :  { %vm328_vm0 = vcmp.lt.s32.totalorder %v327_v8, 64 }
 0x20c   :  { %v3195_v18 = vpop.eup %3194 }
 0x20d   :  { %v423_v23 = vmul.f32 %v3195_v18, %v3630_v17  ;;  %v3395_v17 = vmov -1e+30  }
 0x20f   :  { %v3099_v27 = vpack.c.bf16 %v423_v23, %v422_v22 }
 0x210   :  { %v3197_v30 = vpop.eup %3196 }
 0x211   :  { %3100 = vmatprep.subr.bf16.mxu1 %v3099_v27  ;;  %v424_v0 = vmul.f32 %v3197_v30, %v3638_v25  ;;  %v3690_v25 = vsel %vm328_vm0, 0.0, %v3395_v17 }
 0x212   :  { %3102 = vmatpush3.bf16.xpose.msra.mxu1 %v3099_v27  ;;  %6453 = vst [vmem:[#allocation34_spill] sm:$0xff] %v3690_v25 }
 0x214   :  { %v3199_v59 = vpop.eup %3198 }
 0x215   :  { %v425_v24 = vmul.f32 %v3199_v59, %v3646_v33 }
 0x217   :  { %v3103_v35 = vpack.c.bf16 %v425_v24, %v424_v0 }
 0x219   :  { %3104 = vmatprep.subr.bf16.mxu1 %v3103_v35 }
 0x21a   :  { %3106 = vmatpush3.bf16.xpose.msra.mxu1 %v3103_v35 }
 0x221   :  { %2900 = vmatmul.mubr.f32.vlgmr.msra.gmra.mrb[0].mxu1 %v3655_v58 }
 0x222   :  { %2902 = vmatprep.mubr.f32.mxu1 %v3659_v10 }
 0x225   :  { %2903 = vmatmul.mubr.f32.gmra.mrb[2].mxu1 %v3662_v13 }
 0x226   :  { %2905 = vmatprep.mubr.f32.mxu1 %v3667_v32 }
 0x229   :  { %2906 = vmatmul.mubr.f32.gmra.mrb[4].mxu1 %v3670_v19 }
 0x22a   :  { %2908 = vmatprep.mubr.f32.mxu1 %v416_v47 }
 0x22d   :  { %2909 = vmatmul.mubr.f32.gmra.mrb[6].mxu1 %v417_v29 }
 0x22e   :  { %2911 = vmatprep.mubr.f32.mxu1 %v418_v55 }
 0x231   :  { %2912 = vmatmul.mubr.f32.gmra.mrb[8].mxu1 %v419_v57 }
 0x232   :  { %2914 = vmatprep.mubr.f32.mxu1 %v420_v5 }
 0x235   :  { %2915 = vmatmul.mubr.f32.gmra.mrb[10].mxu1 %v421_v9 }
 0x236   :  { %2917 = vmatprep.mubr.f32.mxu1 %v422_v22 }
 0x239   :  { %2918 = vmatmul.mubr.f32.gmra.mrb[12].mxu1 %v423_v23 }
 0x23a   :  { %2920 = vmatprep.mubr.f32.mxu1 %v424_v0 }
 0x23d   :  { %2921 = vmatmul.mubr.f32.gmra.mrb[14].mxu1 %v425_v24 }
 0x2f4   :  { %v2901_v33 = vpop.f32.mrb[0].mxu1 }
 0x2f5   :  { %v3693_v58 = vadd.f32 %v2901_v33, %v3690_v25  ;;  %v492_v10 = vpop.f32.mrb[1].mxu1 }
 0x2f6   :  { %v3696_v13 = vadd.f32 %v492_v10, %v3690_v25 }
 0x2f7   :  { %573 = vmax.xlane.f32.xlu1 %v3693_v58 }
 0x2f8   :  { %v2904_v32 = vpop.f32.mrb[2].mxu1  ;;  %571 = vmax.xlane.f32.xlu0 %v3696_v13 }
 0x2f9   :  { %v3701_v19 = vadd.f32 %v2904_v32, %v3690_v25  ;;  %v502_v1 = vpop.f32.mrb[3].mxu1 }
 0x2fa   :  { %v3704_v38 = vadd.f32 %v502_v1, %v3690_v25 }
 0x2fb   :  { %577 = vmax.xlane.f32.xlu1 %v3701_v19 }
 0x2fc   :  { %v2907_v40 = vpop.f32.mrb[4].mxu1  ;;  %575 = vmax.xlane.f32.xlu0 %v3704_v38 }
 0x2fd   :  { %v3709_v42 = vadd.f32 %v2907_v40, %v3690_v25  ;;  %v512_v43 = vpop.f32.mrb[5].mxu1 }
 0x2fe   :  { %v3712_v45 = vadd.f32 %v512_v43, %v3690_v25 }
 0x2ff   :  { %581 = vmax.xlane.f32.xlu1 %v3709_v42 }
 0x300   :  { %v2910_v47 = vpop.f32.mrb[6].mxu1  ;;  %579 = vmax.xlane.f32.xlu0 %v3712_v45 }
 0x301   :  { %v3717_v29 = vadd.f32 %v2910_v47, %v3690_v25  ;;  %v522_v48 = vpop.f32.mrb[7].mxu1 }
 0x302   :  { %v3720_v34 = vadd.f32 %v522_v48, %v3690_v25 }
 0x303   :  { %585 = vmax.xlane.f32.xlu1 %v3717_v29 }
 0x304   :  { %v2913_v50 = vpop.f32.mrb[8].mxu1  ;;  %583 = vmax.xlane.f32.xlu0 %v3720_v34 }
 0x305   :  { %v3725_v6 = vadd.f32 %v2913_v50, %v3690_v25  ;;  %v532_v52 = vpop.f32.mrb[9].mxu1 }
 0x306   :  { %v3728_v53 = vadd.f32 %v532_v52, %v3690_v25 }
 0x307   :  { %589 = vmax.xlane.f32.xlu1 %v3725_v6 }
 0x308   :  { %v2916_v7 = vpop.f32.mrb[10].mxu1  ;;  %587 = vmax.xlane.f32.xlu0 %v3728_v53 }
 0x309   :  { %v3733_v55 = vadd.f32 %v2916_v7, %v3690_v25  ;;  %v542_v57 = vpop.f32.mrb[11].mxu1 }
 0x30a   :  { %v3736_v60 = vadd.f32 %v542_v57, %v3690_v25 }
 0x30b   :  { %593 = vmax.xlane.f32.xlu1 %v3733_v55 }
 0x30c   :  { %v2919_v62 = vpop.f32.mrb[12].mxu1  ;;  %591 = vmax.xlane.f32.xlu0 %v3736_v60 }
 0x30d   :  { %v3741_v39 = vadd.f32 %v2919_v62, %v3690_v25  ;;  %v552_v44 = vpop.f32.mrb[13].mxu1 }
 0x30e   :  { %v3744_v63 = vadd.f32 %v552_v44, %v3690_v25 }
 0x30f   :  { %597 = vmax.xlane.f32.xlu1 %v3741_v39 }
 0x310   :  { %v2922_v2 = vpop.f32.mrb[14].mxu1  ;;  %595 = vmax.xlane.f32.xlu0 %v3744_v63 }
 0x311   :  { %v3749_v4 = vadd.f32 %v2922_v2, %v3690_v25  ;;  %v562_v5 = vpop.f32.mrb[15].mxu1 }
 0x312   :  { %v3752_v9 = vadd.f32 %v562_v5, %v3690_v25 }
 0x313   :  { %601 = vmax.xlane.f32.xlu1 %v3749_v4 }
 0x314   :  { %599 = vmax.xlane.f32.xlu0 %v3752_v9 }
 0x384   :  { %v3756_v14 = vpop.xlane.xlu1 %573 }
 0x385   :  { %vm604_vm1 = vcmp.ge.f32.partialorder %v3693_v58, %v3756_v14  ;;  %v3760_v15 = vpop.xlane.xlu0 %571 }
 0x386   :  { %v3766_v49 = vsel %vm604_vm1, -3e+38, %v3693_v58  ;;  %vm603_vm2 = vcmp.ge.f32.partialorder %v3696_v13, %v3760_v15  ;;  %v620_v12 = vsel %vm604_vm1, %v3693_v58, 0.0 }
 0x387   :  { %v3774_v54 = vsel %vm603_vm2, -3e+38, %v3696_v13  ;;  %669 = vmax.xlane.f32.xlu1 %v3766_v49  ;;  %v619_v3 = vsel %vm603_vm2, %v3696_v13, 0.0 }
 0x388   :  { %v3777_v18 = vpop.xlane.xlu1 %577  ;;  %667 = vmax.xlane.f32.xlu0 %v3774_v54 }
 0x389   :  { %vm606_vm3 = vcmp.ge.f32.partialorder %v3701_v19, %v3777_v18  ;;  %v3782_v22 = vpop.xlane.xlu0 %575 }
 0x38a   :  { %v3788_v23 = vsel %vm606_vm3, -3e+38, %v3701_v19  ;;  %vm605_vm4 = vcmp.ge.f32.partialorder %v3704_v38, %v3782_v22 }
 0x38b   :  { %v3796_v27 = vsel %vm605_vm4, -3e+38, %v3704_v38  ;;  %673 = vmax.xlane.f32.xlu1 %v3788_v23 }
 0x38c   :  { %v3799_v30 = vpop.xlane.xlu1 %581  ;;  %671 = vmax.xlane.f32.xlu0 %v3796_v27 }
 0x38d   :  { %vm608_vm5 = vcmp.ge.f32.partialorder %v3709_v42, %v3799_v30  ;;  %v3804_v59 = vpop.xlane.xlu0 %579 }
 0x38e   :  { %v3810_v0 = vsel %vm608_vm5, -3e+38, %v3709_v42  ;;  %vm607_vm6 = vcmp.ge.f32.partialorder %v3712_v45, %v3804_v59 }
 0x38f   :  { %v3818_v24 = vsel %vm607_vm6, -3e+38, %v3712_v45  ;;  %677 = vmax.xlane.f32.xlu1 %v3810_v0 }
 0x390   :  { %v3821_v35 = vpop.xlane.xlu1 %585  ;;  %675 = vmax.xlane.f32.xlu0 %v3818_v24 }
 0x391   :  { %vm610_vm7 = vcmp.ge.f32.partialorder %v3717_v29, %v3821_v35  ;;  %v3826_v8 = vpop.xlane.xlu0 %583 }
 0x392   :  { %v3832_v17 = vsel %vm610_vm7, -3e+38, %v3717_v29  ;;  %vm609_vm8 = vcmp.ge.f32.partialorder %v3720_v34, %v3826_v8 }
 0x393   :  { %v3840_v33 = vsel %vm609_vm8, -3e+38, %v3720_v34  ;;  %681 = vmax.xlane.f32.xlu1 %v3832_v17 }
 0x394   :  { %v3843_v10 = vpop.xlane.xlu1 %589  ;;  %679 = vmax.xlane.f32.xlu0 %v3840_v33 }
 0x395   :  { %vm612_vm9 = vcmp.ge.f32.partialorder %v3725_v6, %v3843_v10  ;;  %v3848_v32 = vpop.xlane.xlu0 %587 }
 0x396   :  { %v3854_v1 = vsel %vm612_vm9, -3e+38, %v3725_v6  ;;  %vm611_vm10 = vcmp.ge.f32.partialorder %v3728_v53, %v3848_v32 }
 0x397   :  { %v3862_v40 = vsel %vm611_vm10, -3e+38, %v3728_v53  ;;  %685 = vmax.xlane.f32.xlu1 %v3854_v1 }
 0x398   :  { %v3865_v43 = vpop.xlane.xlu1 %593  ;;  %683 = vmax.xlane.f32.xlu0 %v3862_v40 }
 0x399   :  { %vm614_vm11 = vcmp.ge.f32.partialorder %v3733_v55, %v3865_v43  ;;  %v3870_v47 = vpop.xlane.xlu0 %591 }
 0x39a   :  { %v3876_v48 = vsel %vm614_vm11, -3e+38, %v3733_v55  ;;  %vm613_vm12 = vcmp.ge.f32.partialorder %v3736_v60, %v3870_v47 }
 0x39b   :  { %v3884_v50 = vsel %vm613_vm12, -3e+38, %v3736_v60  ;;  %689 = vmax.xlane.f32.xlu1 %v3876_v48 }
 0x39c   :  { %v3887_v52 = vpop.xlane.xlu1 %597  ;;  %687 = vmax.xlane.f32.xlu0 %v3884_v50 }
 0x39d   :  { %vm616_vm13 = vcmp.ge.f32.partialorder %v3741_v39, %v3887_v52  ;;  %v3892_v7 = vpop.xlane.xlu0 %595 }
 0x39e   :  { %v3898_v57 = vsel %vm616_vm13, -3e+38, %v3741_v39  ;;  %vm6422_vm14 = vcmp.ge.f32.partialorder %v3744_v63, %v3892_v7 }
 0x39f   :  { %v3906_v62 = vsel %vm6422_vm14, -3e+38, %v3744_v63  ;;  %693 = vmax.xlane.f32.xlu1 %v3898_v57 }
 0x3a0   :  { %v3909_v44 = vpop.xlane.xlu1 %601  ;;  %691 = vmax.xlane.f32.xlu0 %v3906_v62 }
 0x3a1   :  { %vm618_vm15 = vcmp.ge.f32.partialorder %v3749_v4, %v3909_v44  ;;  %v3914_v2 = vpop.xlane.xlu0 %599 }
 0x3a2   :  { %v3920_v5 = vsel %vm618_vm15, -3e+38, %v3749_v4  ;;  %vm6427_vm0 = vcmp.ge.f32.partialorder %v3752_v9, %v3914_v2 }
 0x3a3   :  { %v3928_v25 = vsel %vm6427_vm0, -3e+38, %v3752_v9  ;;  %697 = vmax.xlane.f32.xlu1 %v3920_v5 }
 0x3a4   :  { %695 = vmax.xlane.f32.xlu0 %v3928_v25 }
 0x414   :  { %v670_v28 = vpop.xlane.xlu1 %669 }
 0x415   :  { %vm700_vm14 = vcmp.ge.f32.partialorder %v3766_v49, %v670_v28  ;;  %v668_v37 = vpop.xlane.xlu0 %667 }
 0x416   :  { %v716_v20 = vsel %vm700_vm14, %v3766_v49, 0.0  ;;  %v3939_v61 = vsel %vm700_vm14, -3e+38, %v3766_v49  ;;  %vm699_vm0 = vcmp.ge.f32.partialorder %v3774_v54, %v668_v37  ;;  %vm6454_vm14 = vcmp.ge.f32.partialorder %v3744_v63, %v3892_v7 }
 0x417   :  { %v3946_v51 = vadd.f32 %v716_v20, %v620_v12  ;;  %v715_v28 = vsel %vm699_vm0, %v3774_v54, 0.0  ;;  %v3950_v56 = vsel %vm699_vm0, -3e+38, %v3774_v54  ;;  %765 = vmax.xlane.f32.xlu1 %v3939_v61  ;;  %v622_v12 = vsel %vm606_vm3, %v3701_v19, 0.0 }
 0x418   :  { %v3953_v58 = vadd.f32 %v715_v28, %v619_v3  ;;  %v674_v14 = vpop.xlane.xlu1 %673  ;;  %763 = vmax.xlane.f32.xlu0 %v3950_v56  ;;  %v621_v3 = vsel %vm605_vm4, %v3704_v38, 0.0  ;;  %v624_v38 = vsel %vm608_vm5, %v3709_v42, 0.0  ;;  %v623_v28 = vsel %vm607_vm6, %v3712_v45, 0.0 }
 0x419   :  { %vm702_vm1 = vcmp.ge.f32.partialorder %v3788_v23, %v674_v14  ;;  %v672_v37 = vpop.xlane.xlu0 %671  ;;  %v626_v45 = vsel %vm610_vm7, %v3717_v29, 0.0 }
 0x41a   :  { %v718_v20 = vsel %vm702_vm1, %v3788_v23, 0.0  ;;  %v3963_v13 = vsel %vm702_vm1, -3e+38, %v3788_v23  ;;  %vm701_vm2 = vcmp.ge.f32.partialorder %v3796_v27, %v672_v37  ;;  %vm6455_vm1 = vcmp.ge.f32.partialorder %v3752_v9, %v3914_v2 }
 0x41b   :  { %v3970_v15 = vadd.f32 %v718_v20, %v622_v12  ;;  %v717_v49 = vsel %vm701_vm2, %v3796_v27, 0.0  ;;  %v3974_v54 = vsel %vm701_vm2, -3e+38, %v3796_v27  ;;  %769 = vmax.xlane.f32.xlu1 %v3963_v13  ;;  %v625_v20 = vsel %vm609_vm8, %v3720_v34, 0.0 }
 0x41c   :  { %v3977_v19 = vadd.f32 %v717_v49, %v621_v3  ;;  %v678_v18 = vpop.xlane.xlu1 %677  ;;  %767 = vmax.xlane.f32.xlu0 %v3974_v54  ;;  %v628_v34 = vsel %vm612_vm9, %v3725_v6, 0.0 }
 0x41d   :  { %vm704_vm3 = vcmp.ge.f32.partialorder %v3810_v0, %v678_v18  ;;  %v676_v23 = vpop.xlane.xlu0 %675 }
 0x41e   :  { %v720_v22 = vsel %vm704_vm3, %v3810_v0, 0.0  ;;  %v3987_v27 = vsel %vm704_vm3, -3e+38, %v3810_v0  ;;  %vm703_vm4 = vcmp.ge.f32.partialorder %v3818_v24, %v676_v23  ;;  %v627_v23 = vsel %vm611_vm10, %v3728_v53, 0.0 }
 0x41f   :  { %v3994_v14 = vadd.f32 %v720_v22, %v624_v38  ;;  %v719_v37 = vsel %vm703_vm4, %v3818_v24, 0.0  ;;  %v3998_v12 = vsel %vm703_vm4, -3e+38, %v3818_v24  ;;  %773 = vmax.xlane.f32.xlu1 %v3987_v27  ;;  %v630_v53 = vsel %vm614_vm11, %v3733_v55, 0.0 }
 0x420   :  { %v4001_v42 = vadd.f32 %v719_v37, %v623_v28  ;;  %v682_v30 = vpop.xlane.xlu1 %681  ;;  %771 = vmax.xlane.f32.xlu0 %v3998_v12  ;;  %v629_v37 = vsel %vm613_vm12, %v3736_v60, 0.0  ;;  %v632_v60 = vsel %vm616_vm13, %v3741_v39, 0.0 }
 0x421   :  { %vm706_vm5 = vcmp.ge.f32.partialorder %v3832_v17, %v682_v30  ;;  %v680_v0 = vpop.xlane.xlu0 %679 }
 0x422   :  { %v722_v59 = vsel %vm706_vm5, %v3832_v17, 0.0  ;;  %v4011_v24 = vsel %vm706_vm5, -3e+38, %v3832_v17  ;;  %vm705_vm6 = vcmp.ge.f32.partialorder %v3840_v33, %v680_v0 }
 0x423   :  { %v4018_v3 = vadd.f32 %v722_v59, %v626_v45  ;;  %v721_v49 = vsel %vm705_vm6, %v3840_v33, 0.0  ;;  %v4022_v18 = vsel %vm705_vm6, -3e+38, %v3840_v33  ;;  %777 = vmax.xlane.f32.xlu1 %v4011_v24  ;;  %v631_v59 = vsel %vm6454_vm14, %v3744_v63, 0.0 }
 0x424   :  { %v4025_v29 = vadd.f32 %v721_v49, %v625_v20  ;;  %v686_v35 = vpop.xlane.xlu1 %685  ;;  %775 = vmax.xlane.f32.xlu0 %v4022_v18  ;;  %v634_v63 = vsel %vm618_vm15, %v3749_v4, 0.0 }
 0x425   :  { %vm708_vm7 = vcmp.ge.f32.partialorder %v3854_v1, %v686_v35  ;;  %v684_v17 = vpop.xlane.xlu0 %683 }
 0x426   :  { %v724_v8 = vsel %vm708_vm7, %v3854_v1, 0.0  ;;  %v4035_v33 = vsel %vm708_vm7, -3e+38, %v3854_v1  ;;  %vm707_vm8 = vcmp.ge.f32.partialorder %v3862_v40, %v684_v17  ;;  %v633_v17 = vsel %vm6455_vm1, %v3752_v9, 0.0 }
 0x427   :  { %v4042_v38 = vadd.f32 %v724_v8, %v628_v34  ;;  %v723_v22 = vsel %vm707_vm8, %v3862_v40, 0.0  ;;  %v4046_v28 = vsel %vm707_vm8, -3e+38, %v3862_v40  ;;  %781 = vmax.xlane.f32.xlu1 %v4035_v33 }
 0x428   :  { %v4049_v6 = vadd.f32 %v723_v22, %v627_v23  ;;  %v690_v10 = vpop.xlane.xlu1 %689  ;;  %779 = vmax.xlane.f32.xlu0 %v4046_v28 }
 0x429   :  { %vm710_vm9 = vcmp.ge.f32.partialorder %v3876_v48, %v690_v10  ;;  %v688_v1 = vpop.xlane.xlu0 %687 }
 0x42a   :  { %v726_v32 = vsel %vm710_vm9, %v3876_v48, 0.0  ;;  %v4059_v40 = vsel %vm710_vm9, -3e+38, %v3876_v48  ;;  %vm709_vm10 = vcmp.ge.f32.partialorder %v3884_v50, %v688_v1 }
 0x42b   :  { %v4066_v30 = vadd.f32 %v726_v32, %v630_v53  ;;  %v725_v0 = vsel %vm709_vm10, %v3884_v50, 0.0  ;;  %v4070_v45 = vsel %vm709_vm10, -3e+38, %v3884_v50  ;;  %785 = vmax.xlane.f32.xlu1 %v4059_v40 }
 0x42c   :  { %v4073_v55 = vadd.f32 %v725_v0, %v629_v37  ;;  %v694_v43 = vpop.xlane.xlu1 %693  ;;  %783 = vmax.xlane.f32.xlu0 %v4070_v45 }
 0x42d   :  { %vm712_vm11 = vcmp.ge.f32.partialorder %v3898_v57, %v694_v43  ;;  %v692_v48 = vpop.xlane.xlu0 %691 }
 0x42e   :  { %v728_v47 = vsel %vm712_vm11, %v3898_v57, 0.0  ;;  %v4083_v50 = vsel %vm712_vm11, -3e+38, %v3898_v57  ;;  %vm711_vm12 = vcmp.ge.f32.partialorder %v3906_v62, %v692_v48 }
 0x42f   :  { %v4090_v20 = vadd.f32 %v728_v47, %v632_v60  ;;  %v727_v49 = vsel %vm711_vm12, %v3906_v62, 0.0  ;;  %v4094_v35 = vsel %vm711_vm12, -3e+38, %v3906_v62  ;;  %789 = vmax.xlane.f32.xlu1 %v4083_v50 }
 0x430   :  { %v4097_v39 = vadd.f32 %v727_v49, %v631_v59  ;;  %v698_v52 = vpop.xlane.xlu1 %697  ;;  %787 = vmax.xlane.f32.xlu0 %v4094_v35 }
 0x431   :  { %vm714_vm13 = vcmp.ge.f32.partialorder %v3920_v5, %v698_v52  ;;  %v696_v57 = vpop.xlane.xlu0 %695 }
 0x432   :  { %v730_v7 = vsel %vm714_vm13, %v3920_v5, 0.0  ;;  %v4107_v62 = vsel %vm714_vm13, -3e+38, %v3920_v5  ;;  %vm713_vm0 = vcmp.ge.f32.partialorder %v3928_v25, %v696_v57 }
 0x433   :  { %v4114_v34 = vadd.f32 %v730_v7, %v634_v63  ;;  %v729_v8 = vsel %vm713_vm0, %v3928_v25, 0.0  ;;  %v4118_v23 = vsel %vm713_vm0, -3e+38, %v3928_v25  ;;  %793 = vmax.xlane.f32.xlu1 %v4107_v62 }
 0x434   :  { %v4121_v4 = vadd.f32 %v729_v8, %v633_v17  ;;  %791 = vmax.xlane.f32.xlu0 %v4118_v23 }
 0x4a4   :  { %v766_v44 = vpop.xlane.xlu1 %765 }
 0x4a5   :  { %vm796_vm15 = vcmp.ge.f32.partialorder %v3939_v61, %v766_v44  ;;  %v764_v5 = vpop.xlane.xlu0 %763 }
 0x4a6   :  { %v812_v2 = vsel %vm796_vm15, %v3939_v61, 0.0  ;;  %v4127_v9 = vsel %vm796_vm15, -3e+38, %v3939_v61  ;;  %vm795_vm2 = vcmp.ge.f32.partialorder %v3950_v56, %v764_v5 }
 0x4a7   :  { %v4131_v25 = vadd.f32 %v812_v2, %v3946_v51  ;;  %v811_v22 = vsel %vm795_vm2, %v3950_v56, 0.0  ;;  %v4135_v10 = vsel %vm795_vm2, -3e+38, %v3950_v56  ;;  %861 = vmax.xlane.f32.xlu1 %v4127_v9 }
 0x4a8   :  { %v4139_v1 = vadd.f32 %v811_v22, %v3953_v58  ;;  %v770_v53 = vpop.xlane.xlu1 %769  ;;  %859 = vmax.xlane.f32.xlu0 %v4135_v10 }
 0x4a9   :  { %vm798_vm3 = vcmp.ge.f32.partialorder %v3963_v13, %v770_v53  ;;  %v768_v61 = vpop.xlane.xlu0 %767 }
 0x4aa   :  { %v814_v32 = vsel %vm798_vm3, %v3963_v13, 0.0  ;;  %v4145_v51 = vsel %vm798_vm3, -3e+38, %v3963_v13  ;;  %vm797_vm4 = vcmp.ge.f32.partialorder %v3974_v54, %v768_v61 }
 0x4ab   :  { %v4149_v56 = vadd.f32 %v814_v32, %v3970_v15  ;;  %v813_v37 = vsel %vm797_vm4, %v3974_v54, 0.0  ;;  %v4153_v58 = vsel %vm797_vm4, -3e+38, %v3974_v54  ;;  %865 = vmax.xlane.f32.xlu1 %v4145_v51 }
 0x4ac   :  { %v4157_v0 = vadd.f32 %v813_v37, %v3977_v19  ;;  %v774_v43 = vpop.xlane.xlu1 %773  ;;  %863 = vmax.xlane.f32.xlu0 %v4153_v58 }
 0x4ad   :  { %vm800_vm5 = vcmp.ge.f32.partialorder %v3987_v27, %v774_v43  ;;  %v772_v13 = vpop.xlane.xlu0 %771 }
 0x4ae   :  { %v816_v48 = vsel %vm800_vm5, %v3987_v27, 0.0  ;;  %v4163_v15 = vsel %vm800_vm5, -3e+38, %v3987_v27  ;;  %vm799_vm6 = vcmp.ge.f32.partialorder %v3998_v12, %v772_v13 }
 0x4af   :  { %v4167_v54 = vadd.f32 %v816_v48, %v3994_v14  ;;  %v815_v60 = vsel %vm799_vm6, %v3998_v12, 0.0  ;;  %v4171_v19 = vsel %vm799_vm6, -3e+38, %v3998_v12  ;;  %869 = vmax.xlane.f32.xlu1 %v4163_v15 }
 0x4b0   :  { %v4175_v47 = vadd.f32 %v815_v60, %v4001_v42  ;;  %v778_v59 = vpop.xlane.xlu1 %777  ;;  %867 = vmax.xlane.f32.xlu0 %v4171_v19 }
 0x4b1   :  { %vm802_vm7 = vcmp.ge.f32.partialorder %v4011_v24, %v778_v59  ;;  %v776_v27 = vpop.xlane.xlu0 %775 }
 0x4b2   :  { %v818_v49 = vsel %vm802_vm7, %v4011_v24, 0.0  ;;  %v4181_v14 = vsel %vm802_vm7, -3e+38, %v4011_v24  ;;  %vm801_vm8 = vcmp.ge.f32.partialorder %v4022_v18, %v776_v27 }
 0x4b3   :  { %v4185_v12 = vadd.f32 %v818_v49, %v4018_v3  ;;  %v817_v52 = vsel %vm801_vm8, %v4022_v18, 0.0  ;;  %v4189_v42 = vsel %vm801_vm8, -3e+38, %v4022_v18  ;;  %873 = vmax.xlane.f32.xlu1 %v4181_v14 }
 0x4b4   :  { %v4193_v57 = vadd.f32 %v817_v52, %v4025_v29  ;;  %v782_v63 = vpop.xlane.xlu1 %781  ;;  %871 = vmax.xlane.f32.xlu0 %v4189_v42 }
 0x4b5   :  { %vm804_vm9 = vcmp.ge.f32.partialorder %v4035_v33, %v782_v63  ;;  %v780_v24 = vpop.xlane.xlu0 %779 }
 0x4b6   :  { %v820_v7 = vsel %vm804_vm9, %v4035_v33, 0.0  ;;  %v4199_v3 = vsel %vm804_vm9, -3e+38, %v4035_v33  ;;  %vm803_vm10 = vcmp.ge.f32.partialorder %v4046_v28, %v780_v24 }
 0x4b7   :  { %v4203_v18 = vadd.f32 %v820_v7, %v4042_v38  ;;  %v819_v17 = vsel %vm803_vm10, %v4046_v28, 0.0  ;;  %v4207_v29 = vsel %vm803_vm10, -3e+38, %v4046_v28  ;;  %877 = vmax.xlane.f32.xlu1 %v4199_v3 }
 0x4b8   :  { %v4211_v8 = vadd.f32 %v819_v17, %v4049_v6  ;;  %v786_v44 = vpop.xlane.xlu1 %785  ;;  %875 = vmax.xlane.f32.xlu0 %v4207_v29 }
 0x4b9   :  { %vm806_vm11 = vcmp.ge.f32.partialorder %v4059_v40, %v786_v44  ;;  %v784_v33 = vpop.xlane.xlu0 %783 }
 0x4ba   :  { %v822_v5 = vsel %vm806_vm11, %v4059_v40, 0.0  ;;  %v4217_v38 = vsel %vm806_vm11, -3e+38, %v4059_v40  ;;  %vm805_vm12 = vcmp.ge.f32.partialorder %v4070_v45, %v784_v33 }
 0x4bb   :  { %v4221_v28 = vadd.f32 %v822_v5, %v4066_v30  ;;  %v821_v2 = vsel %vm805_vm12, %v4070_v45, 0.0  ;;  %v4225_v6 = vsel %vm805_vm12, -3e+38, %v4070_v45  ;;  %881 = vmax.xlane.f32.xlu1 %v4217_v38 }
 0x4bc   :  { %v4229_v22 = vadd.f32 %v821_v2, %v4073_v55  ;;  %v790_v53 = vpop.xlane.xlu1 %789  ;;  %879 = vmax.xlane.f32.xlu0 %v4225_v6 }
 0x4bd   :  { %vm808_vm14 = vcmp.ge.f32.partialorder %v4083_v50, %v790_v53  ;;  %v788_v40 = vpop.xlane.xlu0 %787 }
 0x4be   :  { %v824_v61 = vsel %vm808_vm14, %v4083_v50, 0.0  ;;  %v4235_v30 = vsel %vm808_vm14, -3e+38, %v4083_v50  ;;  %vm807_vm13 = vcmp.ge.f32.partialorder %v4094_v35, %v788_v40 }
 0x4bf   :  { %v4239_v45 = vadd.f32 %v824_v61, %v4090_v20  ;;  %v823_v32 = vsel %vm807_vm13, %v4094_v35, 0.0  ;;  %v4243_v55 = vsel %vm807_vm13, -3e+38, %v4094_v35  ;;  %885 = vmax.xlane.f32.xlu1 %v4235_v30 }
 0x4c0   :  { %v4247_v37 = vadd.f32 %v823_v32, %v4097_v39  ;;  %v794_v43 = vpop.xlane.xlu1 %793  ;;  %883 = vmax.xlane.f32.xlu0 %v4243_v55 }
 0x4c1   :  { %vm810_vm0 = vcmp.ge.f32.partialorder %v4107_v62, %v794_v43  ;;  %v792_v50 = vpop.xlane.xlu0 %791 }
 0x4c2   :  { %v826_v13 = vsel %vm810_vm0, %v4107_v62, 0.0  ;;  %v4253_v20 = vsel %vm810_vm0, -3e+38, %v4107_v62  ;;  %vm809_vm1 = vcmp.ge.f32.partialorder %v4118_v23, %v792_v50 }
 0x4c3   :  { %v4257_v35 = vadd.f32 %v826_v13, %v4114_v34  ;;  %v825_v48 = vsel %vm809_vm1, %v4118_v23, 0.0  ;;  %v4261_v39 = vsel %vm809_vm1, -3e+38, %v4118_v23  ;;  %889 = vmax.xlane.f32.xlu1 %v4253_v20 }
 0x4c4   :  { %v4265_v60 = vadd.f32 %v825_v48, %v4121_v4  ;;  %887 = vmax.xlane.f32.xlu0 %v4261_v39 }
 0x534   :  { %v862_v59 = vpop.xlane.xlu1 %861 }
 0x535   :  { %vm892_vm15 = vcmp.ge.f32.partialorder %v4127_v9, %v862_v59  ;;  %v860_v62 = vpop.xlane.xlu0 %859 }
 0x536   :  { %v908_v27 = vsel %vm892_vm15, %v4127_v9, 0.0  ;;  %v4271_v34 = vsel %vm892_vm15, -3e+38, %v4127_v9  ;;  %vm891_vm2 = vcmp.ge.f32.partialorder %v4135_v10, %v860_v62 }
 0x537   :  { %v4275_v23 = vadd.f32 %v908_v27, %v4131_v25  ;;  %v907_v49 = vsel %vm891_vm2, %v4135_v10, 0.0  ;;  %v4279_v4 = vsel %vm891_vm2, -3e+38, %v4135_v10  ;;  %957 = vmax.xlane.f32.xlu1 %v4271_v34 }
 0x538   :  { %v4283_v52 = vadd.f32 %v907_v49, %v4139_v1  ;;  %v866_v63 = vpop.xlane.xlu1 %865  ;;  %955 = vmax.xlane.f32.xlu0 %v4279_v4 }
 0x539   :  { %vm894_vm3 = vcmp.ge.f32.partialorder %v4145_v51, %v866_v63  ;;  %v864_v9 = vpop.xlane.xlu0 %863 }
 0x53a   :  { %v910_v24 = vsel %vm894_vm3, %v4145_v51, 0.0  ;;  %v4289_v25 = vsel %vm894_vm3, -3e+38, %v4145_v51  ;;  %vm893_vm4 = vcmp.ge.f32.partialorder %v4153_v58, %v864_v9 }
 0x53b   :  { %v4293_v10 = vadd.f32 %v910_v24, %v4149_v56  ;;  %v909_v7 = vsel %vm893_vm4, %v4153_v58, 0.0  ;;  %v4297_v1 = vsel %vm893_vm4, -3e+38, %v4153_v58  ;;  %961 = vmax.xlane.f32.xlu1 %v4289_v25 }
 0x53c   :  { %v4301_v17 = vadd.f32 %v909_v7, %v4157_v0  ;;  %v870_v44 = vpop.xlane.xlu1 %869  ;;  %959 = vmax.xlane.f32.xlu0 %v4297_v1 }
 0x53d   :  { %vm896_vm5 = vcmp.ge.f32.partialorder %v4163_v15, %v870_v44  ;;  %v868_v51 = vpop.xlane.xlu0 %867 }
 0x53e   :  { %v912_v33 = vsel %vm896_vm5, %v4163_v15, 0.0  ;;  %v4307_v56 = vsel %vm896_vm5, -3e+38, %v4163_v15  ;;  %vm895_vm6 = vcmp.ge.f32.partialorder %v4171_v19, %v868_v51 }
 0x53f   :  { %v4311_v58 = vadd.f32 %v912_v33, %v4167_v54  ;;  %v911_v5 = vsel %vm895_vm6, %v4171_v19, 0.0  ;;  %v4315_v0 = vsel %vm895_vm6, -3e+38, %v4171_v19  ;;  %965 = vmax.xlane.f32.xlu1 %v4307_v56 }
 0x540   :  { %v4319_v2 = vadd.f32 %v911_v5, %v4175_v47  ;;  %v874_v53 = vpop.xlane.xlu1 %873  ;;  %963 = vmax.xlane.f32.xlu0 %v4315_v0 }
 0x541   :  { %vm898_vm7 = vcmp.ge.f32.partialorder %v4181_v14, %v874_v53  ;;  %v872_v15 = vpop.xlane.xlu0 %871 }
 0x542   :  { %v914_v40 = vsel %vm898_vm7, %v4181_v14, 0.0  ;;  %v4325_v54 = vsel %vm898_vm7, -3e+38, %v4181_v14  ;;  %vm897_vm8 = vcmp.ge.f32.partialorder %v4189_v42, %v872_v15 }
 0x543   :  { %v4329_v19 = vadd.f32 %v914_v40, %v4185_v12  ;;  %v913_v61 = vsel %vm897_vm8, %v4189_v42, 0.0  ;;  %v4333_v47 = vsel %vm897_vm8, -3e+38, %v4189_v42  ;;  %969 = vmax.xlane.f32.xlu1 %v4325_v54 }
 0x544   :  { %v4337_v32 = vadd.f32 %v913_v61, %v4193_v57  ;;  %v878_v43 = vpop.xlane.xlu1 %877  ;;  %967 = vmax.xlane.f32.xlu0 %v4333_v47 }
 0x545   :  { %vm900_vm9 = vcmp.ge.f32.partialorder %v4199_v3, %v878_v43  ;;  %v876_v14 = vpop.xlane.xlu0 %875 }
 0x546   :  { %v916_v50 = vsel %vm900_vm9, %v4199_v3, 0.0  ;;  %v4343_v12 = vsel %vm900_vm9, -3e+38, %v4199_v3  ;;  %vm899_vm10 = vcmp.ge.f32.partialorder %v4207_v29, %v876_v14 }
 0x547   :  { %v4347_v42 = vadd.f32 %v916_v50, %v4203_v18  ;;  %v915_v13 = vsel %vm899_vm10, %v4207_v29, 0.0  ;;  %v4351_v57 = vsel %vm899_vm10, -3e+38, %v4207_v29  ;;  %973 = vmax.xlane.f32.xlu1 %v4343_v12 }
 0x548   :  { %v4355_v48 = vadd.f32 %v915_v13, %v4211_v8  ;;  %v882_v59 = vpop.xlane.xlu1 %881  ;;  %971 = vmax.xlane.f32.xlu0 %v4351_v57 }
 0x549   :  { %vm902_vm11 = vcmp.ge.f32.partialorder %v4217_v38, %v882_v59  ;;  %v880_v3 = vpop.xlane.xlu0 %879 }
 0x54a   :  { %v918_v62 = vsel %vm902_vm11, %v4217_v38, 0.0  ;;  %v4361_v18 = vsel %vm902_vm11, -3e+38, %v4217_v38  ;;  %vm901_vm12 = vcmp.ge.f32.partialorder %v4225_v6, %v880_v3 }
 0x54b   :  { %v4365_v29 = vadd.f32 %v918_v62, %v4221_v28  ;;  %v917_v27 = vsel %vm901_vm12, %v4225_v6, 0.0  ;;  %v4369_v8 = vsel %vm901_vm12, -3e+38, %v4225_v6  ;;  %977 = vmax.xlane.f32.xlu1 %v4361_v18 }
 0x54c   :  { %v4373_v49 = vadd.f32 %v917_v27, %v4229_v22  ;;  %v886_v63 = vpop.xlane.xlu1 %885  ;;  %975 = vmax.xlane.f32.xlu0 %v4369_v8 }
 0x54d   :  { %vm904_vm14 = vcmp.ge.f32.partialorder %v4235_v30, %v886_v63  ;;  %v884_v38 = vpop.xlane.xlu0 %883 }
 0x54e   :  { %v920_v9 = vsel %vm904_vm14, %v4235_v30, 0.0  ;;  %v4379_v28 = vsel %vm904_vm14, -3e+38, %v4235_v30  ;;  %vm903_vm13 = vcmp.ge.f32.partialorder %v4243_v55, %v884_v38 }
 0x54f   :  { %v4383_v6 = vadd.f32 %v920_v9, %v4239_v45  ;;  %v919_v24 = vsel %vm903_vm13, %v4243_v55, 0.0  ;;  %v4387_v22 = vsel %vm903_vm13, -3e+38, %v4243_v55  ;;  %981 = vmax.xlane.f32.xlu1 %v4379_v28 }
 0x550   :  { %v4391_v7 = vadd.f32 %v919_v24, %v4247_v37  ;;  %v890_v44 = vpop.xlane.xlu1 %889  ;;  %979 = vmax.xlane.f32.xlu0 %v4387_v22 }
 0x551   :  { %vm906_vm0 = vcmp.ge.f32.partialorder %v4253_v20, %v890_v44  ;;  %v888_v30 = vpop.xlane.xlu0 %887 }
 0x552   :  { %v922_v51 = vsel %vm906_vm0, %v4253_v20, 0.0  ;;  %v4397_v45 = vsel %vm906_vm0, -3e+38, %v4253_v20  ;;  %vm905_vm1 = vcmp.ge.f32.partialorder %v4261_v39, %v888_v30 }
 0x553   :  { %v4401_v55 = vadd.f32 %v922_v51, %v4257_v35  ;;  %v921_v33 = vsel %vm905_vm1, %v4261_v39, 0.0  ;;  %v4405_v37 = vsel %vm905_vm1, -3e+38, %v4261_v39  ;;  %985 = vmax.xlane.f32.xlu1 %v4397_v45 }
 0x554   :  { %v4409_v5 = vadd.f32 %v921_v33, %v4265_v60  ;;  %983 = vmax.xlane.f32.xlu0 %v4405_v37 }
 0x5c4   :  { %v958_v53 = vpop.xlane.xlu1 %957 }
 0x5c5   :  { %vm988_vm15 = vcmp.ge.f32.partialorder %v4271_v34, %v958_v53  ;;  %v956_v20 = vpop.xlane.xlu0 %955 }
 0x5c6   :  { %v1004_v15 = vsel %vm988_vm15, %v4271_v34, 0.0  ;;  %v4415_v35 = vsel %vm988_vm15, -3e+38, %v4271_v34  ;;  %vm987_vm2 = vcmp.ge.f32.partialorder %v4279_v4, %v956_v20 }
 0x5c7   :  { %v4419_v39 = vadd.f32 %v1004_v15, %v4275_v23  ;;  %v1003_v40 = vsel %vm987_vm2, %v4279_v4, 0.0  ;;  %v4423_v60 = vsel %vm987_vm2, -3e+38, %v4279_v4  ;;  %1053 = vmax.xlane.f32.xlu1 %v4415_v35 }
 0x5c8   :  { %v4427_v61 = vadd.f32 %v1003_v40, %v4283_v52  ;;  %v962_v43 = vpop.xlane.xlu1 %961  ;;  %1051 = vmax.xlane.f32.xlu0 %v4423_v60 }
 0x5c9   :  { %vm990_vm3 = vcmp.ge.f32.partialorder %v4289_v25, %v962_v43  ;;  %v960_v34 = vpop.xlane.xlu0 %959 }
 0x5ca   :  { %v1006_v14 = vsel %vm990_vm3, %v4289_v25, 0.0  ;;  %v4433_v23 = vsel %vm990_vm3, -3e+38, %v4289_v25  ;;  %vm989_vm4 = vcmp.ge.f32.partialorder %v4297_v1, %v960_v34 }
 0x5cb   :  { %v4437_v4 = vadd.f32 %v1006_v14, %v4293_v10  ;;  %v1005_v50 = vsel %vm989_vm4, %v4297_v1, 0.0  ;;  %v4441_v52 = vsel %vm989_vm4, -3e+38, %v4297_v1  ;;  %1057 = vmax.xlane.f32.xlu1 %v4433_v23 }
 0x5cc   :  { %v4445_v13 = vadd.f32 %v1005_v50, %v4301_v17  ;;  %v966_v59 = vpop.xlane.xlu1 %965  ;;  %1055 = vmax.xlane.f32.xlu0 %v4441_v52 }
 0x5cd   :  { %vm992_vm5 = vcmp.ge.f32.partialorder %v4307_v56, %v966_v59  ;;  %v964_v25 = vpop.xlane.xlu0 %963 }
 0x5ce   :  { %v1008_v3 = vsel %vm992_vm5, %v4307_v56, 0.0  ;;  %v4451_v10 = vsel %vm992_vm5, -3e+38, %v4307_v56  ;;  %vm991_vm6 = vcmp.ge.f32.partialorder %v4315_v0, %v964_v25 }
 0x5cf   :  { %v4455_v1 = vadd.f32 %v1008_v3, %v4311_v58  ;;  %v1007_v62 = vsel %vm991_vm6, %v4315_v0, 0.0  ;;  %v4459_v17 = vsel %vm991_vm6, -3e+38, %v4315_v0  ;;  %1061 = vmax.xlane.f32.xlu1 %v4451_v10 }
 0x5d0   :  { %v4463_v27 = vadd.f32 %v1007_v62, %v4319_v2  ;;  %v970_v63 = vpop.xlane.xlu1 %969  ;;  %1059 = vmax.xlane.f32.xlu0 %v4459_v17 }
 0x5d1   :  { %vm994_vm7 = vcmp.ge.f32.partialorder %v4325_v54, %v970_v63  ;;  %v968_v56 = vpop.xlane.xlu0 %967 }
 0x5d2   :  { %v1010_v38 = vsel %vm994_vm7, %v4325_v54, 0.0  ;;  %v4469_v58 = vsel %vm994_vm7, -3e+38, %v4325_v54  ;;  %vm993_vm8 = vcmp.ge.f32.partialorder %v4333_v47, %v968_v56 }
 0x5d3   :  { %v4473_v0 = vadd.f32 %v1010_v38, %v4329_v19  ;;  %v1009_v9 = vsel %vm993_vm8, %v4333_v47, 0.0  ;;  %v4477_v2 = vsel %vm993_vm8, -3e+38, %v4333_v47  ;;  %1065 = vmax.xlane.f32.xlu1 %v4469_v58 }
 0x5d4   :  { %v4481_v24 = vadd.f32 %v1009_v9, %v4337_v32  ;;  %v974_v44 = vpop.xlane.xlu1 %973  ;;  %1063 = vmax.xlane.f32.xlu0 %v4477_v2 }
 0x5d5   :  { %vm996_vm9 = vcmp.ge.f32.partialorder %v4343_v12, %v974_v44  ;;  %v972_v54 = vpop.xlane.xlu0 %971 }
 0x5d6   :  { %v1012_v30 = vsel %vm996_vm9, %v4343_v12, 0.0  ;;  %v4487_v19 = vsel %vm996_vm9, -3e+38, %v4343_v12  ;;  %vm995_vm10 = vcmp.ge.f32.partialorder %v4351_v57, %v972_v54 }
 0x5d7   :  { %v4491_v47 = vadd.f32 %v1012_v30, %v4347_v42  ;;  %v1011_v51 = vsel %vm995_vm10, %v4351_v57, 0.0  ;;  %v4495_v32 = vsel %vm995_vm10, -3e+38, %v4351_v57  ;;  %1069 = vmax.xlane.f32.xlu1 %v4487_v19 }
 0x5d8   :  { %v4499_v33 = vadd.f32 %v1011_v51, %v4355_v48  ;;  %v978_v53 = vpop.xlane.xlu1 %977  ;;  %1067 = vmax.xlane.f32.xlu0 %v4495_v32 }
 0x5d9   :  { %vm998_vm11 = vcmp.ge.f32.partialorder %v4361_v18, %v978_v53  ;;  %v976_v12 = vpop.xlane.xlu0 %975 }
 0x5da   :  { %v1014_v20 = vsel %vm998_vm11, %v4361_v18, 0.0  ;;  %v4505_v42 = vsel %vm998_vm11, -3e+38, %v4361_v18  ;;  %vm997_vm12 = vcmp.ge.f32.partialorder %v4369_v8, %v976_v12 }
 0x5db   :  { %v4509_v57 = vadd.f32 %v1014_v20, %v4365_v29  ;;  %v1013_v15 = vsel %vm997_vm12, %v4369_v8, 0.0  ;;  %v4513_v48 = vsel %vm997_vm12, -3e+38, %v4369_v8  ;;  %1073 = vmax.xlane.f32.xlu1 %v4505_v42 }
 0x5dc   :  { %v4517_v40 = vadd.f32 %v1013_v15, %v4373_v49  ;;  %v982_v43 = vpop.xlane.xlu1 %981  ;;  %1071 = vmax.xlane.f32.xlu0 %v4513_v48 }
 0x5dd   :  { %vm1000_vm14 = vcmp.ge.f32.partialorder %v4379_v28, %v982_v43  ;;  %v980_v18 = vpop.xlane.xlu0 %979 }
 0x5de   :  { %v1016_v34 = vsel %vm1000_vm14, %v4379_v28, 0.0  ;;  %v4523_v29 = vsel %vm1000_vm14, -3e+38, %v4379_v28  ;;  %vm999_vm13 = vcmp.ge.f32.partialorder %v4387_v22, %v980_v18 }
 0x5df   :  { %v4527_v8 = vadd.f32 %v1016_v34, %v4383_v6  ;;  %v1015_v14 = vsel %vm999_vm13, %v4387_v22, 0.0  ;;  %v4531_v49 = vsel %vm999_vm13, -3e+38, %v4387_v22  ;;  %1077 = vmax.xlane.f32.xlu1 %v4523_v29 }
 0x5e0   :  { %v4535_v50 = vadd.f32 %v1015_v14, %v4391_v7  ;;  %v986_v59 = vpop.xlane.xlu1 %985  ;;  %1075 = vmax.xlane.f32.xlu0 %v4531_v49 }
 0x5e1   :  { %vm1002_vm0 = vcmp.ge.f32.partialorder %v4397_v45, %v986_v59  ;;  %v984_v28 = vpop.xlane.xlu0 %983 }
 0x5e2   :  { %v1018_v25 = vsel %vm1002_vm0, %v4397_v45, 0.0  ;;  %v4541_v6 = vsel %vm1002_vm0, -3e+38, %v4397_v45  ;;  %vm1001_vm1 = vcmp.ge.f32.partialorder %v4405_v37, %v984_v28 }
 0x5e3   :  { %v4545_v22 = vadd.f32 %v1018_v25, %v4401_v55  ;;  %v1017_v3 = vsel %vm1001_vm1, %v4405_v37, 0.0  ;;  %v4549_v7 = vsel %vm1001_vm1, -3e+38, %v4405_v37  ;;  %1081 = vmax.xlane.f32.xlu1 %v4541_v6 }
 0x5e4   :  { %v4553_v62 = vadd.f32 %v1017_v3, %v4409_v5  ;;  %1079 = vmax.xlane.f32.xlu0 %v4549_v7 }
 0x654   :  { %v1054_v63 = vpop.xlane.xlu1 %1053 }
 0x655   :  { %vm1084_vm15 = vcmp.ge.f32.partialorder %v4415_v35, %v1054_v63  ;;  %v1052_v45 = vpop.xlane.xlu0 %1051 }
 0x656   :  { %v1100_v56 = vsel %vm1084_vm15, %v4415_v35, 0.0  ;;  %v4559_v55 = vsel %vm1084_vm15, -3e+38, %v4415_v35  ;;  %vm1083_vm2 = vcmp.ge.f32.partialorder %v4423_v60, %v1052_v45 }
 0x657   :  { %v4563_v37 = vadd.f32 %v1100_v56, %v4419_v39  ;;  %v1099_v38 = vsel %vm1083_vm2, %v4423_v60, 0.0  ;;  %v4567_v5 = vsel %vm1083_vm2, -3e+38, %v4423_v60  ;;  %1149 = vmax.xlane.f32.xlu1 %v4559_v55 }
 0x658   :  { %v4571_v9 = vadd.f32 %v1099_v38, %v4427_v61  ;;  %v1058_v44 = vpop.xlane.xlu1 %1057  ;;  %1147 = vmax.xlane.f32.xlu0 %v4567_v5 }
 0x659   :  { %vm1086_vm3 = vcmp.ge.f32.partialorder %v4433_v23, %v1058_v44  ;;  %v1056_v35 = vpop.xlane.xlu0 %1055 }
 0x65a   :  { %v1102_v54 = vsel %vm1086_vm3, %v4433_v23, 0.0  ;;  %v4577_v39 = vsel %vm1086_vm3, -3e+38, %v4433_v23  ;;  %vm1085_vm4 = vcmp.ge.f32.partialorder %v4441_v52, %v1056_v35 }
 0x65b   :  { %v4581_v60 = vadd.f32 %v1102_v54, %v4437_v4  ;;  %v1101_v30 = vsel %vm1085_vm4, %v4441_v52, 0.0  ;;  %v4585_v61 = vsel %vm1085_vm4, -3e+38, %v4441_v52  ;;  %1153 = vmax.xlane.f32.xlu1 %v4577_v39 }
 0x65c   :  { %v4589_v51 = vadd.f32 %v1101_v30, %v4445_v13  ;;  %v1062_v53 = vpop.xlane.xlu1 %1061  ;;  %1151 = vmax.xlane.f32.xlu0 %v4585_v61 }
 0x65d   :  { %vm1088_vm5 = vcmp.ge.f32.partialorder %v4451_v10, %v1062_v53  ;;  %v1060_v23 = vpop.xlane.xlu0 %1059 }
 0x65e   :  { %v1104_v12 = vsel %vm1088_vm5, %v4451_v10, 0.0  ;;  %v4595_v4 = vsel %vm1088_vm5, -3e+38, %v4451_v10  ;;  %vm1087_vm6 = vcmp.ge.f32.partialorder %v4459_v17, %v1060_v23 }
 0x65f   :  { %v4599_v52 = vadd.f32 %v1104_v12, %v4455_v1  ;;  %v1103_v20 = vsel %vm1087_vm6, %v4459_v17, 0.0  ;;  %v4603_v13 = vsel %vm1087_vm6, -3e+38, %v4459_v17  ;;  %1157 = vmax.xlane.f32.xlu1 %v4595_v4 }
 0x660   :  { %v4607_v15 = vadd.f32 %v1103_v20, %v4463_v27  ;;  %v1066_v43 = vpop.xlane.xlu1 %1065  ;;  %1155 = vmax.xlane.f32.xlu0 %v4603_v13 }
 0x661   :  { %vm1090_vm7 = vcmp.ge.f32.partialorder %v4469_v58, %v1066_v43  ;;  %v1064_v10 = vpop.xlane.xlu0 %1063 }
 0x662   :  { %v1106_v18 = vsel %vm1090_vm7, %v4469_v58, 0.0  ;;  %v4613_v1 = vsel %vm1090_vm7, -3e+38, %v4469_v58  ;;  %vm1089_vm8 = vcmp.ge.f32.partialorder %v4477_v2, %v1064_v10 }
 0x663   :  { %v4617_v17 = vadd.f32 %v1106_v18, %v4473_v0  ;;  %v1105_v34 = vsel %vm1089_vm8, %v4477_v2, 0.0  ;;  %v4621_v27 = vsel %vm1089_vm8, -3e+38, %v4477_v2  ;;  %1161 = vmax.xlane.f32.xlu1 %v4613_v1 }
 0x664   :  { %v4625_v14 = vadd.f32 %v1105_v34, %v4481_v24  ;;  %v1070_v59 = vpop.xlane.xlu1 %1069  ;;  %1159 = vmax.xlane.f32.xlu0 %v4621_v27 }
 0x665   :  { %vm1092_vm9 = vcmp.ge.f32.partialorder %v4487_v19, %v1070_v59  ;;  %v1068_v58 = vpop.xlane.xlu0 %1067 }
 0x666   :  { %v1108_v28 = vsel %vm1092_vm9, %v4487_v19, 0.0  ;;  %v4631_v0 = vsel %vm1092_vm9, -3e+38, %v4487_v19  ;;  %vm1091_vm10 = vcmp.ge.f32.partialorder %v4495_v32, %v1068_v58 }
 0x667   :  { %v4635_v2 = vadd.f32 %v1108_v28, %v4491_v47  ;;  %v1107_v25 = vsel %vm1091_vm10, %v4495_v32, 0.0  ;;  %v4639_v24 = vsel %vm1091_vm10, -3e+38, %v4495_v32  ;;  %1165 = vmax.xlane.f32.xlu1 %v4631_v0 }
 0x668   :  { %v4643_v3 = vadd.f32 %v1107_v25, %v4499_v33  ;;  %v1074_v63 = vpop.xlane.xlu1 %1073  ;;  %1163 = vmax.xlane.f32.xlu0 %v4639_v24 }
 0x669   :  { %vm1094_vm11 = vcmp.ge.f32.partialorder %v4505_v42, %v1074_v63  ;;  %v1072_v19 = vpop.xlane.xlu0 %1071 }
 0x66a   :  { %v1110_v45 = vsel %vm1094_vm11, %v4505_v42, 0.0  ;;  %v4649_v47 = vsel %vm1094_vm11, -3e+38, %v4505_v42  ;;  %vm1093_vm12 = vcmp.ge.f32.partialorder %v4513_v48, %v1072_v19 }
 0x66b   :  { %v4653_v32 = vadd.f32 %v1110_v45, %v4509_v57  ;;  %v1109_v56 = vsel %vm1093_vm12, %v4513_v48, 0.0  ;;  %v4657_v33 = vsel %vm1093_vm12, -3e+38, %v4513_v48  ;;  %1169 = vmax.xlane.f32.xlu1 %v4649_v47 }
 0x66c   :  { %v4661_v38 = vadd.f32 %v1109_v56, %v4517_v40  ;;  %v1078_v44 = vpop.xlane.xlu1 %1077  ;;  %1167 = vmax.xlane.f32.xlu0 %v4657_v33 }
 0x66d   :  { %vm1096_vm14 = vcmp.ge.f32.partialorder %v4523_v29, %v1078_v44  ;;  %v1076_v42 = vpop.xlane.xlu0 %1075 }
 0x66e   :  { %v1112_v35 = vsel %vm1096_vm14, %v4523_v29, 0.0  ;;  %v4667_v57 = vsel %vm1096_vm14, -3e+38, %v4523_v29  ;;  %vm1095_vm13 = vcmp.ge.f32.partialorder %v4531_v49, %v1076_v42 }
 0x66f   :  { %v4671_v48 = vadd.f32 %v1112_v35, %v4527_v8  ;;  %v1111_v54 = vsel %vm1095_vm13, %v4531_v49, 0.0  ;;  %v4675_v40 = vsel %vm1095_vm13, -3e+38, %v4531_v49  ;;  %1173 = vmax.xlane.f32.xlu1 %v4667_v57 }
 0x670   :  { %v4679_v30 = vadd.f32 %v1111_v54, %v4535_v50  ;;  %v1082_v53 = vpop.xlane.xlu1 %1081  ;;  %1171 = vmax.xlane.f32.xlu0 %v4675_v40 }
 0x671   :  { %vm1098_vm0 = vcmp.ge.f32.partialorder %v4541_v6, %v1082_v53  ;;  %v1080_v29 = vpop.xlane.xlu0 %1079 }
 0x672   :  { %v1114_v23 = vsel %vm1098_vm0, %v4541_v6, 0.0  ;;  %v4685_v8 = vsel %vm1098_vm0, -3e+38, %v4541_v6  ;;  %vm1097_vm1 = vcmp.ge.f32.partialorder %v4549_v7, %v1080_v29 }
 0x673   :  { %v4689_v49 = vadd.f32 %v1114_v23, %v4545_v22  ;;  %v1113_v12 = vsel %vm1097_vm1, %v4549_v7, 0.0  ;;  %v4693_v50 = vsel %vm1097_vm1, -3e+38, %v4549_v7  ;;  %1177 = vmax.xlane.f32.xlu1 %v4685_v8 }
 0x674   :  { %v4697_v20 = vadd.f32 %v1113_v12, %v4553_v62  ;;  %1175 = vmax.xlane.f32.xlu0 %v4693_v50 }
 0x6e4   :  { %v1150_v43 = vpop.xlane.xlu1 %1149 }
 0x6e5   :  { %vm1180_vm15 = vcmp.ge.f32.partialorder %v4559_v55, %v1150_v43  ;;  %v1148_v6 = vpop.xlane.xlu0 %1147 }
 0x6e6   :  { %v1196_v10 = vsel %vm1180_vm15, %v4559_v55, 0.0  ;;  %v4703_v22 = vsel %vm1180_vm15, -3e+38, %v4559_v55  ;;  %vm1179_vm2 = vcmp.ge.f32.partialorder %v4567_v5, %v1148_v6 }
 0x6e7   :  { %v4707_v7 = vadd.f32 %v1196_v10, %v4563_v37  ;;  %v1195_v18 = vsel %vm1179_vm2, %v4567_v5, 0.0  ;;  %v4711_v62 = vsel %vm1179_vm2, -3e+38, %v4567_v5  ;;  %1245 = vmax.xlane.f32.xlu1 %v4703_v22 }
 0x6e8   :  { %v4715_v34 = vadd.f32 %v1195_v18, %v4571_v9  ;;  %v1154_v59 = vpop.xlane.xlu1 %1153  ;;  %1243 = vmax.xlane.f32.xlu0 %v4711_v62 }
 0x6e9   :  { %vm1182_vm3 = vcmp.ge.f32.partialorder %v4577_v39, %v1154_v59  ;;  %v1152_v55 = vpop.xlane.xlu0 %1151 }
 0x6ea   :  { %v1198_v58 = vsel %vm1182_vm3, %v4577_v39, 0.0  ;;  %v4721_v37 = vsel %vm1182_vm3, -3e+38, %v4577_v39  ;;  %vm1181_vm4 = vcmp.ge.f32.partialorder %v4585_v61, %v1152_v55 }
 0x6eb   :  { %v4725_v5 = vadd.f32 %v1198_v58, %v4581_v60  ;;  %v1197_v28 = vsel %vm1181_vm4, %v4585_v61, 0.0  ;;  %v4729_v9 = vsel %vm1181_vm4, -3e+38, %v4585_v61  ;;  %1249 = vmax.xlane.f32.xlu1 %v4721_v37 }
 0x6ec   :  { %v4733_v25 = vadd.f32 %v1197_v28, %v4589_v51  ;;  %v1158_v63 = vpop.xlane.xlu1 %1157  ;;  %1247 = vmax.xlane.f32.xlu0 %v4729_v9 }
 0x6ed   :  { %vm1184_vm5 = vcmp.ge.f32.partialorder %v4595_v4, %v1158_v63  ;;  %v1156_v39 = vpop.xlane.xlu0 %1155 }
 0x6ee   :  { %v1200_v19 = vsel %vm1184_vm5, %v4595_v4, 0.0  ;;  %v4739_v60 = vsel %vm1184_vm5, -3e+38, %v4595_v4  ;;  %vm1183_vm6 = vcmp.ge.f32.partialorder %v4603_v13, %v1156_v39 }
 0x6ef   :  { %v4743_v61 = vadd.f32 %v1200_v19, %v4599_v52  ;;  %v1199_v45 = vsel %vm1183_vm6, %v4603_v13, 0.0  ;;  %v4747_v51 = vsel %vm1183_vm6, -3e+38, %v4603_v13  ;;  %1253 = vmax.xlane.f32.xlu1 %v4739_v60 }
 0x6f0   :  { %v4751_v56 = vadd.f32 %v1199_v45, %v4607_v15  ;;  %v1162_v44 = vpop.xlane.xlu1 %1161  ;;  %1251 = vmax.xlane.f32.xlu0 %v4747_v51 }
 0x6f1   :  { %vm1186_vm7 = vcmp.ge.f32.partialorder %v4613_v1, %v1162_v44  ;;  %v1160_v4 = vpop.xlane.xlu0 %1159 }
 0x6f2   :  { %v1202_v42 = vsel %vm1186_vm7, %v4613_v1, 0.0  ;;  %v4757_v52 = vsel %vm1186_vm7, -3e+38, %v4613_v1  ;;  %vm1185_vm8 = vcmp.ge.f32.partialorder %v4621_v27, %v1160_v4 }
 0x6f3   :  { %v4761_v13 = vadd.f32 %v1202_v42, %v4617_v17  ;;  %v1201_v35 = vsel %vm1185_vm8, %v4621_v27, 0.0  ;;  %v4765_v15 = vsel %vm1185_vm8, -3e+38, %v4621_v27  ;;  %1257 = vmax.xlane.f32.xlu1 %v4757_v52 }
 0x6f4   :  { %v4769_v54 = vadd.f32 %v1201_v35, %v4625_v14  ;;  %v1166_v53 = vpop.xlane.xlu1 %1165  ;;  %1255 = vmax.xlane.f32.xlu0 %v4765_v15 }
 0x6f5   :  { %vm1188_vm9 = vcmp.ge.f32.partialorder %v4631_v0, %v1166_v53  ;;  %v1164_v1 = vpop.xlane.xlu0 %1163 }
 0x6f6   :  { %v1204_v29 = vsel %vm1188_vm9, %v4631_v0, 0.0  ;;  %v4775_v17 = vsel %vm1188_vm9, -3e+38, %v4631_v0  ;;  %vm1187_vm10 = vcmp.ge.f32.partialorder %v4639_v24, %v1164_v1 }
 0x6f7   :  { %v4779_v27 = vadd.f32 %v1204_v29, %v4635_v2  ;;  %v1203_v23 = vsel %vm1187_vm10, %v4639_v24, 0.0  ;;  %v4783_v14 = vsel %vm1187_vm10, -3e+38, %v4639_v24  ;;  %1261 = vmax.xlane.f32.xlu1 %v4775_v17 }
 0x6f8   :  { %v4787_v12 = vadd.f32 %v1203_v23, %v4643_v3  ;;  %v1170_v43 = vpop.xlane.xlu1 %1169  ;;  %1259 = vmax.xlane.f32.xlu0 %v4783_v14 }
 0x6f9   :  { %vm1190_vm11 = vcmp.ge.f32.partialorder %v4649_v47, %v1170_v43  ;;  %v1168_v0 = vpop.xlane.xlu0 %1167 }
 0x6fa   :  { %v1206_v6 = vsel %vm1190_vm11, %v4649_v47, 0.0  ;;  %v4793_v2 = vsel %vm1190_vm11, -3e+38, %v4649_v47  ;;  %vm1189_vm12 = vcmp.ge.f32.partialorder %v4657_v33, %v1168_v0 }
 0x6fb   :  { %v4797_v24 = vadd.f32 %v1206_v6, %v4653_v32  ;;  %v1205_v10 = vsel %vm1189_vm12, %v4657_v33, 0.0  ;;  %v4801_v3 = vsel %vm1189_vm12, -3e+38, %v4657_v33  ;;  %1265 = vmax.xlane.f32.xlu1 %v4793_v2 }
 0x6fc   :  { %v4805_v18 = vadd.f32 %v1205_v10, %v4661_v38  ;;  %v1174_v59 = vpop.xlane.xlu1 %1173  ;;  %1263 = vmax.xlane.f32.xlu0 %v4801_v3 }
 0x6fd   :  { %vm1192_vm14 = vcmp.ge.f32.partialorder %v4667_v57, %v1174_v59  ;;  %v1172_v47 = vpop.xlane.xlu0 %1171 }
 0x6fe   :  { %v1208_v55 = vsel %vm1192_vm14, %v4667_v57, 0.0  ;;  %v4811_v32 = vsel %vm1192_vm14, -3e+38, %v4667_v57  ;;  %vm1191_vm13 = vcmp.ge.f32.partialorder %v4675_v40, %v1172_v47 }
 0x6ff   :  { %v4815_v33 = vadd.f32 %v1208_v55, %v4671_v48  ;;  %v1207_v58 = vsel %vm1191_vm13, %v4675_v40, 0.0  ;;  %v4819_v38 = vsel %vm1191_vm13, -3e+38, %v4675_v40  ;;  %1269 = vmax.xlane.f32.xlu1 %v4811_v32 }
 0x700   :  { %v4823_v28 = vadd.f32 %v1207_v58, %v4679_v30  ;;  %v1178_v63 = vpop.xlane.xlu1 %1177  ;;  %1267 = vmax.xlane.f32.xlu0 %v4819_v38 }
 0x701   :  { %vm1194_vm0 = vcmp.ge.f32.partialorder %v4685_v8, %v1178_v63  ;;  %v1176_v57 = vpop.xlane.xlu0 %1175 }
 0x702   :  { %v1210_v39 = vsel %vm1194_vm0, %v4685_v8, 0.0  ;;  %v4829_v48 = vsel %vm1194_vm0, -3e+38, %v4685_v8  ;;  %vm1193_vm1 = vcmp.ge.f32.partialorder %v4693_v50, %v1176_v57 }
 0x703   :  { %v4833_v40 = vadd.f32 %v1210_v39, %v4689_v49  ;;  %v1209_v19 = vsel %vm1193_vm1, %v4693_v50, 0.0  ;;  %v4837_v30 = vsel %vm1193_vm1, -3e+38, %v4693_v50  ;;  %1273 = vmax.xlane.f32.xlu1 %v4829_v48 }
 0x704   :  { %v4841_v45 = vadd.f32 %v1209_v19, %v4697_v20  ;;  %1271 = vmax.xlane.f32.xlu0 %v4837_v30 }
 0x705   :  { %3317 = shalt.err (!%p3314_p1)  }
 0x706   :  { %s3318_s19 = scalar_lea.vmem %s84_s8, 1024  ;;  %p3323_p3 = scmp.lt.s32.totalorder %s84_s8, %s84_s8 }
 0x707   :  { %p3319_p2 = scmp.ne.s32.totalorder %s84_s8, %s3318_s19  ;;  %p3324_p4 = scmp.lt.s32.totalorder %s3318_s19, %s3318_s19 }
 0x709   :  { %p3325_p5 = por %p3324_p4, %p3323_p3 }
 0x70b   :  { %p3326_p6 = pnand %p3325_p5, %p3319_p2 }
 0x70d   :  { %3329 = shalt.err (!%p3326_p6)  }
 0x70e   :  { %86 = dma.hbm_to_vmem [thread:$0]  %s6415_s4, 1024, %s84_s8, [#allocation4] }
 0x70f   :  { %s3330_s1 = scalar_lea.hbm %s6416_s5, 1024 }
 0x710   :  { %p3331_p7 = scmp.ne.s32.totalorder %s6416_s5, %s3330_s1  ;;  %p3334_p8 = scmp.lt.u32.totalorder %s3330_s1, %s6416_s5 }
 0x712   :  { %p3336_p9 = pnand %p3334_p8, %p3331_p7 }
 0x714   :  { %3339 = shalt.err (!%p3336_p9)  }
 0x715   :  { %s3340_s9 = scalar_lea.vmem %s96_s10, 1024  ;;  %p3345_p11 = scmp.lt.s32.totalorder %s96_s10, %s96_s10 }
 0x716   :  { %p3341_p10 = scmp.ne.s32.totalorder %s96_s10, %s3340_s9  ;;  %p3346_p12 = scmp.lt.s32.totalorder %s3340_s9, %s3340_s9 }
 0x718   :  { %p3347_p13 = por %p3346_p12, %p3345_p11 }
 0x71a   :  { %p3348_p0 = pnand %p3347_p13, %p3341_p10 }
 0x71c   :  { %3351 = shalt.err (!%p3348_p0)  }
 0x71d   :  { %98 = dma.hbm_to_vmem [thread:$0]  %s6416_s5, 1024, %s96_s10, [#allocation4 + $0x1] }
 0x774   :  { %v1246_v8 = vpop.xlane.xlu1 %1245 }
 0x775   :  { %vm1276_vm15 = vcmp.ge.f32.partialorder %v4703_v22, %v1246_v8  ;;  %v1244_v49 = vpop.xlane.xlu0 %1243 }
 0x776   :  { %v1292_v50 = vsel %vm1276_vm15, %v4703_v22, 0.0  ;;  %vm1275_vm2 = vcmp.ge.f32.partialorder %v4711_v62, %v1244_v49 }
 0x777   :  { %v4872_v20 = vadd.f32 %v1292_v50, %v4707_v7  ;;  %v1291_v44 = vsel %vm1275_vm2, %v4711_v62, 0.0 }
 0x778   :  { %v4876_v4 = vadd.f32 %v1291_v44, %v4715_v34  ;;  %v1250_v42 = vpop.xlane.xlu1 %1249 }
 0x779   :  { %vm1278_vm3 = vcmp.ge.f32.partialorder %v4721_v37, %v1250_v42  ;;  %v1248_v35 = vpop.xlane.xlu0 %1247 }
 0x77a   :  { %v1294_v53 = vsel %vm1278_vm3, %v4721_v37, 0.0  ;;  %vm1277_vm4 = vcmp.ge.f32.partialorder %v4729_v9, %v1248_v35 }
 0x77b   :  { %v4882_v22 = vadd.f32 %v1294_v53, %v4725_v5  ;;  %v1293_v1 = vsel %vm1277_vm4, %v4729_v9, 0.0 }
 0x77c   :  { %v4886_v7 = vadd.f32 %v1293_v1, %v4733_v25  ;;  %v1254_v62 = vpop.xlane.xlu1 %1253 }
 0x77d   :  { %vm1280_vm5 = vcmp.ge.f32.partialorder %v4739_v60, %v1254_v62  ;;  %v1252_v34 = vpop.xlane.xlu0 %1251 }
 0x77e   :  { %v1296_v29 = vsel %vm1280_vm5, %v4739_v60, 0.0  ;;  %vm1279_vm6 = vcmp.ge.f32.partialorder %v4747_v51, %v1252_v34 }
 0x77f   :  { %v4892_v37 = vadd.f32 %v1296_v29, %v4743_v61  ;;  %v1295_v23 = vsel %vm1279_vm6, %v4747_v51, 0.0 }
 0x780   :  { %v4896_v5 = vadd.f32 %v1295_v23, %v4751_v56  ;;  %v1258_v9 = vpop.xlane.xlu1 %1257 }
 0x781   :  { %vm1282_vm7 = vcmp.ge.f32.partialorder %v4757_v52, %v1258_v9  ;;  %v1256_v25 = vpop.xlane.xlu0 %1255 }
 0x782   :  { %v1298_v43 = vsel %vm1282_vm7, %v4757_v52, 0.0  ;;  %vm1281_vm8 = vcmp.ge.f32.partialorder %v4765_v15, %v1256_v25 }
 0x783   :  { %v4902_v60 = vadd.f32 %v1298_v43, %v4761_v13  ;;  %v1297_v0 = vsel %vm1281_vm8, %v4765_v15, 0.0 }
 0x784   :  { %v4906_v61 = vadd.f32 %v1297_v0, %v4769_v54  ;;  %v1262_v51 = vpop.xlane.xlu1 %1261 }
 0x785   :  { %vm1284_vm9 = vcmp.ge.f32.partialorder %v4775_v17, %v1262_v51  ;;  %v1260_v56 = vpop.xlane.xlu0 %1259 }
 0x786   :  { %v1300_v6 = vsel %vm1284_vm9, %v4775_v17, 0.0  ;;  %vm1283_vm10 = vcmp.ge.f32.partialorder %v4783_v14, %v1260_v56 }
 0x787   :  { %v4912_v52 = vadd.f32 %v1300_v6, %v4779_v27  ;;  %v1299_v10 = vsel %vm1283_vm10, %v4783_v14, 0.0 }
 0x788   :  { %v4916_v13 = vadd.f32 %v1299_v10, %v4787_v12  ;;  %v1266_v15 = vpop.xlane.xlu1 %1265 }
 0x789   :  { %6456 = vst [vmem:[#allocation35_spill] sm:$0xff] %v4912_v52  ;;  %vm1286_vm11 = vcmp.ge.f32.partialorder %v4793_v2, %v1266_v15  ;;  %v1264_v54 = vpop.xlane.xlu0 %1263 }
 0x78a   :  { %6457 = vst [vmem:[#allocation36_spill] sm:$0xff] %v4916_v13  ;;  %v1302_v59 = vsel %vm1286_vm11, %v4793_v2, 0.0  ;;  %vm1285_vm12 = vcmp.ge.f32.partialorder %v4801_v3, %v1264_v54 }
 0x78b   :  { %v4922_v17 = vadd.f32 %v1302_v59, %v4797_v24  ;;  %v1301_v47 = vsel %vm1285_vm12, %v4801_v3, 0.0 }
 0x78c   :  { %v4926_v27 = vadd.f32 %v1301_v47, %v4805_v18  ;;  %v1270_v14 = vpop.xlane.xlu1 %1269 }
 0x78d   :  { %6458 = vst [vmem:[#allocation37_spill] sm:$0xff] %v4922_v17  ;;  %vm1288_vm14 = vcmp.ge.f32.partialorder %v4811_v32, %v1270_v14  ;;  %v1268_v12 = vpop.xlane.xlu0 %1267 }
 0x78e   :  { %6459 = vst [vmem:[#allocation38_spill] sm:$0xff] %v4926_v27  ;;  %v1304_v55 = vsel %vm1288_vm14, %v4811_v32, 0.0  ;;  %vm1287_vm13 = vcmp.ge.f32.partialorder %v4819_v38, %v1268_v12 }
 0x78f   :  { %v4932_v2 = vadd.f32 %v1304_v55, %v4815_v33  ;;  %v1303_v58 = vsel %vm1287_vm13, %v4819_v38, 0.0  ;;  %v1401_v38 = vmul.f32 %v3529_v11, %v3529_v11 }
 0x790   :  { %v4936_v24 = vadd.f32 %v1303_v58, %v4823_v28  ;;  %v1274_v3 = vpop.xlane.xlu1 %1273  ;;  %v1403_v28 = vmul.f32 %v3545_v21, %v3545_v21 }
 0x791   :  { %6460 = vst [vmem:[#allocation39_spill] sm:$0xff] %v4932_v2  ;;  %vm1290_vm0 = vcmp.ge.f32.partialorder %v4829_v48, %v1274_v3  ;;  %v1272_v18 = vpop.xlane.xlu0 %1271 }
 0x792   :  { %6461 = vst [vmem:[#allocation40_spill] sm:$0xff] %v4936_v24  ;;  %v1306_v63 = vsel %vm1290_vm0, %v4829_v48, 0.0  ;;  %vm1289_vm1 = vcmp.ge.f32.partialorder %v4837_v30, %v1272_v18 }
 0x793   :  { %v4942_v32 = vadd.f32 %v1306_v63, %v4833_v40  ;;  %v1305_v57 = vsel %vm1289_vm1, %v4837_v30, 0.0 }
 0x794   :  { %v4946_v33 = vadd.f32 %v1305_v57, %v4841_v45 }
 0x795   :  { %6462 = vst [vmem:[#allocation41_spill] sm:$0xff] %v4942_v32 }
 0x796   :  { %6463 = vst [vmem:[#allocation42_spill] sm:$0xff] %v4946_v33 }
 0x797   :  { %3380 = dma.done.wait [#allocation4], 1024 }
 0x798   :  { %3381 = vsyncadd [#allocation4], 4294966272  ;;  %1417 = vadd.xlane.f32.xlu0 %v1401_v38  ;;  %1421 = vadd.xlane.f32.xlu1 %v1403_v28  ;;  %v1402_v39 = vmul.f32 %v3537_v16, %v3537_v16  ;;  %v1404_v48 = vmul.f32 %v3553_v26, %v3553_v26  ;;  %v1406_v40 = vmul.f32 %v3569_v36, %v3569_v36  ;;  %v6464_v8 = vld [vmem:[#allocation27_spill] sm:$0xff]  ;;  %v6465_v50 = vld [vmem:[#allocation26_spill] sm:$0xff] }
 0x799   :  { %v1405_v19 = vmul.f32 %v3561_v31, %v3561_v31  ;;  %v1408_v30 = vmul.f32 %v3585_v46, %v3585_v46  ;;  %v1407_v45 = vmul.f32 %v3577_v41, %v3577_v41  ;;  %v1410_v49 = vmul.f32 %v6464_v8, %v6464_v8  ;;  %v6466_v42 = vld [vmem:[#allocation29_spill] sm:$0xff]  ;;  %v6467_v53 = vld [vmem:[#allocation28_spill] sm:$0xff]  ;;  %v6468_v62 = vld [vmem:[#allocation31_spill] sm:$0xff] }
 0x79a   :  { %v1409_v44 = vmul.f32 %v6465_v50, %v6465_v50  ;;  %v1412_v35 = vmul.f32 %v6466_v42, %v6466_v42  ;;  %v1411_v1 = vmul.f32 %v6467_v53, %v6467_v53  ;;  %v1414_v34 = vmul.f32 %v6468_v62, %v6468_v62  ;;  %v6469_v29 = vld [vmem:[#allocation30_spill] sm:$0xff]  ;;  %v6470_v9 = vld [vmem:[#allocation33_spill] sm:$0xff]  ;;  %v6471_v43 = vld [vmem:[#allocation32_spill] sm:$0xff] }
 0x79b   :  { %v1413_v23 = vmul.f32 %v6469_v29, %v6469_v29  ;;  %v1416_v25 = vmul.f32 %v6470_v9, %v6470_v9  ;;  %v1415_v0 = vmul.f32 %v6471_v43, %v6471_v43 }
 0x79c   :  { %1419 = vadd.xlane.f32.xlu0 %v1402_v39  ;;  %1423 = vadd.xlane.f32.xlu1 %v1404_v48 }
 0x7a0   :  { %1427 = vadd.xlane.f32.xlu1 %v1406_v40  ;;  %1425 = vadd.xlane.f32.xlu0 %v1405_v19 }
 0x7a4   :  { %1431 = vadd.xlane.f32.xlu1 %v1408_v30  ;;  %1429 = vadd.xlane.f32.xlu0 %v1407_v45 }
 0x7a8   :  { %1435 = vadd.xlane.f32.xlu1 %v1410_v49  ;;  %1433 = vadd.xlane.f32.xlu0 %v1409_v44 }
 0x7ac   :  { %1439 = vadd.xlane.f32.xlu1 %v1412_v35  ;;  %1437 = vadd.xlane.f32.xlu0 %v1411_v1 }
 0x7b0   :  { %1443 = vadd.xlane.f32.xlu1 %v1414_v34  ;;  %1441 = vadd.xlane.f32.xlu0 %v1413_v23 }
 0x7b4   :  { %1447 = vadd.xlane.f32.xlu1 %v1416_v25  ;;  %1445 = vadd.xlane.f32.xlu0 %v1415_v0 }
 0x825   :  { %v1418_v51 = vpop.xlane.xlu0 %1417  ;;  %v1422_v56 = vpop.xlane.xlu1 %1421 }
 0x826   :  { %v1449_v6 = vmax.f32 %v1418_v51, 1e-24  ;;  %v1451_v10 = vmax.f32 %v1422_v56, 1e-24 }
 0x828   :  { %3200 = vrsqrt.f32 %v1449_v6 }
 0x829   :  { %3202 = vrsqrt.f32 %v1451_v10  ;;  %v1420_v15 = vpop.xlane.xlu0 %1419  ;;  %v1424_v54 = vpop.xlane.xlu1 %1423 }
 0x82a   :  { %v1450_v59 = vmax.f32 %v1420_v15, 1e-24  ;;  %v1452_v47 = vmax.f32 %v1424_v54, 1e-24 }
 0x82c   :  { %3204 = vrsqrt.f32 %v1450_v59 }
 0x82d   :  { %3206 = vrsqrt.f32 %v1452_v47  ;;  %v1428_v14 = vpop.xlane.xlu1 %1427  ;;  %v1426_v12 = vpop.xlane.xlu0 %1425 }
 0x82e   :  { %v1454_v55 = vmax.f32 %v1428_v14, 1e-24  ;;  %v1453_v58 = vmax.f32 %v1426_v12, 1e-24 }
 0x830   :  { %3208 = vrsqrt.f32 %v1454_v55 }
 0x831   :  { %3210 = vrsqrt.f32 %v1453_v58  ;;  %v1432_v3 = vpop.xlane.xlu1 %1431  ;;  %v1430_v18 = vpop.xlane.xlu0 %1429 }
 0x832   :  { %v3201_v63 = vpop.eup %3200  ;;  %v1456_v28 = vmax.f32 %v1432_v3, 1e-24  ;;  %v1455_v39 = vmax.f32 %v1430_v18, 1e-24 }
 0x833   :  { %v3203_v57 = vpop.eup %3202  ;;  %v1481_v38 = vmul.f32 %v3201_v63, %v3529_v11 }
 0x834   :  { %v4982_v40 = vmul.f32 %v3203_v57, %v3545_v21  ;;  %3212 = vrsqrt.f32 %v1456_v28 }
 0x835   :  { %2955 = vmatprep.mubr.f32.mxu0 %v1481_v38  ;;  %3214 = vrsqrt.f32 %v1455_v39  ;;  %v1436_v49 = vpop.xlane.xlu1 %1435  ;;  %v1434_v11 = vpop.xlane.xlu0 %1433 }
 0x836   :  { %v3205_v48 = vpop.eup %3204  ;;  %v1458_v21 = vmax.f32 %v1436_v49, 1e-24  ;;  %v1457_v23 = vmax.f32 %v1434_v11, 1e-24 }
 0x837   :  { %v3207_v19 = vpop.eup %3206  ;;  %v4985_v30 = vmul.f32 %v3205_v48, %v3537_v16 }
 0x838   :  { %v4988_v45 = vmul.f32 %v3207_v19, %v3553_v26  ;;  %3216 = vrsqrt.f32 %v1458_v21 }
 0x839   :  { %v3107_v44 = vpack.c.bf16 %v4985_v30, %v1481_v38  ;;  %3218 = vrsqrt.f32 %v1457_v23  ;;  %v1440_v25 = vpop.xlane.xlu1 %1439  ;;  %v1438_v56 = vpop.xlane.xlu0 %1437 }
 0x83a   :  { %v3209_v35 = vpop.eup %3208  ;;  %v3111_v1 = vpack.c.bf16 %v4988_v45, %v4982_v40  ;;  %v1460_v10 = vmax.f32 %v1440_v25, 1e-24  ;;  %v1459_v15 = vmax.f32 %v1438_v56, 1e-24 }
 0x83b   :  { %v3211_v34 = vpop.eup %3210  ;;  %3108 = vmatprep.subr.bf16.mxu0 %v3107_v44  ;;  %v4994_v16 = vmul.f32 %v3209_v35, %v3569_v36 }
 0x83c   :  { %3110 = vmatpush3.bf16.xpose.msra.mxu0 %v3107_v44  ;;  %v4997_v26 = vmul.f32 %v3211_v34, %v3561_v31  ;;  %3220 = vrsqrt.f32 %v1460_v10 }
 0x83d   :  { %3112 = vmatprep.subr.bf16.mxu0 %v3111_v1  ;;  %3222 = vrsqrt.f32 %v1459_v15  ;;  %v1444_v31 = vpop.xlane.xlu1 %1443  ;;  %v1442_v14 = vpop.xlane.xlu0 %1441 }
 0x83e   :  { %v3213_v0 = vpop.eup %3212  ;;  %v3115_v51 = vpack.c.bf16 %v4994_v16, %v4997_v26  ;;  %v1462_v55 = vmax.f32 %v1444_v31, 1e-24  ;;  %v1461_v58 = vmax.f32 %v1442_v14, 1e-24 }
 0x83f   :  { %v3215_v6 = vpop.eup %3214  ;;  %v1488_v54 = vmul.f32 %v3213_v0, %v3585_v46 }
 0x840   :  { %v1487_v36 = vmul.f32 %v3215_v6, %v3577_v41  ;;  %3224 = vrsqrt.f32 %v1462_v55 }
 0x841   :  { %3226 = vrsqrt.f32 %v1461_v58  ;;  %v1448_v46 = vpop.xlane.xlu1 %1447  ;;  %v1446_v57 = vpop.xlane.xlu0 %1445 }
 0x842   :  { %v3217_v59 = vpop.eup %3216  ;;  %v3119_v47 = vpack.c.bf16 %v1488_v54, %v1487_v36  ;;  %v1464_v28 = vmax.f32 %v1448_v46, 1e-24  ;;  %v1463_v39 = vmax.f32 %v1446_v57, 1e-24 }
 0x843   :  { %v3219_v12 = vpop.eup %3218  ;;  %v1490_v3 = vmul.f32 %v3217_v59, %v6464_v8 }
 0x844   :  { %3114 = vmatpush3.bf16.xpose.msra.mxu0 %v3111_v1  ;;  %v1489_v18 = vmul.f32 %v3219_v12, %v6465_v50  ;;  %3228 = vrsqrt.f32 %v1464_v28 }
 0x845   :  { %3116 = vmatprep.subr.bf16.mxu0 %v3115_v51  ;;  %3230 = vrsqrt.f32 %v1463_v39 }
 0x846   :  { %v3221_v41 = vpop.eup %3220  ;;  %v3123_v63 = vpack.c.bf16 %v1490_v3, %v1489_v18 }
 0x847   :  { %v3223_v38 = vpop.eup %3222  ;;  %v1492_v48 = vmul.f32 %v3221_v41, %v6466_v42 }
 0x848   :  { %v1491_v19 = vmul.f32 %v3223_v38, %v6467_v53 }
 0x84a   :  { %v3225_v8 = vpop.eup %3224  ;;  %v3127_v50 = vpack.c.bf16 %v1492_v48, %v1491_v19 }
 0x84b   :  { %v3227_v49 = vpop.eup %3226  ;;  %v1494_v44 = vmul.f32 %v3225_v8, %v6468_v62 }
 0x84c   :  { %3118 = vmatpush3.bf16.xpose.msra.mxu0 %v3115_v51  ;;  %v1493_v11 = vmul.f32 %v3227_v49, %v6469_v29  ;;  %v6472_v29 = vld [vmem:[#allocation34_spill] sm:$0xff] }
 0x84d   :  { %3120 = vmatprep.subr.bf16.mxu0 %v3119_v47 }
 0x84e   :  { %v3229_v35 = vpop.eup %3228  ;;  %v3131_v1 = vpack.c.bf16 %v1494_v44, %v1493_v11 }
 0x84f   :  { %v3231_v34 = vpop.eup %3230  ;;  %v1496_v42 = vmul.f32 %v3229_v35, %v6470_v9 }
 0x850   :  { %v1495_v53 = vmul.f32 %v3231_v34, %v6471_v43 }
 0x852   :  { %v3135_v21 = vpack.c.bf16 %v1496_v42, %v1495_v53 }
 0x854   :  { %3122 = vmatpush3.bf16.xpose.msra.mxu0 %v3119_v47 }
 0x855   :  { %3124 = vmatprep.subr.bf16.mxu0 %v3123_v63 }
 0x85c   :  { %3126 = vmatpush3.bf16.xpose.msra.mxu0 %v3123_v63 }
 0x85d   :  { %3128 = vmatprep.subr.bf16.mxu0 %v3127_v50 }
 0x864   :  { %3130 = vmatpush3.bf16.xpose.msra.mxu0 %v3127_v50 }
 0x865   :  { %3132 = vmatprep.subr.bf16.mxu0 %v3131_v1 }
 0x86c   :  { %3134 = vmatpush3.bf16.xpose.msra.mxu0 %v3131_v1 }
 0x86d   :  { %3136 = vmatprep.subr.bf16.mxu0 %v3135_v21 }
 0x874   :  { %3138 = vmatpush3.bf16.xpose.msra.mxu0 %v3135_v21 }
 0x87b   :  { %2956 = vmatmul.mubr.f32.vlgmr.msra.gmra.mrb[32].mxu0 %v4985_v30 }
 0x87c   :  { %2958 = vmatprep.mubr.f32.mxu0 %v4982_v40 }
 0x87f   :  { %2959 = vmatmul.mubr.f32.gmra.mrb[34].mxu0 %v4988_v45 }
 0x880   :  { %2961 = vmatprep.mubr.f32.mxu0 %v4997_v26 }
 0x883   :  { %2962 = vmatmul.mubr.f32.gmra.mrb[36].mxu0 %v4994_v16 }
 0x884   :  { %2964 = vmatprep.mubr.f32.mxu0 %v1487_v36 }
 0x887   :  { %2965 = vmatmul.mubr.f32.gmra.mrb[38].mxu0 %v1488_v54 }
 0x888   :  { %2967 = vmatprep.mubr.f32.mxu0 %v1489_v18 }
 0x88b   :  { %2968 = vmatmul.mubr.f32.gmra.mrb[40].mxu0 %v1490_v3 }
 0x88c   :  { %2970 = vmatprep.mubr.f32.mxu0 %v1491_v19 }
 0x88f   :  { %2971 = vmatmul.mubr.f32.gmra.mrb[42].mxu0 %v1492_v48 }
 0x890   :  { %2973 = vmatprep.mubr.f32.mxu0 %v1493_v11 }
 0x893   :  { %2974 = vmatmul.mubr.f32.gmra.mrb[44].mxu0 %v1494_v44 }
 0x894   :  { %2976 = vmatprep.mubr.f32.mxu0 %v1495_v53 }
 0x897   :  { %2977 = vmatmul.mubr.f32.gmra.mrb[46].mxu0 %v1496_v42 }
 0x94e   :  { %v2957_v62 = vpop.f32.mrb[32].mxu0 }
 0x94f   :  { %v5017_v9 = vadd.f32 %v2957_v62, %v6472_v29  ;;  %v1563_v43 = vpop.f32.mrb[33].mxu0 }
 0x950   :  { %v5020_v40 = vadd.f32 %v1563_v43, %v6472_v29 }
 0x951   :  { %1644 = vmax.xlane.f32.xlu1 %v5017_v9 }
 0x952   :  { %v2960_v30 = vpop.f32.mrb[34].mxu0  ;;  %1642 = vmax.xlane.f32.xlu0 %v5020_v40 }
 0x953   :  { %v5025_v45 = vadd.f32 %v2960_v30, %v6472_v29  ;;  %v1573_v23 = vpop.f32.mrb[35].mxu0 }
 0x954   :  { %v5028_v16 = vadd.f32 %v1573_v23, %v6472_v29 }
 0x955   :  { %1648 = vmax.xlane.f32.xlu1 %v5025_v45 }
 0x956   :  { %v2963_v26 = vpop.f32.mrb[36].mxu0  ;;  %1646 = vmax.xlane.f32.xlu0 %v5028_v16 }
 0x957   :  { %v5033_v25 = vadd.f32 %v2963_v26, %v6472_v29  ;;  %v1583_v0 = vpop.f32.mrb[37].mxu0 }
 0x958   :  { %v5036_v51 = vadd.f32 %v1583_v0, %v6472_v29 }
 0x959   :  { %1652 = vmax.xlane.f32.xlu1 %v5033_v25 }
 0x95a   :  { %v2966_v56 = vpop.f32.mrb[38].mxu0  ;;  %1650 = vmax.xlane.f32.xlu0 %v5036_v51 }
 0x95b   :  { %v5041_v6 = vadd.f32 %v2966_v56, %v6472_v29  ;;  %v1593_v10 = vpop.f32.mrb[39].mxu0 }
 0x95c   :  { %v5044_v15 = vadd.f32 %v1593_v10, %v6472_v29 }
 0x95d   :  { %1656 = vmax.xlane.f32.xlu1 %v5041_v6 }
 0x95e   :  { %v2969_v54 = vpop.f32.mrb[40].mxu0  ;;  %1654 = vmax.xlane.f32.xlu0 %v5044_v15 }
 0x95f   :  { %v5049_v36 = vadd.f32 %v2969_v54, %v6472_v29  ;;  %v1603_v31 = vpop.f32.mrb[41].mxu0 }
 0x960   :  { %v5052_v59 = vadd.f32 %v1603_v31, %v6472_v29 }
 0x961   :  { %1660 = vmax.xlane.f32.xlu1 %v5049_v36 }
 0x962   :  { %v2972_v47 = vpop.f32.mrb[42].mxu0  ;;  %1658 = vmax.xlane.f32.xlu0 %v5052_v59 }
 0x963   :  { %v5057_v14 = vadd.f32 %v2972_v47, %v6472_v29  ;;  %v1613_v12 = vpop.f32.mrb[43].mxu0 }
 0x964   :  { %v5060_v55 = vadd.f32 %v1613_v12, %v6472_v29 }
 0x965   :  { %1664 = vmax.xlane.f32.xlu1 %v5057_v14 }
 0x966   :  { %v2975_v58 = vpop.f32.mrb[44].mxu0  ;;  %1662 = vmax.xlane.f32.xlu0 %v5060_v55 }
 0x967   :  { %v5065_v3 = vadd.f32 %v2975_v58, %v6472_v29  ;;  %v1623_v18 = vpop.f32.mrb[45].mxu0 }
 0x968   :  { %v5068_v46 = vadd.f32 %v1623_v18, %v6472_v29 }
 0x969   :  { %1668 = vmax.xlane.f32.xlu1 %v5065_v3 }
 0x96a   :  { %v2978_v41 = vpop.f32.mrb[46].mxu0  ;;  %1666 = vmax.xlane.f32.xlu0 %v5068_v46 }
 0x96b   :  { %v5073_v63 = vadd.f32 %v2978_v41, %v6472_v29  ;;  %v1633_v57 = vpop.f32.mrb[47].mxu0 }
 0x96c   :  { %v5076_v38 = vadd.f32 %v1633_v57, %v6472_v29 }
 0x96d   :  { %1672 = vmax.xlane.f32.xlu1 %v5073_v63 }
 0x96e   :  { %1670 = vmax.xlane.f32.xlu0 %v5076_v38 }
 0x9de   :  { %v5080_v28 = vpop.xlane.xlu1 %1644 }
 0x9df   :  { %vm1675_vm15 = vcmp.ge.f32.partialorder %v5017_v9, %v5080_v28  ;;  %v5084_v39 = vpop.xlane.xlu0 %1642 }
 0x9e0   :  { %v5090_v48 = vsel %vm1675_vm15, -3e+38, %v5017_v9  ;;  %vm1674_vm2 = vcmp.ge.f32.partialorder %v5020_v40, %v5084_v39  ;;  %v1691_v2 = vsel %vm1675_vm15, %v5017_v9, 0.0 }
 0x9e1   :  { %v5098_v19 = vsel %vm1674_vm2, -3e+38, %v5020_v40  ;;  %1740 = vmax.xlane.f32.xlu1 %v5090_v48  ;;  %v1690_v27 = vsel %vm1674_vm2, %v5020_v40, 0.0 }
 0x9e2   :  { %v5101_v8 = vpop.xlane.xlu1 %1648  ;;  %1738 = vmax.xlane.f32.xlu0 %v5098_v19 }
 0x9e3   :  { %vm1677_vm3 = vcmp.ge.f32.partialorder %v5025_v45, %v5101_v8  ;;  %v5106_v50 = vpop.xlane.xlu0 %1646 }
 0x9e4   :  { %v5112_v49 = vsel %vm1677_vm3, -3e+38, %v5025_v45  ;;  %vm1676_vm4 = vcmp.ge.f32.partialorder %v5028_v16, %v5106_v50 }
 0x9e5   :  { %v5120_v44 = vsel %vm1676_vm4, -3e+38, %v5028_v16  ;;  %1744 = vmax.xlane.f32.xlu1 %v5112_v49 }
 0x9e6   :  { %v5123_v11 = vpop.xlane.xlu1 %1652  ;;  %1742 = vmax.xlane.f32.xlu0 %v5120_v44 }
 0x9e7   :  { %vm1679_vm5 = vcmp.ge.f32.partialorder %v5033_v25, %v5123_v11  ;;  %v5128_v35 = vpop.xlane.xlu0 %1650 }
 0x9e8   :  { %v5134_v1 = vsel %vm1679_vm5, -3e+38, %v5033_v25  ;;  %vm1678_vm6 = vcmp.ge.f32.partialorder %v5036_v51, %v5128_v35 }
 0x9e9   :  { %v5142_v34 = vsel %vm1678_vm6, -3e+38, %v5036_v51  ;;  %1748 = vmax.xlane.f32.xlu1 %v5134_v1 }
 0x9ea   :  { %v5145_v42 = vpop.xlane.xlu1 %1656  ;;  %1746 = vmax.xlane.f32.xlu0 %v5142_v34 }
 0x9eb   :  { %vm1681_vm7 = vcmp.ge.f32.partialorder %v5041_v6, %v5145_v42  ;;  %v5150_v53 = vpop.xlane.xlu0 %1654 }
 0x9ec   :  { %v5156_v21 = vsel %vm1681_vm7, -3e+38, %v5041_v6  ;;  %vm1680_vm8 = vcmp.ge.f32.partialorder %v5044_v15, %v5150_v53 }
 0x9ed   :  { %v5164_v62 = vsel %vm1680_vm8, -3e+38, %v5044_v15  ;;  %1752 = vmax.xlane.f32.xlu1 %v5156_v21 }
 0x9ee   :  { %v5167_v29 = vpop.xlane.xlu1 %1660  ;;  %1750 = vmax.xlane.f32.xlu0 %v5164_v62 }
 0x9ef   :  { %vm1683_vm9 = vcmp.ge.f32.partialorder %v5049_v36, %v5167_v29  ;;  %v5172_v43 = vpop.xlane.xlu0 %1658 }
 0x9f0   :  { %v5178_v30 = vsel %vm1683_vm9, -3e+38, %v5049_v36  ;;  %vm1682_vm10 = vcmp.ge.f32.partialorder %v5052_v59, %v5172_v43 }
 0x9f1   :  { %v5186_v23 = vsel %vm1682_vm10, -3e+38, %v5052_v59  ;;  %1756 = vmax.xlane.f32.xlu1 %v5178_v30 }
 0x9f2   :  { %v5189_v26 = vpop.xlane.xlu1 %1664  ;;  %1754 = vmax.xlane.f32.xlu0 %v5186_v23 }
 0x9f3   :  { %vm1685_vm11 = vcmp.ge.f32.partialorder %v5057_v14, %v5189_v26  ;;  %v5194_v0 = vpop.xlane.xlu0 %1662 }
 0x9f4   :  { %v5200_v56 = vsel %vm1685_vm11, -3e+38, %v5057_v14  ;;  %vm1684_vm12 = vcmp.ge.f32.partialorder %v5060_v55, %v5194_v0 }
 0x9f5   :  { %v5208_v10 = vsel %vm1684_vm12, -3e+38, %v5060_v55  ;;  %1760 = vmax.xlane.f32.xlu1 %v5200_v56 }
 0x9f6   :  { %v5211_v54 = vpop.xlane.xlu1 %1668  ;;  %1758 = vmax.xlane.f32.xlu0 %v5208_v10 }
 0x9f7   :  { %vm1687_vm14 = vcmp.ge.f32.partialorder %v5065_v3, %v5211_v54  ;;  %v5216_v31 = vpop.xlane.xlu0 %1666 }
 0x9f8   :  { %v5222_v47 = vsel %vm1687_vm14, -3e+38, %v5065_v3  ;;  %vm6431_vm13 = vcmp.ge.f32.partialorder %v5068_v46, %v5216_v31 }
 0x9f9   :  { %v5230_v12 = vsel %vm6431_vm13, -3e+38, %v5068_v46  ;;  %1764 = vmax.xlane.f32.xlu1 %v5222_v47 }
 0x9fa   :  { %v5233_v58 = vpop.xlane.xlu1 %1672  ;;  %1762 = vmax.xlane.f32.xlu0 %v5230_v12 }
 0x9fb   :  { %vm1689_vm0 = vcmp.ge.f32.partialorder %v5073_v63, %v5233_v58  ;;  %v5238_v18 = vpop.xlane.xlu0 %1670 }
 0x9fc   :  { %v5244_v41 = vsel %vm1689_vm0, -3e+38, %v5073_v63  ;;  %vm6432_vm1 = vcmp.ge.f32.partialorder %v5076_v38, %v5238_v18 }
 0x9fd   :  { %v5252_v57 = vsel %vm6432_vm1, -3e+38, %v5076_v38  ;;  %1768 = vmax.xlane.f32.xlu1 %v5244_v41 }
 0x9fe   :  { %1766 = vmax.xlane.f32.xlu0 %v5252_v57 }
 0xa6e   :  { %v1741_v32 = vpop.xlane.xlu1 %1740 }
 0xa6f   :  { %vm1771_vm13 = vcmp.ge.f32.partialorder %v5090_v48, %v1741_v32  ;;  %v1739_v33 = vpop.xlane.xlu0 %1738 }
 0xa70   :  { %v1787_v24 = vsel %vm1771_vm13, %v5090_v48, 0.0  ;;  %v5263_v17 = vsel %vm1771_vm13, -3e+38, %v5090_v48  ;;  %vm1770_vm1 = vcmp.ge.f32.partialorder %v5098_v19, %v1739_v33  ;;  %vm6473_vm13 = vcmp.ge.f32.partialorder %v5068_v46, %v5216_v31 }
 0xa71   :  { %v5270_v52 = vadd.f32 %v1787_v24, %v1691_v2  ;;  %v1786_v32 = vsel %vm1770_vm1, %v5098_v19, 0.0  ;;  %v5274_v13 = vsel %vm1770_vm1, -3e+38, %v5098_v19  ;;  %1836 = vmax.xlane.f32.xlu1 %v5263_v17  ;;  %v1693_v2 = vsel %vm1677_vm3, %v5025_v45, 0.0 }
 0xa72   :  { %v5277_v9 = vadd.f32 %v1786_v32, %v1690_v27  ;;  %v1745_v28 = vpop.xlane.xlu1 %1744  ;;  %1834 = vmax.xlane.f32.xlu0 %v5274_v13  ;;  %v1692_v27 = vsel %vm1676_vm4, %v5028_v16, 0.0  ;;  %v1695_v16 = vsel %vm1679_vm5, %v5033_v25, 0.0  ;;  %v1694_v32 = vsel %vm1678_vm6, %v5036_v51, 0.0 }
 0xa73   :  { %vm1773_vm15 = vcmp.ge.f32.partialorder %v5112_v49, %v1745_v28  ;;  %v1743_v33 = vpop.xlane.xlu0 %1742  ;;  %v1697_v51 = vsel %vm1681_vm7, %v5041_v6, 0.0 }
 0xa74   :  { %v1789_v24 = vsel %vm1773_vm15, %v5112_v49, 0.0  ;;  %v5287_v40 = vsel %vm1773_vm15, -3e+38, %v5112_v49  ;;  %vm1772_vm2 = vcmp.ge.f32.partialorder %v5120_v44, %v1743_v33  ;;  %vm6474_vm15 = vcmp.ge.f32.partialorder %v5076_v38, %v5238_v18 }
 0xa75   :  { %v5294_v39 = vadd.f32 %v1789_v24, %v1693_v2  ;;  %v1788_v48 = vsel %vm1772_vm2, %v5120_v44, 0.0  ;;  %v5298_v19 = vsel %vm1772_vm2, -3e+38, %v5120_v44  ;;  %1840 = vmax.xlane.f32.xlu1 %v5287_v40  ;;  %v1696_v24 = vsel %vm1680_vm8, %v5044_v15, 0.0 }
 0xa76   :  { %v5301_v45 = vadd.f32 %v1788_v48, %v1692_v27  ;;  %v1749_v8 = vpop.xlane.xlu1 %1748  ;;  %1838 = vmax.xlane.f32.xlu0 %v5298_v19  ;;  %v1699_v15 = vsel %vm1683_vm9, %v5049_v36, 0.0 }
 0xa77   :  { %vm1775_vm3 = vcmp.ge.f32.partialorder %v5134_v1, %v1749_v8  ;;  %v1747_v49 = vpop.xlane.xlu0 %1746 }
 0xa78   :  { %v1791_v50 = vsel %vm1775_vm3, %v5134_v1, 0.0  ;;  %v5311_v44 = vsel %vm1775_vm3, -3e+38, %v5134_v1  ;;  %vm1774_vm4 = vcmp.ge.f32.partialorder %v5142_v34, %v1747_v49  ;;  %v1698_v49 = vsel %vm1682_vm10, %v5052_v59, 0.0 }
 0xa79   :  { %v5318_v28 = vadd.f32 %v1791_v50, %v1695_v16  ;;  %v1790_v33 = vsel %vm1774_vm4, %v5142_v34, 0.0  ;;  %v5322_v2 = vsel %vm1774_vm4, -3e+38, %v5142_v34  ;;  %1844 = vmax.xlane.f32.xlu1 %v5311_v44  ;;  %v1701_v59 = vsel %vm1685_vm11, %v5057_v14, 0.0 }
 0xa7a   :  { %v5325_v25 = vadd.f32 %v1790_v33, %v1694_v32  ;;  %v1753_v11 = vpop.xlane.xlu1 %1752  ;;  %1842 = vmax.xlane.f32.xlu0 %v5322_v2  ;;  %v1700_v33 = vsel %vm1684_vm12, %v5060_v55, 0.0  ;;  %v1703_v55 = vsel %vm1687_vm14, %v5065_v3, 0.0 }
 0xa7b   :  { %vm1777_vm5 = vcmp.ge.f32.partialorder %v5156_v21, %v1753_v11  ;;  %v1751_v1 = vpop.xlane.xlu0 %1750 }
 0xa7c   :  { %v1793_v35 = vsel %vm1777_vm5, %v5156_v21, 0.0  ;;  %v5335_v34 = vsel %vm1777_vm5, -3e+38, %v5156_v21  ;;  %vm1776_vm6 = vcmp.ge.f32.partialorder %v5164_v62, %v1751_v1 }
 0xa7d   :  { %v5342_v27 = vadd.f32 %v1793_v35, %v1697_v51  ;;  %v1792_v48 = vsel %vm1776_vm6, %v5164_v62, 0.0  ;;  %v5346_v8 = vsel %vm1776_vm6, -3e+38, %v5164_v62  ;;  %1848 = vmax.xlane.f32.xlu1 %v5335_v34  ;;  %v1702_v35 = vsel %vm6473_vm13, %v5068_v46, 0.0 }
 0xa7e   :  { %v5349_v6 = vadd.f32 %v1792_v48, %v1696_v24  ;;  %v1757_v42 = vpop.xlane.xlu1 %1756  ;;  %1846 = vmax.xlane.f32.xlu0 %v5346_v8  ;;  %v1705_v46 = vsel %vm1689_vm0, %v5073_v63, 0.0 }
 0xa7f   :  { %vm1779_vm7 = vcmp.ge.f32.partialorder %v5178_v30, %v1757_v42  ;;  %v1755_v21 = vpop.xlane.xlu0 %1754 }
 0xa80   :  { %v1795_v53 = vsel %vm1779_vm7, %v5178_v30, 0.0  ;;  %v5359_v62 = vsel %vm1779_vm7, -3e+38, %v5178_v30  ;;  %vm1778_vm8 = vcmp.ge.f32.partialorder %v5186_v23, %v1755_v21  ;;  %v1704_v21 = vsel %vm6474_vm15, %v5076_v38, 0.0 }
 0xa81   :  { %v5366_v16 = vadd.f32 %v1795_v53, %v1699_v15  ;;  %v1794_v50 = vsel %vm1778_vm8, %v5186_v23, 0.0  ;;  %v5370_v32 = vsel %vm1778_vm8, -3e+38, %v5186_v23  ;;  %1852 = vmax.xlane.f32.xlu1 %v5359_v62 }
 0xa82   :  { %v5373_v36 = vadd.f32 %v1794_v50, %v1698_v49  ;;  %v1761_v29 = vpop.xlane.xlu1 %1760  ;;  %1850 = vmax.xlane.f32.xlu0 %v5370_v32 }
 0xa83   :  { %vm1781_vm9 = vcmp.ge.f32.partialorder %v5200_v56, %v1761_v29  ;;  %v1759_v30 = vpop.xlane.xlu0 %1758 }
 0xa84   :  { %v1797_v43 = vsel %vm1781_vm9, %v5200_v56, 0.0  ;;  %v5383_v23 = vsel %vm1781_vm9, -3e+38, %v5200_v56  ;;  %vm1780_vm10 = vcmp.ge.f32.partialorder %v5208_v10, %v1759_v30 }
 0xa85   :  { %v5390_v11 = vadd.f32 %v1797_v43, %v1701_v59  ;;  %v1796_v1 = vsel %vm1780_vm10, %v5208_v10, 0.0  ;;  %v5394_v51 = vsel %vm1780_vm10, -3e+38, %v5208_v10  ;;  %1856 = vmax.xlane.f32.xlu1 %v5383_v23 }
 0xa86   :  { %v5397_v14 = vadd.f32 %v1796_v1, %v1700_v33  ;;  %v1765_v26 = vpop.xlane.xlu1 %1764  ;;  %1854 = vmax.xlane.f32.xlu0 %v5394_v51 }
 0xa87   :  { %vm1783_vm11 = vcmp.ge.f32.partialorder %v5222_v47, %v1765_v26  ;;  %v1763_v56 = vpop.xlane.xlu0 %1762 }
 0xa88   :  { %v1799_v0 = vsel %vm1783_vm11, %v5222_v47, 0.0  ;;  %v5407_v10 = vsel %vm1783_vm11, -3e+38, %v5222_v47  ;;  %vm1782_vm12 = vcmp.ge.f32.partialorder %v5230_v12, %v1763_v56 }
 0xa89   :  { %v5414_v24 = vadd.f32 %v1799_v0, %v1703_v55  ;;  %v1798_v48 = vsel %vm1782_vm12, %v5230_v12, 0.0  ;;  %v5418_v42 = vsel %vm1782_vm12, -3e+38, %v5230_v12  ;;  %1860 = vmax.xlane.f32.xlu1 %v5407_v10 }
 0xa8a   :  { %v5421_v3 = vadd.f32 %v1798_v48, %v1702_v35  ;;  %v1769_v54 = vpop.xlane.xlu1 %1768  ;;  %1858 = vmax.xlane.f32.xlu0 %v5418_v42 }
 0xa8b   :  { %vm1785_vm14 = vcmp.ge.f32.partialorder %v5244_v41, %v1769_v54  ;;  %v1767_v47 = vpop.xlane.xlu0 %1766 }
 0xa8c   :  { %v1801_v31 = vsel %vm1785_vm14, %v5244_v41, 0.0  ;;  %v5431_v12 = vsel %vm1785_vm14, -3e+38, %v5244_v41  ;;  %vm1784_vm1 = vcmp.ge.f32.partialorder %v5252_v57, %v1767_v47 }
 0xa8d   :  { %v5438_v15 = vadd.f32 %v1801_v31, %v1705_v46  ;;  %v1800_v53 = vsel %vm1784_vm1, %v5252_v57, 0.0  ;;  %v5442_v49 = vsel %vm1784_vm1, -3e+38, %v5252_v57  ;;  %1864 = vmax.xlane.f32.xlu1 %v5431_v12 }
 0xa8e   :  { %v5445_v63 = vadd.f32 %v1800_v53, %v1704_v21  ;;  %1862 = vmax.xlane.f32.xlu0 %v5442_v49 }
 0xafe   :  { %v1837_v58 = vpop.xlane.xlu1 %1836 }
 0xaff   :  { %vm1867_vm0 = vcmp.ge.f32.partialorder %v5263_v17, %v1837_v58  ;;  %v1835_v41 = vpop.xlane.xlu0 %1834 }
 0xb00   :  { %v1883_v18 = vsel %vm1867_vm0, %v5263_v17, 0.0  ;;  %v5451_v38 = vsel %vm1867_vm0, -3e+38, %v5263_v17  ;;  %vm1866_vm2 = vcmp.ge.f32.partialorder %v5274_v13, %v1835_v41 }
 0xb01   :  { %v5455_v57 = vadd.f32 %v1883_v18, %v5270_v52  ;;  %v1882_v50 = vsel %vm1866_vm2, %v5274_v13, 0.0  ;;  %v5459_v29 = vsel %vm1866_vm2, -3e+38, %v5274_v13  ;;  %1932 = vmax.xlane.f32.xlu1 %v5451_v38 }
 0xb02   :  { %v5463_v30 = vadd.f32 %v1882_v50, %v5277_v9  ;;  %v1841_v59 = vpop.xlane.xlu1 %1840  ;;  %1930 = vmax.xlane.f32.xlu0 %v5459_v29 }
 0xb03   :  { %vm1869_vm3 = vcmp.ge.f32.partialorder %v5287_v40, %v1841_v59  ;;  %v1839_v17 = vpop.xlane.xlu0 %1838 }
 0xb04   :  { %v1885_v43 = vsel %vm1869_vm3, %v5287_v40, 0.0  ;;  %v5469_v52 = vsel %vm1869_vm3, -3e+38, %v5287_v40  ;;  %vm1868_vm4 = vcmp.ge.f32.partialorder %v5298_v19, %v1839_v17 }
 0xb05   :  { %v5473_v13 = vadd.f32 %v1885_v43, %v5294_v39  ;;  %v1884_v33 = vsel %vm1868_vm4, %v5298_v19, 0.0  ;;  %v5477_v9 = vsel %vm1868_vm4, -3e+38, %v5298_v19  ;;  %1936 = vmax.xlane.f32.xlu1 %v5469_v52 }
 0xb06   :  { %v5481_v1 = vadd.f32 %v1884_v33, %v5301_v45  ;;  %v1845_v26 = vpop.xlane.xlu1 %1844  ;;  %1934 = vmax.xlane.f32.xlu0 %v5477_v9 }
 0xb07   :  { %vm1871_vm5 = vcmp.ge.f32.partialorder %v5311_v44, %v1845_v26  ;;  %v1843_v40 = vpop.xlane.xlu0 %1842 }
 0xb08   :  { %v1887_v56 = vsel %vm1871_vm5, %v5311_v44, 0.0  ;;  %v5487_v39 = vsel %vm1871_vm5, -3e+38, %v5311_v44  ;;  %vm1870_vm6 = vcmp.ge.f32.partialorder %v5322_v2, %v1843_v40 }
 0xb09   :  { %v5491_v19 = vadd.f32 %v1887_v56, %v5318_v28  ;;  %v1886_v55 = vsel %vm1870_vm6, %v5322_v2, 0.0  ;;  %v5495_v45 = vsel %vm1870_vm6, -3e+38, %v5322_v2  ;;  %1940 = vmax.xlane.f32.xlu1 %v5487_v39 }
 0xb0a   :  { %v5499_v0 = vadd.f32 %v1886_v55, %v5325_v25  ;;  %v1849_v35 = vpop.xlane.xlu1 %1848  ;;  %1938 = vmax.xlane.f32.xlu0 %v5495_v45 }
 0xb0b   :  { %vm1873_vm7 = vcmp.ge.f32.partialorder %v5335_v34, %v1849_v35  ;;  %v1847_v44 = vpop.xlane.xlu0 %1846 }
 0xb0c   :  { %v1889_v48 = vsel %vm1873_vm7, %v5335_v34, 0.0  ;;  %v5505_v28 = vsel %vm1873_vm7, -3e+38, %v5335_v34  ;;  %vm1872_vm8 = vcmp.ge.f32.partialorder %v5346_v8, %v1847_v44 }
 0xb0d   :  { %v5509_v2 = vadd.f32 %v1889_v48, %v5342_v27  ;;  %v1888_v54 = vsel %vm1872_vm8, %v5346_v8, 0.0  ;;  %v5513_v25 = vsel %vm1872_vm8, -3e+38, %v5346_v8  ;;  %1944 = vmax.xlane.f32.xlu1 %v5505_v28 }
 0xb0e   :  { %v5517_v47 = vadd.f32 %v1888_v54, %v5349_v6  ;;  %v1853_v46 = vpop.xlane.xlu1 %1852  ;;  %1942 = vmax.xlane.f32.xlu0 %v5513_v25 }
 0xb0f   :  { %vm1875_vm9 = vcmp.ge.f32.partialorder %v5359_v62, %v1853_v46  ;;  %v1851_v34 = vpop.xlane.xlu0 %1850 }
 0xb10   :  { %v1891_v31 = vsel %vm1875_vm9, %v5359_v62, 0.0  ;;  %v5523_v27 = vsel %vm1875_vm9, -3e+38, %v5359_v62  ;;  %vm1874_vm10 = vcmp.ge.f32.partialorder %v5370_v32, %v1851_v34 }
 0xb11   :  { %v5527_v8 = vadd.f32 %v1891_v31, %v5366_v16  ;;  %v1890_v21 = vsel %vm1874_vm10, %v5370_v32, 0.0  ;;  %v5531_v6 = vsel %vm1874_vm10, -3e+38, %v5370_v32  ;;  %1948 = vmax.xlane.f32.xlu1 %v5523_v27 }
 0xb12   :  { %v5535_v53 = vadd.f32 %v1890_v21, %v5373_v36  ;;  %v1857_v58 = vpop.xlane.xlu1 %1856  ;;  %1946 = vmax.xlane.f32.xlu0 %v5531_v6 }
 0xb13   :  { %vm1877_vm11 = vcmp.ge.f32.partialorder %v5383_v23, %v1857_v58  ;;  %v1855_v62 = vpop.xlane.xlu0 %1854 }
 0xb14   :  { %v1893_v41 = vsel %vm1877_vm11, %v5383_v23, 0.0  ;;  %v5541_v16 = vsel %vm1877_vm11, -3e+38, %v5383_v23  ;;  %vm1876_vm12 = vcmp.ge.f32.partialorder %v5394_v51, %v1855_v62 }
 0xb15   :  { %v5545_v32 = vadd.f32 %v1893_v41, %v5390_v11  ;;  %v1892_v18 = vsel %vm1876_vm12, %v5394_v51, 0.0  ;;  %v5549_v36 = vsel %vm1876_vm12, -3e+38, %v5394_v51  ;;  %1952 = vmax.xlane.f32.xlu1 %v5541_v16 }
 0xb16   :  { %v5553_v50 = vadd.f32 %v1892_v18, %v5397_v14  ;;  %v1861_v59 = vpop.xlane.xlu1 %1860  ;;  %1950 = vmax.xlane.f32.xlu0 %v5549_v36 }
 0xb17   :  { %vm1879_vm13 = vcmp.ge.f32.partialorder %v5407_v10, %v1861_v59  ;;  %v1859_v23 = vpop.xlane.xlu0 %1858 }
 0xb18   :  { %v1895_v17 = vsel %vm1879_vm13, %v5407_v10, 0.0  ;;  %v5559_v11 = vsel %vm1879_vm13, -3e+38, %v5407_v10  ;;  %vm1878_vm14 = vcmp.ge.f32.partialorder %v5418_v42, %v1859_v23 }
 0xb19   :  { %v5563_v51 = vadd.f32 %v1895_v17, %v5414_v24  ;;  %v1894_v43 = vsel %vm1878_vm14, %v5418_v42, 0.0  ;;  %v5567_v14 = vsel %vm1878_vm14, -3e+38, %v5418_v42  ;;  %1956 = vmax.xlane.f32.xlu1 %v5559_v11 }
 0xb1a   :  { %v5571_v33 = vadd.f32 %v1894_v43, %v5421_v3  ;;  %v1865_v26 = vpop.xlane.xlu1 %1864  ;;  %1954 = vmax.xlane.f32.xlu0 %v5567_v14 }
 0xb1b   :  { %vm1881_vm1 = vcmp.ge.f32.partialorder %v5431_v12, %v1865_v26  ;;  %v1863_v10 = vpop.xlane.xlu0 %1862 }
 0xb1c   :  { %v1897_v40 = vsel %vm1881_vm1, %v5431_v12, 0.0  ;;  %v5577_v24 = vsel %vm1881_vm1, -3e+38, %v5431_v12  ;;  %vm1880_vm15 = vcmp.ge.f32.partialorder %v5442_v49, %v1863_v10 }
 0xb1d   :  { %v5581_v42 = vadd.f32 %v1897_v40, %v5438_v15  ;;  %v1896_v56 = vsel %vm1880_vm15, %v5442_v49, 0.0  ;;  %v5585_v3 = vsel %vm1880_vm15, -3e+38, %v5442_v49  ;;  %1960 = vmax.xlane.f32.xlu1 %v5577_v24 }
 0xb1e   :  { %v5589_v55 = vadd.f32 %v1896_v56, %v5445_v63  ;;  %1958 = vmax.xlane.f32.xlu0 %v5585_v3 }
 0xb8e   :  { %v1933_v35 = vpop.xlane.xlu1 %1932 }
 0xb8f   :  { %vm1963_vm0 = vcmp.ge.f32.partialorder %v5451_v38, %v1933_v35  ;;  %v1931_v12 = vpop.xlane.xlu0 %1930 }
 0xb90   :  { %v1979_v44 = vsel %vm1963_vm0, %v5451_v38, 0.0  ;;  %v5595_v15 = vsel %vm1963_vm0, -3e+38, %v5451_v38  ;;  %vm1962_vm2 = vcmp.ge.f32.partialorder %v5459_v29, %v1931_v12 }
 0xb91   :  { %v5599_v49 = vadd.f32 %v1979_v44, %v5455_v57  ;;  %v1978_v48 = vsel %vm1962_vm2, %v5459_v29, 0.0  ;;  %v5603_v63 = vsel %vm1962_vm2, -3e+38, %v5459_v29  ;;  %2028 = vmax.xlane.f32.xlu1 %v5595_v15 }
 0xb92   :  { %v5607_v54 = vadd.f32 %v1978_v48, %v5463_v30  ;;  %v1937_v46 = vpop.xlane.xlu1 %1936  ;;  %2026 = vmax.xlane.f32.xlu0 %v5603_v63 }
 0xb93   :  { %vm1965_vm3 = vcmp.ge.f32.partialorder %v5469_v52, %v1937_v46  ;;  %v1935_v38 = vpop.xlane.xlu0 %1934 }
 0xb94   :  { %v1981_v34 = vsel %vm1965_vm3, %v5469_v52, 0.0  ;;  %v5613_v57 = vsel %vm1965_vm3, -3e+38, %v5469_v52  ;;  %vm1964_vm4 = vcmp.ge.f32.partialorder %v5477_v9, %v1935_v38 }
 0xb95   :  { %v5617_v29 = vadd.f32 %v1981_v34, %v5473_v13  ;;  %v1980_v31 = vsel %vm1964_vm4, %v5477_v9, 0.0  ;;  %v5621_v30 = vsel %vm1964_vm4, -3e+38, %v5477_v9  ;;  %2032 = vmax.xlane.f32.xlu1 %v5613_v57 }
 0xb96   :  { %v5625_v21 = vadd.f32 %v1980_v31, %v5481_v1  ;;  %v1941_v58 = vpop.xlane.xlu1 %1940  ;;  %2030 = vmax.xlane.f32.xlu0 %v5621_v30 }
 0xb97   :  { %vm1967_vm5 = vcmp.ge.f32.partialorder %v5487_v39, %v1941_v58  ;;  %v1939_v52 = vpop.xlane.xlu0 %1938 }
 0xb98   :  { %v1983_v62 = vsel %vm1967_vm5, %v5487_v39, 0.0  ;;  %v5631_v13 = vsel %vm1967_vm5, -3e+38, %v5487_v39  ;;  %vm1966_vm6 = vcmp.ge.f32.partialorder %v5495_v45, %v1939_v52 }
 0xb99   :  { %v5635_v9 = vadd.f32 %v1983_v62, %v5491_v19  ;;  %v1982_v41 = vsel %vm1966_vm6, %v5495_v45, 0.0  ;;  %v5639_v1 = vsel %vm1966_vm6, -3e+38, %v5495_v45  ;;  %2036 = vmax.xlane.f32.xlu1 %v5631_v13 }
 0xb9a   :  { %v5643_v18 = vadd.f32 %v1982_v41, %v5499_v0  ;;  %v1945_v59 = vpop.xlane.xlu1 %1944  ;;  %2034 = vmax.xlane.f32.xlu0 %v5639_v1 }
 0xb9b   :  { %vm1969_vm7 = vcmp.ge.f32.partialorder %v5505_v28, %v1945_v59  ;;  %v1943_v39 = vpop.xlane.xlu0 %1942 }
 0xb9c   :  { %v1985_v23 = vsel %vm1969_vm7, %v5505_v28, 0.0  ;;  %v5649_v19 = vsel %vm1969_vm7, -3e+38, %v5505_v28  ;;  %vm1968_vm8 = vcmp.ge.f32.partialorder %v5513_v25, %v1943_v39 }
 0xb9d   :  { %v5653_v45 = vadd.f32 %v1985_v23, %v5509_v2  ;;  %v1984_v17 = vsel %vm1968_vm8, %v5513_v25, 0.0  ;;  %v5657_v0 = vsel %vm1968_vm8, -3e+38, %v5513_v25  ;;  %2040 = vmax.xlane.f32.xlu1 %v5649_v19 }
 0xb9e   :  { %v5661_v43 = vadd.f32 %v1984_v17, %v5517_v47  ;;  %v1949_v26 = vpop.xlane.xlu1 %1948  ;;  %2038 = vmax.xlane.f32.xlu0 %v5657_v0 }
 0xb9f   :  { %vm1971_vm9 = vcmp.ge.f32.partialorder %v5523_v27, %v1949_v26  ;;  %v1947_v28 = vpop.xlane.xlu0 %1946 }
 0xba0   :  { %v1987_v10 = vsel %vm1971_vm9, %v5523_v27, 0.0  ;;  %v5667_v2 = vsel %vm1971_vm9, -3e+38, %v5523_v27  ;;  %vm1970_vm10 = vcmp.ge.f32.partialorder %v5531_v6, %v1947_v28 }
 0xba1   :  { %v5671_v25 = vadd.f32 %v1987_v10, %v5527_v8  ;;  %v1986_v40 = vsel %vm1970_vm10, %v5531_v6, 0.0  ;;  %v5675_v47 = vsel %vm1970_vm10, -3e+38, %v5531_v6  ;;  %2044 = vmax.xlane.f32.xlu1 %v5667_v2 }
 0xba2   :  { %v5679_v56 = vadd.f32 %v1986_v40, %v5535_v53  ;;  %v1953_v35 = vpop.xlane.xlu1 %1952  ;;  %2042 = vmax.xlane.f32.xlu0 %v5675_v47 }
 0xba3   :  { %vm1973_vm11 = vcmp.ge.f32.partialorder %v5541_v16, %v1953_v35  ;;  %v1951_v27 = vpop.xlane.xlu0 %1950 }
 0xba4   :  { %v1989_v12 = vsel %vm1973_vm11, %v5541_v16, 0.0  ;;  %v5685_v8 = vsel %vm1973_vm11, -3e+38, %v5541_v16  ;;  %vm1972_vm12 = vcmp.ge.f32.partialorder %v5549_v36, %v1951_v27 }
 0xba5   :  { %v5689_v6 = vadd.f32 %v1989_v12, %v5545_v32  ;;  %v1988_v44 = vsel %vm1972_vm12, %v5549_v36, 0.0  ;;  %v5693_v53 = vsel %vm1972_vm12, -3e+38, %v5549_v36  ;;  %2048 = vmax.xlane.f32.xlu1 %v5685_v8 }
 0xba6   :  { %v5697_v48 = vadd.f32 %v1988_v44, %v5553_v50  ;;  %v1957_v46 = vpop.xlane.xlu1 %1956  ;;  %2046 = vmax.xlane.f32.xlu0 %v5693_v53 }
 0xba7   :  { %vm1975_vm13 = vcmp.ge.f32.partialorder %v5559_v11, %v1957_v46  ;;  %v1955_v16 = vpop.xlane.xlu0 %1954 }
 0xba8   :  { %v1991_v38 = vsel %vm1975_vm13, %v5559_v11, 0.0  ;;  %v5703_v32 = vsel %vm1975_vm13, -3e+38, %v5559_v11  ;;  %vm1974_vm14 = vcmp.ge.f32.partialorder %v5567_v14, %v1955_v16 }
 0xba9   :  { %v5707_v36 = vadd.f32 %v1991_v38, %v5563_v51  ;;  %v1990_v34 = vsel %vm1974_vm14, %v5567_v14, 0.0  ;;  %v5711_v50 = vsel %vm1974_vm14, -3e+38, %v5567_v14  ;;  %2052 = vmax.xlane.f32.xlu1 %v5703_v32 }
 0xbaa   :  { %v5715_v31 = vadd.f32 %v1990_v34, %v5571_v33  ;;  %v1961_v58 = vpop.xlane.xlu1 %1960  ;;  %2050 = vmax.xlane.f32.xlu0 %v5711_v50 }
 0xbab   :  { %vm1977_vm1 = vcmp.ge.f32.partialorder %v5577_v24, %v1961_v58  ;;  %v1959_v11 = vpop.xlane.xlu0 %1958 }
 0xbac   :  { %v1993_v52 = vsel %vm1977_vm1, %v5577_v24, 0.0  ;;  %v5721_v51 = vsel %vm1977_vm1, -3e+38, %v5577_v24  ;;  %vm1976_vm15 = vcmp.ge.f32.partialorder %v5585_v3, %v1959_v11 }
 0xbad   :  { %v5725_v14 = vadd.f32 %v1993_v52, %v5581_v42  ;;  %v1992_v62 = vsel %vm1976_vm15, %v5585_v3, 0.0  ;;  %v5729_v33 = vsel %vm1976_vm15, -3e+38, %v5585_v3  ;;  %2056 = vmax.xlane.f32.xlu1 %v5721_v51 }
 0xbae   :  { %v5733_v41 = vadd.f32 %v1992_v62, %v5589_v55  ;;  %2054 = vmax.xlane.f32.xlu0 %v5729_v33 }
 0xc1e   :  { %v2029_v59 = vpop.xlane.xlu1 %2028 }
 0xc1f   :  { %vm2059_vm0 = vcmp.ge.f32.partialorder %v5595_v15, %v2029_v59  ;;  %v2027_v24 = vpop.xlane.xlu0 %2026 }
 0xc20   :  { %v2075_v39 = vsel %vm2059_vm0, %v5595_v15, 0.0  ;;  %v5739_v42 = vsel %vm2059_vm0, -3e+38, %v5595_v15  ;;  %vm2058_vm2 = vcmp.ge.f32.partialorder %v5603_v63, %v2027_v24 }
 0xc21   :  { %v5743_v3 = vadd.f32 %v2075_v39, %v5599_v49  ;;  %v2074_v23 = vsel %vm2058_vm2, %v5603_v63, 0.0  ;;  %v5747_v55 = vsel %vm2058_vm2, -3e+38, %v5603_v63  ;;  %2124 = vmax.xlane.f32.xlu1 %v5739_v42 }
 0xc22   :  { %v5751_v17 = vadd.f32 %v2074_v23, %v5607_v54  ;;  %v2033_v26 = vpop.xlane.xlu1 %2032  ;;  %2122 = vmax.xlane.f32.xlu0 %v5747_v55 }
 0xc23   :  { %vm2061_vm3 = vcmp.ge.f32.partialorder %v5613_v57, %v2033_v26  ;;  %v2031_v15 = vpop.xlane.xlu0 %2030 }
 0xc24   :  { %v2077_v28 = vsel %vm2061_vm3, %v5613_v57, 0.0  ;;  %v5757_v49 = vsel %vm2061_vm3, -3e+38, %v5613_v57  ;;  %vm2060_vm4 = vcmp.ge.f32.partialorder %v5621_v30, %v2031_v15 }
 0xc25   :  { %v5761_v63 = vadd.f32 %v2077_v28, %v5617_v29  ;;  %v2076_v10 = vsel %vm2060_vm4, %v5621_v30, 0.0  ;;  %v5765_v54 = vsel %vm2060_vm4, -3e+38, %v5621_v30  ;;  %2128 = vmax.xlane.f32.xlu1 %v5757_v49 }
 0xc26   :  { %v5769_v40 = vadd.f32 %v2076_v10, %v5625_v21  ;;  %v2037_v35 = vpop.xlane.xlu1 %2036  ;;  %2126 = vmax.xlane.f32.xlu0 %v5765_v54 }
 0xc27   :  { %vm2063_vm5 = vcmp.ge.f32.partialorder %v5631_v13, %v2037_v35  ;;  %v2035_v57 = vpop.xlane.xlu0 %2034 }
 0xc28   :  { %v2079_v27 = vsel %vm2063_vm5, %v5631_v13, 0.0  ;;  %v5775_v29 = vsel %vm2063_vm5, -3e+38, %v5631_v13  ;;  %vm2062_vm6 = vcmp.ge.f32.partialorder %v5639_v1, %v2035_v57 }
 0xc29   :  { %v5779_v30 = vadd.f32 %v2079_v27, %v5635_v9  ;;  %v2078_v12 = vsel %vm2062_vm6, %v5639_v1, 0.0  ;;  %v5783_v21 = vsel %vm2062_vm6, -3e+38, %v5639_v1  ;;  %2132 = vmax.xlane.f32.xlu1 %v5775_v29 }
 0xc2a   :  { %v5787_v44 = vadd.f32 %v2078_v12, %v5643_v18  ;;  %v2041_v46 = vpop.xlane.xlu1 %2040  ;;  %2130 = vmax.xlane.f32.xlu0 %v5783_v21 }
 0xc2b   :  { %vm2065_vm7 = vcmp.ge.f32.partialorder %v5649_v19, %v2041_v46  ;;  %v2039_v13 = vpop.xlane.xlu0 %2038 }
 0xc2c   :  { %v2081_v16 = vsel %vm2065_vm7, %v5649_v19, 0.0  ;;  %v5793_v9 = vsel %vm2065_vm7, -3e+38, %v5649_v19  ;;  %vm2064_vm8 = vcmp.ge.f32.partialorder %v5657_v0, %v2039_v13 }
 0xc2d   :  { %v5797_v1 = vadd.f32 %v2081_v16, %v5653_v45  ;;  %v2080_v38 = vsel %vm2064_vm8, %v5657_v0, 0.0  ;;  %v5801_v18 = vsel %vm2064_vm8, -3e+38, %v5657_v0  ;;  %2136 = vmax.xlane.f32.xlu1 %v5793_v9 }
 0xc2e   :  { %v5805_v34 = vadd.f32 %v2080_v38, %v5661_v43  ;;  %v2045_v58 = vpop.xlane.xlu1 %2044  ;;  %2134 = vmax.xlane.f32.xlu0 %v5801_v18 }
 0xc2f   :  { %vm2067_vm9 = vcmp.ge.f32.partialorder %v5667_v2, %v2045_v58  ;;  %v2043_v19 = vpop.xlane.xlu0 %2042 }
 0xc30   :  { %v2083_v11 = vsel %vm2067_vm9, %v5667_v2, 0.0  ;;  %v5811_v45 = vsel %vm2067_vm9, -3e+38, %v5667_v2  ;;  %vm2066_vm10 = vcmp.ge.f32.partialorder %v5675_v47, %v2043_v19 }
 0xc31   :  { %v5815_v0 = vadd.f32 %v2083_v11, %v5671_v25  ;;  %v2082_v52 = vsel %vm2066_vm10, %v5675_v47, 0.0  ;;  %v5819_v43 = vsel %vm2066_vm10, -3e+38, %v5675_v47  ;;  %2140 = vmax.xlane.f32.xlu1 %v5811_v45 }
 0xc32   :  { %v5823_v62 = vadd.f32 %v2082_v52, %v5679_v56  ;;  %v2049_v59 = vpop.xlane.xlu1 %2048  ;;  %2138 = vmax.xlane.f32.xlu0 %v5819_v43 }
 0xc33   :  { %vm2069_vm11 = vcmp.ge.f32.partialorder %v5685_v8, %v2049_v59  ;;  %v2047_v2 = vpop.xlane.xlu0 %2046 }
 0xc34   :  { %v2085_v24 = vsel %vm2069_vm11, %v5685_v8, 0.0  ;;  %v5829_v25 = vsel %vm2069_vm11, -3e+38, %v5685_v8  ;;  %vm2068_vm12 = vcmp.ge.f32.partialorder %v5693_v53, %v2047_v2 }
 0xc35   :  { %v5833_v47 = vadd.f32 %v2085_v24, %v5689_v6  ;;  %v2084_v39 = vsel %vm2068_vm12, %v5693_v53, 0.0  ;;  %v5837_v56 = vsel %vm2068_vm12, -3e+38, %v5693_v53  ;;  %2144 = vmax.xlane.f32.xlu1 %v5829_v25 }
 0xc36   :  { %v5841_v23 = vadd.f32 %v2084_v39, %v5697_v48  ;;  %v2053_v26 = vpop.xlane.xlu1 %2052  ;;  %2142 = vmax.xlane.f32.xlu0 %v5837_v56 }
 0xc37   :  { %vm2071_vm13 = vcmp.ge.f32.partialorder %v5703_v32, %v2053_v26  ;;  %v2051_v8 = vpop.xlane.xlu0 %2050 }
 0xc38   :  { %v2087_v15 = vsel %vm2071_vm13, %v5703_v32, 0.0  ;;  %v5847_v6 = vsel %vm2071_vm13, -3e+38, %v5703_v32  ;;  %vm2070_vm14 = vcmp.ge.f32.partialorder %v5711_v50, %v2051_v8 }
 0xc39   :  { %v5851_v53 = vadd.f32 %v2087_v15, %v5707_v36  ;;  %v2086_v28 = vsel %vm2070_vm14, %v5711_v50, 0.0  ;;  %v5855_v48 = vsel %vm2070_vm14, -3e+38, %v5711_v50  ;;  %2148 = vmax.xlane.f32.xlu1 %v5847_v6 }
 0xc3a   :  { %v5859_v10 = vadd.f32 %v2086_v28, %v5715_v31  ;;  %v2057_v35 = vpop.xlane.xlu1 %2056  ;;  %2146 = vmax.xlane.f32.xlu0 %v5855_v48 }
 0xc3b   :  { %vm2073_vm1 = vcmp.ge.f32.partialorder %v5721_v51, %v2057_v35  ;;  %v2055_v32 = vpop.xlane.xlu0 %2054 }
 0xc3c   :  { %v2089_v57 = vsel %vm2073_vm1, %v5721_v51, 0.0  ;;  %v5865_v36 = vsel %vm2073_vm1, -3e+38, %v5721_v51  ;;  %vm2072_vm15 = vcmp.ge.f32.partialorder %v5729_v33, %v2055_v32 }
 0xc3d   :  { %v5869_v50 = vadd.f32 %v2089_v57, %v5725_v14  ;;  %v2088_v27 = vsel %vm2072_vm15, %v5729_v33, 0.0  ;;  %v5873_v31 = vsel %vm2072_vm15, -3e+38, %v5729_v33  ;;  %2152 = vmax.xlane.f32.xlu1 %v5865_v36 }
 0xc3e   :  { %v5877_v12 = vadd.f32 %v2088_v27, %v5733_v41  ;;  %2150 = vmax.xlane.f32.xlu0 %v5873_v31 }
 0xcae   :  { %v2125_v46 = vpop.xlane.xlu1 %2124 }
 0xcaf   :  { %vm2155_vm0 = vcmp.ge.f32.partialorder %v5739_v42, %v2125_v46  ;;  %v2123_v51 = vpop.xlane.xlu0 %2122 }
 0xcb0   :  { %v2171_v13 = vsel %vm2155_vm0, %v5739_v42, 0.0  ;;  %v5883_v14 = vsel %vm2155_vm0, -3e+38, %v5739_v42  ;;  %vm2154_vm2 = vcmp.ge.f32.partialorder %v5747_v55, %v2123_v51 }
 0xcb1   :  { %v5887_v33 = vadd.f32 %v2171_v13, %v5743_v3  ;;  %v2170_v16 = vsel %vm2154_vm2, %v5747_v55, 0.0  ;;  %v5891_v41 = vsel %vm2154_vm2, -3e+38, %v5747_v55  ;;  %2220 = vmax.xlane.f32.xlu1 %v5883_v14 }
 0xcb2   :  { %v5895_v38 = vadd.f32 %v2170_v16, %v5751_v17  ;;  %v2129_v58 = vpop.xlane.xlu1 %2128  ;;  %2218 = vmax.xlane.f32.xlu0 %v5891_v41 }
 0xcb3   :  { %vm2157_vm3 = vcmp.ge.f32.partialorder %v5757_v49, %v2129_v58  ;;  %v2127_v42 = vpop.xlane.xlu0 %2126 }
 0xcb4   :  { %v2173_v19 = vsel %vm2157_vm3, %v5757_v49, 0.0  ;;  %v5901_v3 = vsel %vm2157_vm3, -3e+38, %v5757_v49  ;;  %vm2156_vm4 = vcmp.ge.f32.partialorder %v5765_v54, %v2127_v42 }
 0xcb5   :  { %v5905_v55 = vadd.f32 %v2173_v19, %v5761_v63  ;;  %v2172_v11 = vsel %vm2156_vm4, %v5765_v54, 0.0  ;;  %v5909_v17 = vsel %vm2156_vm4, -3e+38, %v5765_v54  ;;  %2224 = vmax.xlane.f32.xlu1 %v5901_v3 }
 0xcb6   :  { %v5913_v52 = vadd.f32 %v2172_v11, %v5769_v40  ;;  %v2133_v59 = vpop.xlane.xlu1 %2132  ;;  %2222 = vmax.xlane.f32.xlu0 %v5909_v17 }
 0xcb7   :  { %vm2159_vm5 = vcmp.ge.f32.partialorder %v5775_v29, %v2133_v59  ;;  %v2131_v49 = vpop.xlane.xlu0 %2130 }
 0xcb8   :  { %v2175_v2 = vsel %vm2159_vm5, %v5775_v29, 0.0  ;;  %v5919_v63 = vsel %vm2159_vm5, -3e+38, %v5775_v29  ;;  %vm2158_vm6 = vcmp.ge.f32.partialorder %v5783_v21, %v2131_v49 }
 0xcb9   :  { %v5923_v54 = vadd.f32 %v2175_v2, %v5779_v30  ;;  %v2174_v24 = vsel %vm2158_vm6, %v5783_v21, 0.0  ;;  %v5927_v40 = vsel %vm2158_vm6, -3e+38, %v5783_v21  ;;  %2228 = vmax.xlane.f32.xlu1 %v5919_v63 }
 0xcba   :  { %v5931_v39 = vadd.f32 %v2174_v24, %v5787_v44  ;;  %v2137_v26 = vpop.xlane.xlu1 %2136  ;;  %2226 = vmax.xlane.f32.xlu0 %v5927_v40 }
 0xcbb   :  { %vm2161_vm7 = vcmp.ge.f32.partialorder %v5793_v9, %v2137_v26  ;;  %v2135_v29 = vpop.xlane.xlu0 %2134 }
 0xcbc   :  { %v2177_v8 = vsel %vm2161_vm7, %v5793_v9, 0.0  ;;  %v5937_v30 = vsel %vm2161_vm7, -3e+38, %v5793_v9  ;;  %vm2160_vm8 = vcmp.ge.f32.partialorder %v5801_v18, %v2135_v29 }
 0xcbd   :  { %v5941_v21 = vadd.f32 %v2177_v8, %v5797_v1  ;;  %v2176_v15 = vsel %vm2160_vm8, %v5801_v18, 0.0  ;;  %v5945_v44 = vsel %vm2160_vm8, -3e+38, %v5801_v18  ;;  %2232 = vmax.xlane.f32.xlu1 %v5937_v30 }
 0xcbe   :  { %v5949_v28 = vadd.f32 %v2176_v15, %v5805_v34  ;;  %v2141_v35 = vpop.xlane.xlu1 %2140  ;;  %2230 = vmax.xlane.f32.xlu0 %v5945_v44 }
 0xcbf   :  { %vm2163_vm9 = vcmp.ge.f32.partialorder %v5811_v45, %v2141_v35  ;;  %v2139_v9 = vpop.xlane.xlu0 %2138 }
 0xcc0   :  { %v2179_v32 = vsel %vm2163_vm9, %v5811_v45, 0.0  ;;  %v5955_v1 = vsel %vm2163_vm9, -3e+38, %v5811_v45  ;;  %vm2162_vm10 = vcmp.ge.f32.partialorder %v5819_v43, %v2139_v9 }
 0xcc1   :  { %v5959_v18 = vadd.f32 %v2179_v32, %v5815_v0  ;;  %v2178_v57 = vsel %vm2162_vm10, %v5819_v43, 0.0  ;;  %v5963_v34 = vsel %vm2162_vm10, -3e+38, %v5819_v43  ;;  %2236 = vmax.xlane.f32.xlu1 %v5955_v1 }
 0xcc2   :  { %v5967_v27 = vadd.f32 %v2178_v57, %v5823_v62  ;;  %v2145_v46 = vpop.xlane.xlu1 %2144  ;;  %2234 = vmax.xlane.f32.xlu0 %v5963_v34 }
 0xcc3   :  { %vm2165_vm11 = vcmp.ge.f32.partialorder %v5829_v25, %v2145_v46  ;;  %v2143_v45 = vpop.xlane.xlu0 %2142 }
 0xcc4   :  { %v2181_v51 = vsel %vm2165_vm11, %v5829_v25, 0.0  ;;  %v5973_v0 = vsel %vm2165_vm11, -3e+38, %v5829_v25  ;;  %vm2164_vm12 = vcmp.ge.f32.partialorder %v5837_v56, %v2143_v45 }
 0xcc5   :  { %v5977_v43 = vadd.f32 %v2181_v51, %v5833_v47  ;;  %v2180_v13 = vsel %vm2164_vm12, %v5837_v56, 0.0  ;;  %v5981_v62 = vsel %vm2164_vm12, -3e+38, %v5837_v56  ;;  %2240 = vmax.xlane.f32.xlu1 %v5973_v0 }
 0xcc6   :  { %v5985_v16 = vadd.f32 %v2180_v13, %v5841_v23  ;;  %v2149_v58 = vpop.xlane.xlu1 %2148  ;;  %2238 = vmax.xlane.f32.xlu0 %v5981_v62 }
 0xcc7   :  { %vm2167_vm13 = vcmp.ge.f32.partialorder %v5847_v6, %v2149_v58  ;;  %v2147_v25 = vpop.xlane.xlu0 %2146 }
 0xcc8   :  { %v2183_v42 = vsel %vm2167_vm13, %v5847_v6, 0.0  ;;  %v5991_v47 = vsel %vm2167_vm13, -3e+38, %v5847_v6  ;;  %vm2166_vm14 = vcmp.ge.f32.partialorder %v5855_v48, %v2147_v25 }
 0xcc9   :  { %v5995_v56 = vadd.f32 %v2183_v42, %v5851_v53  ;;  %v2182_v19 = vsel %vm2166_vm14, %v5855_v48, 0.0  ;;  %v5999_v23 = vsel %vm2166_vm14, -3e+38, %v5855_v48  ;;  %2244 = vmax.xlane.f32.xlu1 %v5991_v47 }
 0xcca   :  { %v6003_v11 = vadd.f32 %v2182_v19, %v5859_v10  ;;  %v2153_v59 = vpop.xlane.xlu1 %2152  ;;  %2242 = vmax.xlane.f32.xlu0 %v5999_v23 }
 0xccb   :  { %vm2169_vm1 = vcmp.ge.f32.partialorder %v5865_v36, %v2153_v59  ;;  %v2151_v6 = vpop.xlane.xlu0 %2150 }
 0xccc   :  { %v2185_v49 = vsel %vm2169_vm1, %v5865_v36, 0.0  ;;  %v6009_v53 = vsel %vm2169_vm1, -3e+38, %v5865_v36  ;;  %vm2168_vm15 = vcmp.ge.f32.partialorder %v5873_v31, %v2151_v6 }
 0xccd   :  { %v6013_v48 = vadd.f32 %v2185_v49, %v5869_v50  ;;  %v2184_v2 = vsel %vm2168_vm15, %v5873_v31, 0.0  ;;  %v6017_v10 = vsel %vm2168_vm15, -3e+38, %v5873_v31  ;;  %2248 = vmax.xlane.f32.xlu1 %v6009_v53 }
 0xcce   :  { %v6021_v24 = vadd.f32 %v2184_v2, %v5877_v12  ;;  %2246 = vmax.xlane.f32.xlu0 %v6017_v10 }
 0xd3e   :  { %v2221_v26 = vpop.xlane.xlu1 %2220 }
 0xd3f   :  { %vm2251_vm0 = vcmp.ge.f32.partialorder %v5883_v14, %v2221_v26  ;;  %v2219_v36 = vpop.xlane.xlu0 %2218 }
 0xd40   :  { %v2267_v29 = vsel %vm2251_vm0, %v5883_v14, 0.0  ;;  %v6027_v50 = vsel %vm2251_vm0, -3e+38, %v5883_v14  ;;  %vm2250_vm2 = vcmp.ge.f32.partialorder %v5891_v41, %v2219_v36 }
 0xd41   :  { %v6031_v31 = vadd.f32 %v2267_v29, %v5887_v33  ;;  %v2266_v8 = vsel %vm2250_vm2, %v5891_v41, 0.0  ;;  %v6035_v12 = vsel %vm2250_vm2, -3e+38, %v5891_v41  ;;  %2316 = vmax.xlane.f32.xlu1 %v6027_v50 }
 0xd42   :  { %v6039_v15 = vadd.f32 %v2266_v8, %v5895_v38  ;;  %v2225_v35 = vpop.xlane.xlu1 %2224  ;;  %2314 = vmax.xlane.f32.xlu0 %v6035_v12 }
 0xd43   :  { %vm2253_vm3 = vcmp.ge.f32.partialorder %v5901_v3, %v2225_v35  ;;  %v2223_v14 = vpop.xlane.xlu0 %2222 }
 0xd44   :  { %v2269_v9 = vsel %vm2253_vm3, %v5901_v3, 0.0  ;;  %v6045_v33 = vsel %vm2253_vm3, -3e+38, %v5901_v3  ;;  %vm2252_vm4 = vcmp.ge.f32.partialorder %v5909_v17, %v2223_v14 }
 0xd45   :  { %v6049_v41 = vadd.f32 %v2269_v9, %v5905_v55  ;;  %v2268_v32 = vsel %vm2252_vm4, %v5909_v17, 0.0  ;;  %v6053_v38 = vsel %vm2252_vm4, -3e+38, %v5909_v17  ;;  %2320 = vmax.xlane.f32.xlu1 %v6045_v33 }
 0xd46   :  { %v6057_v57 = vadd.f32 %v2268_v32, %v5913_v52  ;;  %v2229_v46 = vpop.xlane.xlu1 %2228  ;;  %2318 = vmax.xlane.f32.xlu0 %v6053_v38 }
 0xd47   :  { %vm2255_vm5 = vcmp.ge.f32.partialorder %v5919_v63, %v2229_v46  ;;  %v2227_v3 = vpop.xlane.xlu0 %2226 }
 0xd48   :  { %v2271_v45 = vsel %vm2255_vm5, %v5919_v63, 0.0  ;;  %v6063_v55 = vsel %vm2255_vm5, -3e+38, %v5919_v63  ;;  %vm2254_vm6 = vcmp.ge.f32.partialorder %v5927_v40, %v2227_v3 }
 0xd49   :  { %v6067_v17 = vadd.f32 %v2271_v45, %v5923_v54  ;;  %v2270_v51 = vsel %vm2254_vm6, %v5927_v40, 0.0  ;;  %v6071_v52 = vsel %vm2254_vm6, -3e+38, %v5927_v40  ;;  %2324 = vmax.xlane.f32.xlu1 %v6063_v55 }
 0xd4a   :  { %v6075_v13 = vadd.f32 %v2270_v51, %v5931_v39  ;;  %v2233_v58 = vpop.xlane.xlu1 %2232  ;;  %2322 = vmax.xlane.f32.xlu0 %v6071_v52 }
 0xd4b   :  { %vm2257_vm7 = vcmp.ge.f32.partialorder %v5937_v30, %v2233_v58  ;;  %v2231_v63 = vpop.xlane.xlu0 %2230  ;;  %v1327_v58 = vld [vmem:[#allocation2] sm:$0xff] }
 0xd4c   :  { %v2273_v25 = vsel %vm2257_vm7, %v5937_v30, 0.0  ;;  %v6081_v54 = vsel %vm2257_vm7, -3e+38, %v5937_v30  ;;  %vm2256_vm8 = vcmp.ge.f32.partialorder %v5945_v44, %v2231_v63  ;;  %v1329_v63 = vld [vmem:[#allocation2 + $0x10] sm:$0xff] }
 0xd4d   :  { %v6085_v40 = vadd.f32 %v2273_v25, %v5941_v21  ;;  %v2272_v42 = vsel %vm2256_vm8, %v5945_v44, 0.0  ;;  %v6089_v39 = vsel %vm2256_vm8, -3e+38, %v5945_v44  ;;  %2328 = vmax.xlane.f32.xlu1 %v6081_v54  ;;  %v1351_v25 = vstv %s101_s6 }
 0xd4e   :  { %v6093_v19 = vadd.f32 %v2272_v42, %v5949_v28  ;;  %v2237_v59 = vpop.xlane.xlu1 %2236  ;;  %2326 = vmax.xlane.f32.xlu0 %v6089_v39  ;;  %v1330_v42 = vld [vmem:[#allocation2 + $0x18] sm:$0xff] }
 0xd4f   :  { %vm2259_vm9 = vcmp.ge.f32.partialorder %v5955_v1, %v2237_v59  ;;  %v2235_v30 = vpop.xlane.xlu0 %2234  ;;  %v1331_v59 = vld [vmem:[#allocation2 + $0x20] sm:$0xff] }
 0xd50   :  { %v2275_v6 = vsel %vm2259_vm9, %v5955_v1, 0.0  ;;  %v6099_v21 = vsel %vm2259_vm9, -3e+38, %v5955_v1  ;;  %vm2258_vm10 = vcmp.ge.f32.partialorder %v5963_v34, %v2235_v30  ;;  %v1332_v30 = vld [vmem:[#allocation2 + $0x28] sm:$0xff] }
 0xd51   :  { %v6103_v44 = vadd.f32 %v2275_v6, %v5959_v18  ;;  %v2274_v49 = vsel %vm2258_vm10, %v5963_v34, 0.0  ;;  %v6107_v28 = vsel %vm2258_vm10, -3e+38, %v5963_v34  ;;  %2332 = vmax.xlane.f32.xlu1 %v6099_v21  ;;  %v1335_v6 = vunpack.c.l.bf16 %v1327_v58 }
 0xd52   :  { %v6111_v2 = vadd.f32 %v2274_v49, %v5967_v27  ;;  %v2241_v26 = vpop.xlane.xlu1 %2240  ;;  %2330 = vmax.xlane.f32.xlu0 %v6107_v28 }
 0xd53   :  { %vm2261_vm11 = vcmp.ge.f32.partialorder %v5973_v0, %v2241_v26  ;;  %v2239_v1 = vpop.xlane.xlu0 %2238 }
 0xd54   :  { %v2277_v36 = vsel %vm2261_vm11, %v5973_v0, 0.0  ;;  %v6117_v18 = vsel %vm2261_vm11, -3e+38, %v5973_v0  ;;  %vm2260_vm12 = vcmp.ge.f32.partialorder %v5981_v62, %v2239_v1  ;;  %v1333_v1 = vld [vmem:[#allocation2 + $0x30] sm:$0xff] }
 0xd55   :  { %6475 = vst [vmem:[#allocation27_spill] sm:$0xff] %v6117_v18  ;;  %v6121_v34 = vadd.f32 %v2277_v36, %v5977_v43  ;;  %v2276_v29 = vsel %vm2260_vm12, %v5981_v62, 0.0  ;;  %v6125_v27 = vsel %vm2260_vm12, -3e+38, %v5981_v62  ;;  %2336 = vmax.xlane.f32.xlu1 %v6117_v18  ;;  %v1334_v36 = vld [vmem:[#allocation2 + $0x38] sm:$0xff] }
 0xd56   :  { %6477 = vst [vmem:[#allocation29_spill] sm:$0xff] %v6125_v27  ;;  %v6129_v8 = vadd.f32 %v2276_v29, %v5985_v16  ;;  %v2245_v35 = vpop.xlane.xlu1 %2244  ;;  %2334 = vmax.xlane.f32.xlu0 %v6125_v27  ;;  %v1340_v29 = vunpack.c.h.bf16 %v1329_v63 }
 0xd57   :  { %6476 = vst [vmem:[#allocation26_spill] sm:$0xff] %v6121_v34  ;;  %vm2263_vm13 = vcmp.ge.f32.partialorder %v5991_v47, %v2245_v35  ;;  %v2243_v0 = vpop.xlane.xlu0 %2242  ;;  %v1341_v35 = vunpack.c.l.bf16 %v1330_v42 }
 0xd58   :  { %6478 = vst [vmem:[#allocation28_spill] sm:$0xff] %v6129_v8  ;;  %v2279_v14 = vsel %vm2263_vm13, %v5991_v47, 0.0  ;;  %v6135_v43 = vsel %vm2263_vm13, -3e+38, %v5991_v47  ;;  %vm2262_vm14 = vcmp.ge.f32.partialorder %v5999_v23, %v2243_v0  ;;  %v1342_v0 = vunpack.c.h.bf16 %v1330_v42 }
 0xd59   :  { %6479 = vst [vmem:[#allocation31_spill] sm:$0xff] %v6135_v43  ;;  %v6139_v62 = vadd.f32 %v2279_v14, %v5995_v56  ;;  %v2278_v9 = vsel %vm2262_vm14, %v5999_v23, 0.0  ;;  %v6143_v16 = vsel %vm2262_vm14, -3e+38, %v5999_v23  ;;  %2340 = vmax.xlane.f32.xlu1 %v6135_v43  ;;  %v1343_v14 = vunpack.c.l.bf16 %v1331_v59 }
 0xd5a   :  { %6481 = vst [vmem:[#allocation33_spill] sm:$0xff] %v6143_v16  ;;  %v6147_v32 = vadd.f32 %v2278_v9, %v6003_v11  ;;  %v2249_v46 = vpop.xlane.xlu1 %2248  ;;  %2338 = vmax.xlane.f32.xlu0 %v6143_v16  ;;  %v1344_v9 = vunpack.c.h.bf16 %v1331_v59  ;;  %v1358_v16 = vmul.f32 %v1351_v25, %v1341_v35  ;;  %v1359_v43 = vmul.f32 %v1351_v25, %v1342_v0  ;;  %v6487_v35 = vld [vmem:[#allocation36_spill] sm:$0xff] }
 0xd5b   :  { %6480 = vst [vmem:[#allocation30_spill] sm:$0xff] %v6139_v62  ;;  %vm2265_vm1 = vcmp.ge.f32.partialorder %v6009_v53, %v2249_v46  ;;  %v2247_v47 = vpop.xlane.xlu0 %2246  ;;  %v1345_v46 = vunpack.c.l.bf16 %v1332_v30  ;;  %v1360_v8 = vmul.f32 %v1351_v25, %v1343_v14  ;;  %v6490_v14 = vld [vmem:[#allocation37_spill] sm:$0xff] }
 0xd5c   :  { %6482 = vst [vmem:[#allocation32_spill] sm:$0xff] %v6147_v32  ;;  %v2281_v56 = vsel %vm2265_vm1, %v6009_v53, 0.0  ;;  %v6153_v3 = vsel %vm2265_vm1, -3e+38, %v6009_v53  ;;  %vm2264_vm15 = vcmp.ge.f32.partialorder %v6017_v10, %v2247_v47  ;;  %v1328_v53 = vld [vmem:[#allocation2 + $0x8] sm:$0xff]  ;;  %v1346_v47 = vunpack.c.h.bf16 %v1332_v30 }
 0xd5d   :  { %6483 = vst [vmem:[#allocation34_spill] sm:$0xff] %v6153_v3  ;;  %v6157_v23 = vadd.f32 %v2281_v56, %v6013_v48  ;;  %v2280_v11 = vsel %vm2264_vm15, %v6017_v10, 0.0  ;;  %v6161_v45 = vsel %vm2264_vm15, -3e+38, %v6017_v10  ;;  %2344 = vmax.xlane.f32.xlu1 %v6153_v3  ;;  %v1368_v48 = vstv %s103_s27 }
 0xd5e   :  { %6485 = vst [vmem:[#allocation44_spill] sm:$0xff] %v6161_v45  ;;  %v6165_v51 = vadd.f32 %v2280_v11, %v6021_v24  ;;  %2342 = vmax.xlane.f32.xlu0 %v6161_v45  ;;  %v1336_v10 = vunpack.c.h.bf16 %v1327_v58  ;;  %v1337_v49 = vunpack.c.l.bf16 %v1328_v53  ;;  %v1338_v26 = vunpack.c.h.bf16 %v1328_v53 }
 0xd5f   :  { %6484 = vst [vmem:[#allocation43_spill] sm:$0xff] %v6157_v23  ;;  %v1339_v24 = vunpack.c.l.bf16 %v1329_v63  ;;  %v1347_v56 = vunpack.c.l.bf16 %v1333_v1  ;;  %v1348_v11 = vunpack.c.h.bf16 %v1333_v1  ;;  %v1350_v23 = vunpack.c.h.bf16 %v1334_v36 }
 0xd60   :  { %6486 = vst [vmem:[#allocation45_spill] sm:$0xff] %v6165_v51  ;;  %v1349_v51 = vunpack.c.l.bf16 %v1334_v36  ;;  %v1352_v45 = vmul.f32 %v1351_v25, %v1335_v6  ;;  %v1353_v3 = vmul.f32 %v1351_v25, %v1336_v10  ;;  %v1354_v32 = vmul.f32 %v1351_v25, %v1337_v49 }
 0xd61   :  { %v1355_v58 = vmul.f32 %v1351_v25, %v1338_v26  ;;  %v1356_v62 = vmul.f32 %v1351_v25, %v1339_v24  ;;  %v1357_v53 = vmul.f32 %v1351_v25, %v1340_v29  ;;  %v1361_v63 = vmul.f32 %v1351_v25, %v1344_v9  ;;  %v6491_v9 = vld [vmem:[#allocation40_spill] sm:$0xff] }
 0xd62   :  { %v1362_v34 = vmul.f32 %v1351_v25, %v1345_v46  ;;  %v1363_v42 = vmul.f32 %v1351_v25, %v1346_v47  ;;  %v1364_v27 = vmul.f32 %v1351_v25, %v1347_v56  ;;  %v1365_v59 = vmul.f32 %v1351_v25, %v1348_v11  ;;  %v6492_v46 = vld [vmem:[#allocation39_spill] sm:$0xff]  ;;  %v6493_v47 = vld [vmem:[#allocation42_spill] sm:$0xff]  ;;  %v6494_v56 = vld [vmem:[#allocation41_spill] sm:$0xff] }
 0xd63   :  { %v1366_v18 = vmul.f32 %v1351_v25, %v1349_v51  ;;  %v1367_v30 = vmul.f32 %v1351_v25, %v1350_v23  ;;  %v1369_v1 = vmul.f32 %v1368_v48, %v4876_v4  ;;  %v1370_v36 = vmul.f32 %v1368_v48, %v4872_v20  ;;  %v6488_v51 = vld [vmem:[#allocation35_spill] sm:$0xff]  ;;  %v6489_v25 = vld [vmem:[#allocation38_spill] sm:$0xff] }
 0xd64   :  { %v1371_v6 = vmul.f32 %v1368_v48, %v4886_v7  ;;  %v1372_v10 = vmul.f32 %v1368_v48, %v4882_v22  ;;  %v1373_v49 = vmul.f32 %v1368_v48, %v4896_v5  ;;  %v1374_v26 = vmul.f32 %v1368_v48, %v4892_v37 }
 0xd65   :  { %v1375_v24 = vmul.f32 %v1368_v48, %v4906_v61  ;;  %v1376_v29 = vmul.f32 %v1368_v48, %v4902_v60  ;;  %v1377_v0 = vmul.f32 %v1368_v48, %v6487_v35  ;;  %v1378_v23 = vmul.f32 %v1368_v48, %v6488_v51 }
 0xd66   :  { %v1379_v4 = vmul.f32 %v1368_v48, %v6489_v25  ;;  %v1380_v20 = vmul.f32 %v1368_v48, %v6490_v14  ;;  %v1381_v7 = vmul.f32 %v1368_v48, %v6491_v9  ;;  %v1382_v22 = vmul.f32 %v1368_v48, %v6492_v46 }
 0xd67   :  { %v1383_v5 = vmul.f32 %v1368_v48, %v6493_v47  ;;  %v1384_v37 = vmul.f32 %v1368_v48, %v6494_v56  ;;  %v6188_v11 = vadd.f32 %v1369_v1, %v1352_v45  ;;  %v6190_v61 = vadd.f32 %v1370_v36, %v1353_v3 }
 0xd68   :  { %v6192_v60 = vadd.f32 %v1371_v6, %v1354_v32  ;;  %v6194_v35 = vadd.f32 %v1372_v10, %v1355_v58  ;;  %v6196_v51 = vadd.f32 %v1373_v49, %v1356_v62  ;;  %v6198_v25 = vadd.f32 %v1374_v26, %v1357_v53  ;;  %v6495_v26 = vld [vmem:[#allocation27_spill] sm:$0xff] }
 0xd69   :  { %v6200_v14 = vadd.f32 %v1375_v24, %v1358_v16  ;;  %v6202_v9 = vadd.f32 %v1376_v29, %v1359_v43  ;;  %v6204_v46 = vadd.f32 %v1377_v0, %v1360_v8  ;;  %v6206_v47 = vadd.f32 %v1378_v23, %v1361_v63  ;;  %v6496_v29 = vld [vmem:[#allocation29_spill] sm:$0xff]  ;;  %v6497_v0 = vld [vmem:[#allocation26_spill] sm:$0xff] }
 0xd6a   :  { %v6208_v45 = vadd.f32 %v1379_v4, %v1362_v34  ;;  %v6210_v3 = vadd.f32 %v1380_v20, %v1363_v42  ;;  %v6212_v32 = vadd.f32 %v1381_v7, %v1364_v27  ;;  %v6214_v48 = vadd.f32 %v1382_v22, %v1365_v59  ;;  %v6499_v20 = vld [vmem:[#allocation31_spill] sm:$0xff]  ;;  %v6500_v22 = vld [vmem:[#allocation33_spill] sm:$0xff] }
 0xd6b   :  { %v6216_v62 = vadd.f32 %v1383_v5, %v1366_v18  ;;  %v6218_v58 = vadd.f32 %v1384_v37, %v1367_v30  ;;  %v6501_v5 = vld [vmem:[#allocation30_spill] sm:$0xff] }
 0xdce   :  { %v2317_v16 = vpop.xlane.xlu1 %2316 }
 0xdcf   :  { %vm2347_vm0 = vcmp.ge.f32.partialorder %v6027_v50, %v2317_v16  ;;  %v2315_v43 = vpop.xlane.xlu0 %2314  ;;  %v6502_v16 = vld [vmem:[#allocation32_spill] sm:$0xff] }
 0xdd0   :  { %v2363_v8 = vsel %vm2347_vm0, %v6027_v50, 0.0  ;;  %vm2346_vm2 = vcmp.ge.f32.partialorder %v6035_v12, %v2315_v43 }
 0xdd1   :  { %v6224_v34 = vadd.f32 %v2363_v8, %v6031_v31  ;;  %v2362_v27 = vsel %vm2346_vm2, %v6035_v12, 0.0 }
 0xdd2   :  { %v6228_v53 = vadd.f32 %v2362_v27, %v6039_v15  ;;  %v2321_v18 = vpop.xlane.xlu1 %2320  ;;  %v6503_v27 = vld [vmem:[#allocation34_spill] sm:$0xff] }
 0xdd3   :  { %vm2349_vm3 = vcmp.ge.f32.partialorder %v6045_v33, %v2321_v18  ;;  %v2319_v63 = vpop.xlane.xlu0 %2318 }
 0xdd4   :  { %v2365_v42 = vsel %vm2349_vm3, %v6045_v33, 0.0  ;;  %vm2348_vm4 = vcmp.ge.f32.partialorder %v6053_v38, %v2319_v63 }
 0xdd5   :  { %v6234_v50 = vadd.f32 %v2365_v42, %v6049_v41  ;;  %v2364_v59 = vsel %vm2348_vm4, %v6053_v38, 0.0  ;;  %v6504_v42 = vld [vmem:[#allocation44_spill] sm:$0xff] }
 0xdd6   :  { %v6238_v31 = vadd.f32 %v2364_v59, %v6057_v57  ;;  %v2325_v12 = vpop.xlane.xlu1 %2324  ;;  %v6505_v59 = vld [vmem:[#allocation43_spill] sm:$0xff] }
 0xdd7   :  { %vm2351_vm5 = vcmp.ge.f32.partialorder %v6063_v55, %v2325_v12  ;;  %v2323_v15 = vpop.xlane.xlu0 %2322 }
 0xdd8   :  { %v2367_v30 = vsel %vm2351_vm5, %v6063_v55, 0.0  ;;  %vm2350_vm6 = vcmp.ge.f32.partialorder %v6071_v52, %v2323_v15 }
 0xdd9   :  { %v6244_v33 = vadd.f32 %v2367_v30, %v6067_v17  ;;  %v2366_v1 = vsel %vm2350_vm6, %v6071_v52, 0.0  ;;  %v6506_v30 = vld [vmem:[#allocation45_spill] sm:$0xff] }
 0xdda   :  { %v6248_v41 = vadd.f32 %v2366_v1, %v6075_v13  ;;  %v2329_v38 = vpop.xlane.xlu1 %2328 }
 0xddb   :  { %vm2353_vm7 = vcmp.ge.f32.partialorder %v6081_v54, %v2329_v38  ;;  %v2327_v57 = vpop.xlane.xlu0 %2326 }
 0xddc   :  { %v2369_v36 = vsel %vm2353_vm7, %v6081_v54, 0.0  ;;  %vm2352_vm8 = vcmp.ge.f32.partialorder %v6089_v39, %v2327_v57 }
 0xddd   :  { %v6254_v55 = vadd.f32 %v2369_v36, %v6085_v40  ;;  %v2368_v6 = vsel %vm2352_vm8, %v6089_v39, 0.0 }
 0xdde   :  { %v6258_v17 = vadd.f32 %v2368_v6, %v6093_v19  ;;  %v2333_v52 = vpop.xlane.xlu1 %2332 }
 0xddf   :  { %vm2355_vm9 = vcmp.ge.f32.partialorder %v6099_v21, %v2333_v52  ;;  %v2331_v13 = vpop.xlane.xlu0 %2330 }
 0xde0   :  { %v2371_v10 = vsel %vm2355_vm9, %v6099_v21, 0.0  ;;  %vm2354_vm10 = vcmp.ge.f32.partialorder %v6107_v28, %v2331_v13 }
 0xde1   :  { %v6264_v54 = vadd.f32 %v2371_v10, %v6103_v44  ;;  %v2370_v49 = vsel %vm2354_vm10, %v6107_v28, 0.0  ;;  %v6498_v44 = vld [vmem:[#allocation28_spill] sm:$0xff] }
 0xde2   :  { %v6268_v40 = vadd.f32 %v2370_v49, %v6111_v2  ;;  %v2337_v39 = vpop.xlane.xlu1 %2336 }
 0xde3   :  { %vm2357_vm11 = vcmp.ge.f32.partialorder %v6495_v26, %v2337_v39  ;;  %v2335_v19 = vpop.xlane.xlu0 %2334 }
 0xde4   :  { %v2373_v24 = vsel %vm2357_vm11, %v6495_v26, 0.0  ;;  %vm2356_vm12 = vcmp.ge.f32.partialorder %v6496_v29, %v2335_v19 }
 0xde5   :  { %v6274_v21 = vadd.f32 %v2373_v24, %v6497_v0  ;;  %v2372_v23 = vsel %vm2356_vm12, %v6496_v29, 0.0 }
 0xde6   :  { %v6278_v4 = vadd.f32 %v2372_v23, %v6498_v44  ;;  %v2341_v28 = vpop.xlane.xlu1 %2340 }
 0xde7   :  { %vm2359_vm13 = vcmp.ge.f32.partialorder %v6499_v20, %v2341_v28  ;;  %v2339_v2 = vpop.xlane.xlu0 %2338 }
 0xde8   :  { %v2375_v7 = vsel %vm2359_vm13, %v6499_v20, 0.0  ;;  %vm2358_vm14 = vcmp.ge.f32.partialorder %v6500_v22, %v2339_v2 }
 0xde9   :  { %v6284_v56 = vadd.f32 %v2375_v7, %v6501_v5  ;;  %v2374_v37 = vsel %vm2358_vm14, %v6500_v22, 0.0 }
 0xdea   :  { %v6288_v43 = vadd.f32 %v2374_v37, %v6502_v16  ;;  %v2345_v8 = vpop.xlane.xlu1 %2344 }
 0xdeb   :  { %vm2361_vm1 = vcmp.ge.f32.partialorder %v6503_v27, %v2345_v8  ;;  %v2343_v18 = vpop.xlane.xlu0 %2342 }
 0xdec   :  { %v2377_v63 = vsel %vm2361_vm1, %v6503_v27, 0.0  ;;  %vm2360_vm15 = vcmp.ge.f32.partialorder %v6504_v42, %v2343_v18 }
 0xded   :  { %v6294_v12 = vadd.f32 %v2377_v63, %v6505_v59  ;;  %v2376_v15 = vsel %vm2360_vm15, %v6504_v42, 0.0 }
 0xdee   :  { %v6298_v1 = vadd.f32 %v2376_v15, %v6506_v30 }
 0xdef   :  { %3382 = dma.done.wait [#allocation4 + $0x1], 1024 }
 0xdf0   :  { %3383 = vsyncadd [#allocation4 + $0x1], 4294966272  ;;  %v2494_v38 = vld [vmem:[#allocation12] sm:$0xff]  ;;  %v2495_v57 = vld [vmem:[#allocation12 + $0x8] sm:$0xff]  ;;  %v6302_v19 = vstv %s102_s26  ;;  %v6306_v24 = vstv %s104_s28  ;;  %s3398_s5 = smov [#allocation13]  }
 0xdf1   :  { %v2496_v36 = vld [vmem:[#allocation12 + $0x10] sm:$0xff]  ;;  %v2510_v6 = vpack.c.bf16 %v2495_v57, %v2494_v38  ;;  %v2497_v52 = vld [vmem:[#allocation12 + $0x18] sm:$0xff]  ;;  %v2498_v10 = vld [vmem:[#allocation12 + $0x20] sm:$0xff]  ;;  %v2454_v2 = vmul.f32 %v6306_v24, %v6228_v53  ;;  %v2455_v7 = vmul.f32 %v6306_v24, %v6224_v34  ;;  %s2741_s2 = sshll.u32 %s3398_s5, 4  ;;  %s2742_s2 = int_to_ptr.vmem [resolvable:$true] %s2741_s2 }
 0xdf2   :  { %v2511_v13 = vpack.c.bf16 %v2497_v52, %v2496_v36  ;;  %v2499_v49 = vld [vmem:[#allocation12 + $0x28] sm:$0xff]  ;;  %v2396_v26 = vld [vmem:[#allocation3] sm:$0xff]  ;;  %v2500_v29 = vld [vmem:[#allocation12 + $0x30] sm:$0xff]  ;;  %s3352_s25 = scalar_lea.vmem %s2742_s2, 2048  ;;  %p3357_p2 = scmp.lt.s32.totalorder %s2742_s2, %s2742_s2 }
 0xdf3   :  { %2979 = vmatprep.subr.bf16.mxu1 %v2510_v6  ;;  %v2512_v39 = vpack.c.bf16 %v2499_v49, %v2498_v10  ;;  %v2501_v0 = vld [vmem:[#allocation12 + $0x38] sm:$0xff]  ;;  %v2404_v23 = vunpack.c.l.bf16 %v2396_v26  ;;  %v2405_v44 = vunpack.c.h.bf16 %v2396_v26  ;;  %v2502_v5 = vld [vmem:[#allocation12 + $0x40] sm:$0xff]  ;;  %v2503_v37 = vld [vmem:[#allocation12 + $0x48] sm:$0xff]  ;;  %p3353_p1 = scmp.ne.s32.totalorder %s2742_s2, %s3352_s25  ;;  %p3358_p3 = scmp.lt.s32.totalorder %s3352_s25, %s3352_s25 }
 0xdf4   :  { %2980 = vmatpush3.bf16.msra.mxu1 %v2510_v6  ;;  %v2513_v22 = vpack.c.bf16 %v2501_v0, %v2500_v29  ;;  %v2397_v63 = vld [vmem:[#allocation3 + $0x8] sm:$0xff]  ;;  %v2398_v42 = vld [vmem:[#allocation3 + $0x10] sm:$0xff]  ;;  %v2514_v59 = vpack.c.bf16 %v2503_v37, %v2502_v5  ;;  %v2505_v53 = vld [vmem:[#allocation12 + $0x58] sm:$0xff]  ;;  %v2456_v29 = vmul.f32 %v6306_v24, %v6238_v31  ;;  %v2457_v0 = vmul.f32 %v6306_v24, %v6234_v50 }
 0xdf5   :  { %2981 = vmatprep.subr.bf16.mxu1 %v2511_v13  ;;  %v2421_v28 = vmul.f32 %v6302_v19, %v2404_v23  ;;  %v2422_v20 = vmul.f32 %v6302_v19, %v2405_v44  ;;  %v2504_v15 = vld [vmem:[#allocation12 + $0x50] sm:$0xff]  ;;  %v2406_v38 = vunpack.c.l.bf16 %v2397_v63  ;;  %v2407_v34 = vunpack.c.h.bf16 %v2397_v63  ;;  %v2507_v6 = vld [vmem:[#allocation12 + $0x68] sm:$0xff]  ;;  %v2400_v23 = vld [vmem:[#allocation3 + $0x20] sm:$0xff]  ;;  %p3359_p4 = por %p3358_p3, %p3357_p2 }
 0xdf6   :  { %v2408_v57 = vunpack.c.l.bf16 %v2398_v42  ;;  %v2409_v36 = vunpack.c.h.bf16 %v2398_v42  ;;  %v2508_v44 = vld [vmem:[#allocation12 + $0x70] sm:$0xff]  ;;  %v2412_v50 = vunpack.c.l.bf16 %v2400_v23 }
 0xdf7   :  { %v2437_v16 = vadd.f32 %v2421_v28, %v6188_v11  ;;  %v2438_v8 = vadd.f32 %v2422_v20, %v6190_v61  ;;  %v2515_v11 = vpack.c.bf16 %v2505_v53, %v2504_v15  ;;  %v2506_v61 = vld [vmem:[#allocation12 + $0x60] sm:$0xff]  ;;  %v2423_v52 = vmul.f32 %v6302_v19, %v2406_v38  ;;  %v2509_v28 = vld [vmem:[#allocation12 + $0x78] sm:$0xff]  ;;  %v2402_v53 = vld [vmem:[#allocation3 + $0x30] sm:$0xff]  ;;  %p3360_p5 = pnand %p3359_p4, %p3353_p1 }
 0xdf8   :  { %2982 = vmatpush3.bf16.msra.mxu1 %v2511_v13  ;;  %v2424_v13 = vmul.f32 %v6302_v19, %v2407_v34  ;;  %v2425_v10 = vmul.f32 %v6302_v19, %v2408_v57  ;;  %v2426_v49 = vmul.f32 %v6302_v19, %v2409_v36  ;;  %v2516_v26 = vpack.c.bf16 %v2507_v6, %v2506_v61 }
 0xdf9   :  { %2983 = vmatprep.subr.bf16.mxu1 %v2512_v39  ;;  %v2470_v27 = vadd.f32 %v2454_v2, %v2437_v16  ;;  %v2471_v18 = vadd.f32 %v2455_v7, %v2438_v8  ;;  %v2458_v20 = vmul.f32 %v6306_v24, %v6248_v41  ;;  %v2459_v2 = vmul.f32 %v6306_v24, %v6244_v33 }
 0xdfa   :  { %v2439_v5 = vadd.f32 %v2423_v52, %v6192_v60  ;;  %v2440_v37 = vadd.f32 %v2424_v13, %v6194_v35  ;;  %v2441_v31 = vadd.f32 %v2425_v10, %v6196_v51  ;;  %v2442_v16 = vadd.f32 %v2426_v49, %v6198_v25  ;;  %v2401_v51 = vld [vmem:[#allocation3 + $0x28] sm:$0xff] }
 0xdfb   :  { %v2486_v30 = vpack.c.bf16 %v2471_v18, %v2470_v27  ;;  %v2413_v8 = vunpack.c.h.bf16 %v2400_v23  ;;  %v2517_v27 = vpack.c.bf16 %v2509_v28, %v2508_v44  ;;  %v2429_v60 = vmul.f32 %v6302_v19, %v2412_v50 }
 0xdfc   :  { %2984 = vmatpush3.bf16.msra.mxu1 %v2512_v39  ;;  %v2399_v39 = vld [vmem:[#allocation3 + $0x18] sm:$0xff]  ;;  %v2472_v33 = vadd.f32 %v2456_v29, %v2439_v5  ;;  %v2473_v63 = vadd.f32 %v2457_v0, %v2440_v37  ;;  %v2474_v42 = vadd.f32 %v2458_v20, %v2441_v31  ;;  %v2460_v25 = vmul.f32 %v6306_v24, %v6258_v17 }
 0xdfd   :  { %2985 = vmatprep.subr.bf16.mxu1 %v2513_v22  ;;  %2995 = vmatprep.mubr.bf16.mxu1 %v2486_v30  ;;  %v2410_v7 = vunpack.c.l.bf16 %v2399_v39  ;;  %v2430_v35 = vmul.f32 %v6302_v19, %v2413_v8  ;;  %v2461_v15 = vmul.f32 %v6306_v24, %v6254_v55  ;;  %v2462_v34 = vmul.f32 %v6306_v24, %v6268_v40 }
 0xdfe   :  { %3027 = vmatprep.mubr.bf16.mxu0 %v2486_v30  ;;  %v2463_v57 = vmul.f32 %v6306_v24, %v6264_v54  ;;  %v6346_v36 = vpack.c.bf16 %v2473_v63, %v2472_v33  ;;  %v2414_v61 = vunpack.c.l.bf16 %v2401_v51  ;;  %v2415_v17 = vunpack.c.h.bf16 %v2401_v51 }
 0xdff   :  { %v2427_v41 = vmul.f32 %v6302_v19, %v2410_v7  ;;  %v2445_v55 = vadd.f32 %v2429_v60, %v6204_v46  ;;  %v2446_v6 = vadd.f32 %v2430_v35, %v6206_v47  ;;  %v2417_v52 = vunpack.c.h.bf16 %v2402_v53 }
 0xe00   :  { %2986 = vmatpush3.bf16.msra.mxu1 %v2513_v22  ;;  %v2411_v22 = vunpack.c.h.bf16 %v2399_v39  ;;  %v2431_v40 = vmul.f32 %v6302_v19, %v2414_v61  ;;  %v2432_v54 = vmul.f32 %v6302_v19, %v2415_v17  ;;  %v2464_v29 = vmul.f32 %v6306_v24, %v6278_v4 }
 0xe01   :  { %2987 = vmatprep.subr.bf16.mxu1 %v2514_v59  ;;  %v2443_v30 = vadd.f32 %v2427_v41, %v6200_v14  ;;  %v2416_v14 = vunpack.c.l.bf16 %v2402_v53  ;;  %v2478_v10 = vadd.f32 %v2462_v34, %v2445_v55  ;;  %v2479_v49 = vadd.f32 %v2463_v57, %v2446_v6 }
 0xe02   :  { %v2428_v18 = vmul.f32 %v6302_v19, %v2411_v22  ;;  %v2434_v46 = vmul.f32 %v6302_v19, %v2417_v52  ;;  %v2465_v0 = vmul.f32 %v6306_v24, %v6274_v21  ;;  %v2466_v23 = vmul.f32 %v6306_v24, %v6288_v43 }
 0xe03   :  { %v2433_v39 = vmul.f32 %v6302_v19, %v2416_v14  ;;  %v2447_v44 = vadd.f32 %v2431_v40, %v6208_v45  ;;  %v2448_v28 = vadd.f32 %v2432_v54, %v6210_v3  ;;  %v2490_v7 = vpack.c.bf16 %v2479_v49, %v2478_v10 }
 0xe04   :  { %2988 = vmatpush3.bf16.msra.mxu1 %v2514_v59  ;;  %v2475_v59 = vadd.f32 %v2459_v2, %v2442_v16  ;;  %v2444_v38 = vadd.f32 %v2428_v18, %v6202_v9  ;;  %v2476_v9 = vadd.f32 %v2460_v25, %v2443_v30  ;;  %v2450_v5 = vadd.f32 %v2434_v46, %v6214_v48 }
 0xe05   :  { %2989 = vmatprep.subr.bf16.mxu1 %v2515_v11  ;;  %v2449_v22 = vadd.f32 %v2433_v39, %v6212_v32  ;;  %v2467_v4 = vmul.f32 %v6306_v24, %v6284_v56  ;;  %v2480_v21 = vadd.f32 %v2464_v29, %v2447_v44  ;;  %v2481_v37 = vadd.f32 %v2465_v0, %v2448_v28 }
 0xe06   :  { %v2477_v13 = vadd.f32 %v2461_v15, %v2444_v38  ;;  %v2468_v16 = vmul.f32 %v6306_v24, %v6298_v1  ;;  %v2469_v50 = vmul.f32 %v6306_v24, %v6294_v12 }
 0xe07   :  { %v2482_v3 = vadd.f32 %v2466_v23, %v2449_v22  ;;  %v2483_v31 = vadd.f32 %v2467_v4, %v2450_v5  ;;  %v6377_v32 = vpack.c.bf16 %v2481_v37, %v2480_v21 }
 0xe08   :  { %2990 = vmatpush3.bf16.msra.mxu1 %v2515_v11  ;;  %v6348_v11 = vpack.c.bf16 %v2475_v59, %v2474_v42  ;;  %v6358_v47 = vpack.c.bf16 %v2477_v13, %v2476_v9 }
 0xe09   :  { %2991 = vmatprep.subr.bf16.mxu1 %v2516_v26  ;;  %v6383_v8 = vpack.c.bf16 %v2483_v31, %v2482_v3 }
 0xe0c   :  { %2992 = vmatpush3.bf16.msra.mxu1 %v2516_v26  ;;  %v2403_v26 = vld [vmem:[#allocation3 + $0x38] sm:$0xff] }
 0xe0d   :  { %2993 = vmatprep.subr.bf16.mxu1 %v2517_v27  ;;  %v2418_v20 = vunpack.c.l.bf16 %v2403_v26  ;;  %v2419_v2 = vunpack.c.h.bf16 %v2403_v26 }
 0xe0f   :  { %v2435_v43 = vmul.f32 %v6302_v19, %v2418_v20  ;;  %v2436_v45 = vmul.f32 %v6302_v19, %v2419_v2 }
 0xe10   :  { %2994 = vmatpush3.bf16.msra.mxu1 %v2517_v27 }
 0xe11   :  { %v2451_v48 = vadd.f32 %v2435_v43, %v6216_v62  ;;  %v2452_v56 = vadd.f32 %v2436_v45, %v6218_v58 }
 0xe13   :  { %2996 = vmatmul.mubr.bf16.vlgmr.msra.gmra.mrb[16].mxu1 %v6346_v36  ;;  %v2484_v19 = vadd.f32 %v2468_v16, %v2451_v48  ;;  %v2485_v27 = vadd.f32 %v2469_v50, %v2452_v56 }
 0xe14   :  { %2999 = vmatprep.mubr.bf16.mxu1 %v6348_v11 }
 0xe15   :  { %v6387_v41 = vpack.c.bf16 %v2485_v27, %v2484_v19 }
 0xe1b   :  { %3000 = vmatmul.mubr.bf16.gmra.mrb[20].mxu1 %v6358_v47 }
 0xe1c   :  { %3003 = vmatprep.mubr.bf16.mxu1 %v2490_v7 }
 0xe23   :  { %3004 = vmatmul.mubr.bf16.gmra.mrb[24].mxu1 %v6377_v32 }
 0xe24   :  { %3007 = vmatprep.mubr.bf16.mxu1 %v6383_v8 }
 0xe2b   :  { %3008 = vmatmul.mubr.bf16.gmra.mrb[28].mxu1 %v6387_v41 }
 0xe2c   :  { %3035 = vmatprep.mubr.bf16.mxu1 %v2490_v7 }
 0xee6   :  { %v2997_v1 = vpop.f32.mrb[16].mxu1 }
 0xee7   :  { %v2552_v62 = vpop.f32.mrb[17].mxu1 }
 0xee8   :  { %v2998_v18 = vpop.f32.mrb[18].mxu1 }
 0xee9   :  { %v2616_v58 = vpack.c.bf16 %v2998_v18, %v2997_v1  ;;  %v2555_v33 = vpop.f32.mrb[19].mxu1 }
 0xeea   :  { %v2615_v63 = vpack.c.bf16 %v2555_v33, %v2552_v62 }
 0xeec   :  { %3011 = vmatprep.subr.bf16.mxu0 %v2615_v63  ;;  %3139 = vmatprep.subr.bf16.mxu1 %v2615_v63 }
 0xeed   :  { %3012 = vmatpush3.bf16.msra.mxu0 %v2615_v63  ;;  %3147 = vmatpush3.bf16.msra.mxu1 %v2615_v63 }
 0xeee   :  { %v3001_v12 = vpop.f32.mrb[20].mxu1  ;;  %3013 = vmatprep.subr.bf16.mxu0 %v2616_v58  ;;  %3140 = vmatprep.subr.bf16.mxu1 %v2616_v58 }
 0xeef   :  { %v2568_v24 = vpop.f32.mrb[21].mxu1 }
 0xef0   :  { %v3002_v42 = vpop.f32.mrb[22].mxu1 }
 0xef1   :  { %v2618_v59 = vpack.c.bf16 %v3002_v42, %v3001_v12  ;;  %v2571_v60 = vpop.f32.mrb[23].mxu1  ;;  %3014 = vmatpush3.bf16.msra.mxu0 %v2616_v58  ;;  %3148 = vmatpush3.bf16.msra.mxu1 %v2616_v58 }
 0xef2   :  { %v2617_v35 = vpack.c.bf16 %v2571_v60, %v2568_v24 }
 0xef4   :  { %3015 = vmatprep.subr.bf16.mxu0 %v2617_v35  ;;  %3141 = vmatprep.subr.bf16.mxu1 %v2617_v35 }
 0xef5   :  { %3016 = vmatpush3.bf16.msra.mxu0 %v2617_v35  ;;  %3149 = vmatpush3.bf16.msra.mxu1 %v2617_v35 }
 0xef6   :  { %v3005_v51 = vpop.f32.mrb[24].mxu1  ;;  %3017 = vmatprep.subr.bf16.mxu0 %v2618_v59  ;;  %3142 = vmatprep.subr.bf16.mxu1 %v2618_v59 }
 0xef7   :  { %v2584_v25 = vpop.f32.mrb[25].mxu1 }
 0xef8   :  { %v3006_v15 = vpop.f32.mrb[26].mxu1 }
 0xef9   :  { %v2620_v53 = vpack.c.bf16 %v3006_v15, %v3005_v51  ;;  %v2587_v30 = vpop.f32.mrb[27].mxu1  ;;  %3018 = vmatpush3.bf16.msra.mxu0 %v2618_v59  ;;  %3150 = vmatpush3.bf16.msra.mxu1 %v2618_v59 }
 0xefa   :  { %v2619_v38 = vpack.c.bf16 %v2587_v30, %v2584_v25 }
 0xefc   :  { %3019 = vmatprep.subr.bf16.mxu0 %v2619_v38  ;;  %3143 = vmatprep.subr.bf16.mxu1 %v2619_v38 }
 0xefd   :  { %3020 = vmatpush3.bf16.msra.mxu0 %v2619_v38  ;;  %3151 = vmatpush3.bf16.msra.mxu1 %v2619_v38 }
 0xefe   :  { %v3009_v34 = vpop.f32.mrb[28].mxu1  ;;  %3021 = vmatprep.subr.bf16.mxu0 %v2620_v53  ;;  %3144 = vmatprep.subr.bf16.mxu1 %v2620_v53 }
 0xeff   :  { %v2600_v57 = vpop.f32.mrb[29].mxu1 }
 0xf00   :  { %v3010_v61 = vpop.f32.mrb[30].mxu1 }
 0xf01   :  { %v2622_v17 = vpack.c.bf16 %v3010_v61, %v3009_v34  ;;  %v2603_v55 = vpop.f32.mrb[31].mxu1  ;;  %3022 = vmatpush3.bf16.msra.mxu0 %v2620_v53  ;;  %3152 = vmatpush3.bf16.msra.mxu1 %v2620_v53 }
 0xf02   :  { %v2621_v6 = vpack.c.bf16 %v2603_v55, %v2600_v57 }
 0xf04   :  { %3023 = vmatprep.subr.bf16.mxu0 %v2621_v6  ;;  %3145 = vmatprep.subr.bf16.mxu1 %v2621_v6 }
 0xf05   :  { %3024 = vmatpush3.bf16.msra.mxu0 %v2621_v6  ;;  %3153 = vmatpush3.bf16.msra.mxu1 %v2621_v6 }
 0xf06   :  { %3025 = vmatprep.subr.bf16.mxu0 %v2622_v17  ;;  %3146 = vmatprep.subr.bf16.mxu1 %v2622_v17 }
 0xf09   :  { %3026 = vmatpush3.bf16.msra.mxu0 %v2622_v17  ;;  %3154 = vmatpush3.bf16.msra.mxu1 %v2622_v17 }
 0xf0c   :  { %3028 = vmatmul.mubr.bf16.vlgmr.msra.gmra.mrb[48].mxu0 %v6346_v36  ;;  %3036 = vmatmul.mubr.bf16.vlgmr.msra.gmra.mrb[32].mxu1 %v6377_v32 }
 0xf0d   :  { %3031 = vmatprep.mubr.bf16.mxu0 %v6348_v11  ;;  %3039 = vmatprep.mubr.bf16.mxu1 %v6383_v8 }
 0xf14   :  { %3032 = vmatmul.mubr.bf16.gmra.mrb[52].mxu0 %v6358_v47  ;;  %3040 = vmatmul.mubr.bf16.gmra.mrb[36].mxu1 %v6387_v41 }
 0xfdf   :  { %v3029_v14 = vpop.f32.mrb[48].mxu0  ;;  %v3037_v52 = vpop.f32.mrb[32].mxu1 }
 0xfe0   :  { %2722 = vst [vmem:[#allocation13 + $0x10] sm:$0xff] %v3029_v14  ;;  %2730 = vst [vmem:[#allocation13 + $0x50] sm:$0xff] %v3037_v52  ;;  %v2657_v9 = vpop.f32.mrb[49].mxu0  ;;  %v2689_v13 = vpop.f32.mrb[33].mxu1 }
 0xfe1   :  { %2720 = vst [vmem:[#allocation13] sm:$0xff] %v2657_v9  ;;  %2728 = vst [vmem:[#allocation13 + $0x40] sm:$0xff] %v2689_v13  ;;  %v3030_v40 = vpop.f32.mrb[50].mxu0  ;;  %v3038_v36 = vpop.f32.mrb[34].mxu1 }
 0xfe2   :  { %2723 = vst [vmem:[#allocation13 + $0x18] sm:$0xff] %v3030_v40  ;;  %2731 = vst [vmem:[#allocation13 + $0x58] sm:$0xff] %v3038_v36  ;;  %v2660_v54 = vpop.f32.mrb[51].mxu0  ;;  %v2692_v11 = vpop.f32.mrb[35].mxu1 }
 0xfe3   :  { %2721 = vst [vmem:[#allocation13 + $0x8] sm:$0xff] %v2660_v54  ;;  %2729 = vst [vmem:[#allocation13 + $0x48] sm:$0xff] %v2692_v11 }
 0xfe7   :  { %v3033_v10 = vpop.f32.mrb[52].mxu0  ;;  %v3041_v49 = vpop.f32.mrb[36].mxu1 }
 0xfe8   :  { %2726 = vst [vmem:[#allocation13 + $0x30] sm:$0xff] %v3033_v10  ;;  %2734 = vst [vmem:[#allocation13 + $0x70] sm:$0xff] %v3041_v49  ;;  %v2673_v39 = vpop.f32.mrb[53].mxu0  ;;  %v2705_v46 = vpop.f32.mrb[37].mxu1 }
 0xfe9   :  { %2724 = vst [vmem:[#allocation13 + $0x20] sm:$0xff] %v2673_v39  ;;  %2732 = vst [vmem:[#allocation13 + $0x60] sm:$0xff] %v2705_v46  ;;  %v3034_v26 = vpop.f32.mrb[54].mxu0  ;;  %v3042_v47 = vpop.f32.mrb[38].mxu1 }
 0xfea   :  { %2727 = vst [vmem:[#allocation13 + $0x38] sm:$0xff] %v3034_v26  ;;  %2735 = vst [vmem:[#allocation13 + $0x78] sm:$0xff] %v3042_v47  ;;  %v2676_v29 = vpop.f32.mrb[55].mxu0  ;;  %v2708_v0 = vpop.f32.mrb[39].mxu1 }
 0xfeb   :  { %2725 = vst [vmem:[#allocation13 + $0x28] sm:$0xff] %v2676_v29  ;;  %2733 = vst [vmem:[#allocation13 + $0x68] sm:$0xff] %v2708_v0 }
 0xfec   :  { %3363 = shalt.err (!%p3360_p5)
}
 0xfed   :  { %s3364_s27 = scalar_lea.hbm %s6418_s7, 2048 }
 0xfee   :  { %p3365_p6 = scmp.ne.s32.totalorder %s6418_s7, %s3364_s27  ;;  %p3368_p7 = scmp.lt.u32.totalorder %s3364_s27, %s6418_s7 }
 0xff0   :  { %p3370_p8 = pnand %p3368_p7, %p3365_p6 }
 0xff2   :  { %3373 = shalt.err (!%p3370_p8)
}
 0xff3   :  { %2747 = dma.vmem_to_hbm [thread:$0]  %s2742_s2, 2048, %s6418_s7, [#allocation7], %s3391_s0, %s3391_s0, %s3392_s11  }
 0xff4   :  { %3384 = dma.done.wait [#allocation7], 2048  }
 0xff5   :  { %3385 = vsyncadd [#allocation7], 4294965248 }
 0xff6   :  { %2751 = vsyncpa [#allocation6], 1 }
 0xff7   :  { %2752 = vsyncpa [#allocation11], 1 }
 0xff8   :  { %2753 = vsyncpa [#allocation7], 1 }
 0xff9   :  { %2754 = vsyncpa [#allocation8], 1 }
 0xffa   :  { %2755 = vsyncmov [#allocation4] }
 0xffd   :  { %s2756_s16 = vpop.sfrf %2755 }
 0xffe   :  { %p2769_p9 = scmp.ne.s32.totalorder %s2756_s16, 0 }
0x1000   :  { %2760 = shalt.err (%p2769_p9)  }
0x1001   :  { %2762 = vsyncmov [#allocation4 + $0x1] }
0x1004   :  { %s2763_s17 = vpop.sfrf %2762 }
0x1005   :  { %p2770_p10 = scmp.ne.s32.totalorder %s2763_s17, 0 }
0x1007   :  { %2767 = shalt.err (%p2770_p10)  }

</bundles_post_ra>
